<compile_context>
chip_gen: v6e
topology: v6e:2x2x1
jax: 0.10.0
libtpu: 0.0.40
codegen_flags: <defaults>
</compile_context>

<pallas_src>
import jax
import jax.numpy as jnp
from jax.experimental import pallas as pl
from jax.experimental.pallas import tpu as pltpu


# ----------------------------------------------------------------------------
# Helpers
# ----------------------------------------------------------------------------
def _pick_tile(dim, max_tile, quantum):
    """Biggest tile <= max_tile that divides `dim` (multiple of `quantum`)."""
    if dim <= max_tile:
        return dim
    t = (max_tile // quantum) * quantum
    while t >= quantum:
        if dim % t == 0:
            return t
        t -= quantum
    return dim  # full-extent fallback (only hit for unpadded leading dims)


def _pad_to(x, multiples):
    """Zero-pad each dim of `x` up to the next multiple of `multiples[d]`."""
    pads = []
    for d, m in zip(x.shape, multiples):
        target = ((d + m - 1) // m) * m
        pads.append((0, target - d))
    if all(p == (0, 0) for p in pads):
        return x
    return jnp.pad(x, pads)


# ----------------------------------------------------------------------------
# Generic tiled matmul + bias kernel with K-tiling (bf16 MXU, f32 accumulate).
# Used for: per-layer hoisted input projection, the layer-0 context
# projection, and the final vocab projection.
# ----------------------------------------------------------------------------
def _matmul_bias_kernel(x_ref, w_ref, b_ref, o_ref, acc_ref):
    k = pl.program_id(2)

    @pl.when(k == 0)
    def _():
        acc_ref[...] = jnp.zeros_like(acc_ref)

    acc_ref[...] += jnp.dot(x_ref[...].astype(w_ref.dtype), w_ref[...],
                            preferred_element_type=jnp.float32)

    @pl.when(k == pl.num_programs(2) - 1)
    def _():
        o_ref[...] = (acc_ref[...] + b_ref[...]).astype(o_ref.dtype)


def matmul_bias(x2d, w_t, b_row, *, out_dtype=jnp.float32,
                tm_max=256, tn_max=512, tk_max=512):
    """x2d: (M, K), w_t: (K, N) bf16 (pre-transposed), b_row: (1, N) f32."""
    M, K = x2d.shape
    _, N = w_t.shape

    # Zero-pad to (8,128)-aligned sizes: keeps the matmul exact, keeps tiles
    # 128-aligned / lane-dense, and guarantees bounded VMEM tiles.
    xp = _pad_to(x2d, (8, 128))
    wp = _pad_to(w_t, (128, 128))
    bp = _pad_to(b_row, (1, 128))
    Mp, Kp = xp.shape
    _, Np = wp.shape

    tm = _pick_tile(Mp, tm_max, 8)
    tn = _pick_tile(Np, tn_max, 128)
    tk = _pick_tile(Kp, tk_max, 128)

    out = pl.pallas_call(
        _matmul_bias_kernel,
        out_shape=jax.ShapeDtypeStruct((Mp, Np), out_dtype),
        grid=(Mp // tm, Np // tn, Kp // tk),
        in_specs=[
            pl.BlockSpec((tm, tk), lambda i, j, k: (i, k)),
            pl.BlockSpec((tk, tn), lambda i, j, k: (k, j)),
            pl.BlockSpec((1, tn), lambda i, j, k: (0, j)),
        ],
        out_specs=pl.BlockSpec((tm, tn), lambda i, j, k: (i, j)),
        scratch_shapes=[pltpu.VMEM((tm, tn), jnp.float32)],
        compiler_params=pltpu.CompilerParams(
            dimension_semantics=("parallel", "parallel", "arbitrary")),
    )(xp, wp, bp)

    if (Mp, Np) != (M, N):
        out = out[:M, :N]
    return out


# ----------------------------------------------------------------------------
# GRU recurrence kernel.  The input projection gi = x @ W_ih^T + b_ih has been
# hoisted out (precomputed for all timesteps, stored bf16); this kernel only
# carries h across a (batch-block, time-block) grid and does the small
# h @ W_hh^T per step.  Two variants: with / without the constant context
# addend (layer 0 only).
#
#   gi_ref  : (BB, TB, 3H) bf16  precomputed input-gate pre-activations
#   h0_ref  : (BB, H)      f32   initial hidden state
#   w_hh_ref: (H, 3H)      bf16  pre-transposed hidden weights
#   bhh_ref : (1, 3H)      f32   hidden bias (b_hn stays inside r*(...))
#   gib_ref : (BB, 3H)     f32   constant ctx @ W_ih_ctx^T   (layer 0 only)
#   out_ref : (BB, TB, H)  bf16
#   hN_ref  : (BB, H)      f32
# ----------------------------------------------------------------------------
def _make_gru_kernel(TB, H, has_ctx):
    def kernel(*refs):
        if has_ctx:
            (gi_ref, h0_ref, w_hh_ref, bhh_ref, gib_ref,
             out_ref, hN_ref, h_scratch) = refs
        else:
            (gi_ref, h0_ref, w_hh_ref, bhh_ref,
             out_ref, hN_ref, h_scratch) = refs

        t = pl.program_id(1)

        @pl.when(t == 0)
        def _():
            h_scratch[...] = h0_ref[...]

        w_hh = w_hh_ref[...]                  # (H, 3H) bf16
        b_hh = bhh_ref[...]                   # (1, 3H) f32
        gib = gib_ref[...] if has_ctx else None   # (BB, 3H) f32

        h = h_scratch[...]                    # (BB, H) f32
        for i in range(TB):                   # short static unroll (TB <= 16)
            gi = gi_ref[:, i, :].astype(jnp.float32)      # per-step load only
            if has_ctx:
                gi = gi + gib
            gh = jnp.dot(h.astype(w_hh.dtype), w_hh,
                         preferred_element_type=jnp.float32) + b_hh
            # PyTorch gate order [r, z, n]; gate math kept in f32.
            r = jax.nn.sigmoid(gi[:, 0 * H:1 * H] + gh[:, 0 * H:1 * H])
            z = jax.nn.sigmoid(gi[:, 1 * H:2 * H] + gh[:, 1 * H:2 * H])
            n = jnp.tanh(gi[:, 2 * H:3 * H] + r * gh[:, 2 * H:3 * H])
            h = (1.0 - z) * n + z * h
            out_ref[:, i, :] = h.astype(out_ref.dtype)

        h_scratch[...] = h
        hN_ref[...] = h
    return kernel


def gru_recurrent(gi_all, h0, w_hh_t, b_hh, gi_bias=None,
                  *, tb_max=16, bb_max=16):
    """gi_all: (B, T, 3H) bf16 -> (out (B, T, H) bf16, hN (B, H) f32)."""
    B, T, G = gi_all.shape
    H = h0.shape[-1]
    TB = _pick_tile(T, tb_max, 8)
    BB = _pick_tile(B, bb_max, 8)
    has_ctx = gi_bias is not None

    in_specs = [
        pl.BlockSpec((BB, TB, G), lambda b, t: (b, t, 0)),   # gi block
        pl.BlockSpec((BB, H), lambda b, t: (b, 0)),          # h0
        pl.BlockSpec((H, G), lambda b, t: (0, 0)),           # w_hh^T
        pl.BlockSpec((1, G), lambda b, t: (0, 0)),           # b_hh
    ]
    inputs = [gi_all, h0, w_hh_t, b_hh]
    if has_ctx:
        in_specs.append(pl.BlockSpec((BB, G), lambda b, t: (b, 0)))
        inputs.append(gi_bias)

    return pl.pallas_call(
        _make_gru_kernel(TB, H, has_ctx),
        out_shape=(jax.ShapeDtypeStruct((B, T, H), jnp.bfloat16),
                   jax.ShapeDtypeStruct((B, H), jnp.float32)),
        grid=(B // BB, T // TB),
        in_specs=in_specs,
        out_specs=(pl.BlockSpec((BB, TB, H), lambda b, t: (b, t, 0)),
                   pl.BlockSpec((BB, H), lambda b, t: (b, 0))),
        scratch_shapes=[pltpu.VMEM((BB, H), jnp.float32)],
        compiler_params=pltpu.CompilerParams(
            dimension_semantics=("parallel", "arbitrary")),
    )(*inputs)


# ----------------------------------------------------------------------------
# Parameter init: mirrors nn.Embedding / nn.GRU / nn.Linear shapes and init
# distributions, but stores weights pre-transposed (and bf16) for the kernels.
# ----------------------------------------------------------------------------
def init_decoder_params(key, vocab_size, embed_size, num_hiddens, num_layers):
    keys = jax.random.split(key, 1 + 4 * num_layers + 2)
    k = 1.0 / float(num_hiddens) ** 0.5
    params = {}
    params["embedding"] = jax.random.normal(
        keys[0], (vocab_size, embed_size), jnp.float32)

    layers = []
    ki = 1
    for l in range(num_layers):
        d_in = embed_size + num_hiddens if l == 0 else num_hiddens
        w_ih = jax.random.uniform(keys[ki], (3 * num_hiddens, d_in),
                                  jnp.float32, -k, k); ki += 1
        w_hh = jax.random.uniform(keys[ki], (3 * num_hiddens, num_hiddens),
                                  jnp.float32, -k, k); ki += 1
        b_ih = jax.random.uniform(keys[ki], (3 * num_hiddens,),
                                  jnp.float32, -k, k); ki += 1
        b_hh = jax.random.uniform(keys[ki], (3 * num_hiddens,),
                                  jnp.float32, -k, k); ki += 1
        layer = {
            "w_hh_t": jnp.transpose(w_hh).astype(jnp.bfloat16),   # (H, 3H)
            "b_ih": b_ih[None, :],                                # (1, 3H) f32
            "b_hh": b_hh[None, :],                                # (1, 3H) f32
        }
        if l == 0:
            # Split W_ih columns into the token-embedding part and the
            # (constant-over-time) context part -> the concat of the reference
            # becomes a constant per-batch addend inside the recurrence.
            layer["w_ih_x_t"] = jnp.transpose(
                w_ih[:, :embed_size]).astype(jnp.bfloat16)        # (E, 3H)
            layer["w_ih_c_t"] = jnp.transpose(
                w_ih[:, embed_size:]).astype(jnp.bfloat16)        # (H, 3H)
        else:
            layer["w_ih_x_t"] = jnp.transpose(w_ih).astype(jnp.bfloat16)
        layers.append(layer)
    params["gru"] = layers

    dense_w = jax.random.uniform(keys[ki], (vocab_size, num_hiddens),
                                 jnp.float32, -k, k); ki += 1
    dense_b = jax.random.uniform(keys[ki], (vocab_size,),
                                 jnp.float32, -k, k)
    params["dense_w_t"] = jnp.transpose(dense_w).astype(jnp.bfloat16)  # (H, V)
    params["dense_b"] = dense_b[None, :]                               # (1, V)
    return params


# ----------------------------------------------------------------------------
# Decoder.forward
# ----------------------------------------------------------------------------
def decoder_forward(params, X, state):
    """X: (B, T) int32 token ids, state: (num_layers, B, H) f32.

    Returns (logits (B, T, vocab) f32, new_state (num_layers, B, H) f32).
    """
    B, T = X.shape
    H = state.shape[-1]

    # Embedding lookup (gather glue stays in plain JAX); batch-major (B,T,E),
    # so no permutes are needed anywhere.
    x = jnp.take(params["embedding"], X, axis=0)               # (B, T, E) f32
    ctx = state[-1]                                            # (B, H)

    new_states = []
    for l, lp in enumerate(params["gru"]):
        d_in = x.shape[-1]
        # Hoisted input projection: one big MXU matmul over all timesteps,
        # b_ih folded in; intermediate stored in bf16.
        gi_all = matmul_bias(x.reshape(B * T, d_in), lp["w_ih_x_t"],
                             lp["b_ih"],
                             out_dtype=jnp.bfloat16).reshape(B, T, 3 * H)
        if l == 0:
            # Context contribution (replaces repeat + concat of the reference):
            # constant over time, added per step inside the recurrent kernel.
            gi_bias = matmul_bias(ctx, lp["w_ih_c_t"],
                                  jnp.zeros((1, 3 * H), jnp.float32),
                                  out_dtype=jnp.float32)
        else:
            gi_bias = None   # specialized kernel: no ctx operand at all

        out, hN = gru_recurrent(gi_all, state[l], lp["w_hh_t"], lp["b_hh"],
                                gi_bias)
        new_states.append(hN)
        x = out                                                # (B, T, H) bf16
        # TODO(synk): inter-layer dropout omitted (module uses dropout=0.0)
    new_state = jnp.stack(new_states, axis=0)

    logits = matmul_bias(x.reshape(B * T, H),
                         params["dense_w_t"], params["dense_b"],
                         out_dtype=jnp.float32)                # (B*T, V)
    logits = logits.reshape(B, T, -1)                          # (B, T, V)
    return logits, new_state


if __name__ == "__main__":
    vocab_size, embed_size, num_hiddens, num_layers = 32, 16, 32, 2
    batch, seq = 4, 8

    key = jax.random.PRNGKey(0)
    kp, kx, ks = jax.random.split(key, 3)
    params = init_decoder_params(kp, vocab_size, embed_size,
                                 num_hiddens, num_layers)

    X = jax.random.randint(kx, (batch, seq), 0, vocab_size, dtype=jnp.int32)
    state = jax.random.normal(ks, (num_layers, batch, num_hiddens),
                              jnp.float32)

    fwd = jax.jit(decoder_forward)
    output, new_state = fwd(params, X, state)
    jax.block_until_ready(output)
    jax.block_until_ready(new_state)

    assert output.shape == (batch, seq, vocab_size), output.shape
    assert output.dtype == jnp.float32, output.dtype
    assert new_state.shape == (num_layers, batch, num_hiddens), new_state.shape
    assert jnp.all(jnp.isfinite(output)) and jnp.all(jnp.isfinite(new_state))
    print("KERNEL_OK")
</pallas_src>

<mosaic_0001>
module attributes {stable_mosaic.version = 11 : i64} {
  func.func @_matmul_bias_kernel(%arg0: i32, %arg1: i32, %arg2: i32, %arg3: memref<32x128xf32, #tpu.memory_space<vmem>>, %arg4: memref<128x128xbf16, #tpu.memory_space<vmem>>, %arg5: memref<1x128xf32, #tpu.memory_space<vmem>>, %arg6: memref<32x128xbf16, #tpu.memory_space<vmem>>, %arg7: memref<32x128xf32, #tpu.memory_space<vmem>>) attributes {dimension_semantics = [#tpu.dimension_semantics<parallel>, #tpu.dimension_semantics<parallel>, #tpu.dimension_semantics<arbitrary>], iteration_bounds = array<i64: 1, 1, 1>, scalar_prefetch = 0 : i64, scratch_operands = 1 : i64, tpu.core_type = #tpu.core_type<tc>, window_params = [{transform_indices = @transform_0, window_bounds = array<i64: 32, 128>}, {transform_indices = @transform_1, window_bounds = array<i64: 128, 128>}, {transform_indices = @transform_2, window_bounds = array<i64: 1, 128>}, {transform_indices = @transform_3, window_bounds = array<i64: 32, 128>}]} {
    %c0_i32 = arith.constant 0 : i32
    %0 = arith.cmpi eq, %arg2, %c0_i32 : i32
    %1 = arith.extui %0 : i1 to i32
    %c0_i32_0 = arith.constant 0 : i32
    %2 = arith.cmpi ne, %1, %c0_i32_0 : i32
    scf.if %2 {
      %cst_10 = arith.constant 0.000000e+00 : f32
      %13 = vector.broadcast %cst_10 : f32 to vector<32x128xf32>
      %c0_11 = arith.constant 0 : index
      %c0_12 = arith.constant 0 : index
      %14 = vector.load %arg7[%c0_11, %c0_12] : memref<32x128xf32, #tpu.memory_space<vmem>>, vector<32x128xf32>
      tpu.vector_store %arg7[%c0_11, %c0_12], %13 {strides = array<i32>} : memref<32x128xf32, #tpu.memory_space<vmem>>, vector<32x128xf32>,
    } else {
    }
    %c0 = arith.constant 0 : index
    %c0_1 = arith.constant 0 : index
    %3 = vector.load %arg7[%c0, %c0_1] : memref<32x128xf32, #tpu.memory_space<vmem>>, vector<32x128xf32>
    %c0_2 = arith.constant 0 : index
    %c0_3 = arith.constant 0 : index
    %4 = vector.load %arg3[%c0_2, %c0_3] : memref<32x128xf32, #tpu.memory_space<vmem>>, vector<32x128xf32>
    %5 = arith.truncf %4 : vector<32x128xf32> to vector<32x128xbf16>
    %c0_4 = arith.constant 0 : index
    %c0_5 = arith.constant 0 : index
    %6 = vector.load %arg4[%c0_4, %c0_5] : memref<128x128xbf16, #tpu.memory_space<vmem>>, vector<128x128xbf16>
    %cst = arith.constant dense<0.000000e+00> : vector<32x128xf32>
    %7 = tpu.matmul %5, %6, %cst {dimension_numbers = #tpu.dot_dimension_numbers<[1], [0], [0], [1], [0, 0, 1, 1], [], []>} : vector<32x128xbf16>, vector<128x128xbf16>, vector<32x128xf32> -> vector<32x128xf32>
    %8 = arith.addf %3, %7 : vector<32x128xf32>
    %c0_6 = arith.constant 0 : index
    %c0_7 = arith.constant 0 : index
    %9 = vector.load %arg7[%c0_6, %c0_7] : memref<32x128xf32, #tpu.memory_space<vmem>>, vector<32x128xf32>
    tpu.vector_store %arg7[%c0_6, %c0_7], %8 {strides = array<i32>} : memref<32x128xf32, #tpu.memory_space<vmem>>, vector<32x128xf32>,
    %c0_i32_8 = arith.constant 0 : i32
    %10 = arith.cmpi eq, %arg2, %c0_i32_8 : i32
    %11 = arith.extui %10 : i1 to i32
    %c0_i32_9 = arith.constant 0 : i32
    %12 = arith.cmpi ne, %11, %c0_i32_9 : i32
    scf.if %12 {
      %c0_10 = arith.constant 0 : index
      %c0_11 = arith.constant 0 : index
      %13 = vector.load %arg7[%c0_10, %c0_11] : memref<32x128xf32, #tpu.memory_space<vmem>>, vector<32x128xf32>
      %c0_12 = arith.constant 0 : index
      %c0_13 = arith.constant 0 : index
      %14 = vector.load %arg5[%c0_12, %c0_13] : memref<1x128xf32, #tpu.memory_space<vmem>>, vector<1x128xf32>
      %15 = vector.broadcast %14 : vector<1x128xf32> to vector<32x128xf32>
      %16 = arith.addf %13, %15 : vector<32x128xf32>
      %17 = arith.truncf %16 : vector<32x128xf32> to vector<32x128xbf16>
      %c0_14 = arith.constant 0 : index
      %c0_15 = arith.constant 0 : index
      %18 = vector.load %arg6[%c0_14, %c0_15] : memref<32x128xbf16, #tpu.memory_space<vmem>>, vector<32x128xbf16>
      tpu.vector_store %arg6[%c0_14, %c0_15], %17 {strides = array<i32>} : memref<32x128xbf16, #tpu.memory_space<vmem>>, vector<32x128xbf16>,
    } else {
    }
    return
  }
  func.func @transform_0(%arg0: i32, %arg1: i32, %arg2: i32) -> (i32, i32) {
    %c0_i32 = arith.constant 0 : i32
    return %arg0, %arg2 : i32, i32
  }
  func.func @transform_1(%arg0: i32, %arg1: i32, %arg2: i32) -> (i32, i32) {
    %c0_i32 = arith.constant 0 : i32
    return %arg2, %arg1 : i32, i32
  }
  func.func @transform_2(%arg0: i32, %arg1: i32, %arg2: i32) -> (i32, i32) {
    %c0_i32 = arith.constant 0 : i32
    %c0_i32_0 = arith.constant 0 : i32
    return %c0_i32, %arg1 : i32, i32
  }
  func.func @transform_3(%arg0: i32, %arg1: i32, %arg2: i32) -> (i32, i32) {
    %c0_i32 = arith.constant 0 : i32
    return %arg0, %arg1 : i32, i32
  }
}

module attributes {stable_mosaic.version = 11 : i64} {
  func.func @kernel(%arg0: i32, %arg1: i32, %arg2: memref<4x8x96xbf16, #tpu.memory_space<vmem>>, %arg3: memref<4x32xf32, #tpu.memory_space<vmem>>, %arg4: memref<32x96xbf16, #tpu.memory_space<vmem>>, %arg5: memref<1x96xf32, #tpu.memory_space<vmem>>, %arg6: memref<4x96xf32, #tpu.memory_space<vmem>>, %arg7: memref<4x8x32xbf16, #tpu.memory_space<vmem>>, %arg8: memref<4x32xf32, #tpu.memory_space<vmem>>, %arg9: memref<4x32xf32, #tpu.memory_space<vmem>>) attributes {dimension_semantics = [#tpu.dimension_semantics<parallel>, #tpu.dimension_semantics<arbitrary>], iteration_bounds = array<i64: 1, 1>, scalar_prefetch = 0 : i64, scratch_operands = 1 : i64, tpu.core_type = #tpu.core_type<tc>, window_params = [{transform_indices = @transform_0, window_bounds = array<i64: 4, 8, 96>}, {transform_indices = @transform_1, window_bounds = array<i64: 4, 32>}, {pipeline_mode = #tpu.pipeline_mode<synchronous>, transform_indices = @transform_2, window_bounds = array<i64: 32, 96>}, {pipeline_mode = #tpu.pipeline_mode<synchronous>, transform_indices = @transform_3, window_bounds = array<i64: 1, 96>}, {transform_indices = @transform_4, window_bounds = array<i64: 4, 96>}, {transform_indices = @transform_5, window_bounds = array<i64: 4, 8, 32>}, {transform_indices = @transform_6, window_bounds = array<i64: 4, 32>}]} {
    %c0_i32 = arith.constant 0 : i32
    %0 = arith.cmpi eq, %arg1, %c0_i32 : i32
    %1 = arith.extui %0 : i1 to i32
    %c0_i32_0 = arith.constant 0 : i32
    %2 = arith.cmpi ne, %1, %c0_i32_0 : i32
    scf.if %2 {
      %c0_84 = arith.constant 0 : index
      %c0_85 = arith.constant 0 : index
      %313 = vector.load %arg3[%c0_84, %c0_85] : memref<4x32xf32, #tpu.memory_space<vmem>>, vector<4x32xf32>
      %c0_86 = arith.constant 0 : index
      %c0_87 = arith.constant 0 : index
      %314 = vector.load %arg9[%c0_86, %c0_87] : memref<4x32xf32, #tpu.memory_space<vmem>>, vector<4x32xf32>
      tpu.vector_store %arg9[%c0_86, %c0_87], %313 {strides = array<i32>} : memref<4x32xf32, #tpu.memory_space<vmem>>, vector<4x32xf32>,
    } else {
    }
    %c0 = arith.constant 0 : index
    %c0_1 = arith.constant 0 : index
    %3 = vector.load %arg4[%c0, %c0_1] : memref<32x96xbf16, #tpu.memory_space<vmem>>, vector<32x96xbf16>
    %c0_2 = arith.constant 0 : index
    %c0_3 = arith.constant 0 : index
    %4 = vector.load %arg5[%c0_2, %c0_3] : memref<1x96xf32, #tpu.memory_space<vmem>>, vector<1x96xf32>
    %c0_4 = arith.constant 0 : index
    %c0_5 = arith.constant 0 : index
    %5 = vector.load %arg6[%c0_4, %c0_5] : memref<4x96xf32, #tpu.memory_space<vmem>>, vector<4x96xf32>
    %c0_6 = arith.constant 0 : index
    %c0_7 = arith.constant 0 : index
    %6 = vector.load %arg9[%c0_6, %c0_7] : memref<4x32xf32, #tpu.memory_space<vmem>>, vector<4x32xf32>
    %c0_8 = arith.constant 0 : index
    %c0_9 = arith.constant 0 : index
    %c0_10 = arith.constant 0 : index
    %7 = vector.load %arg2[%c0_8, %c0_9, %c0_10] : memref<4x8x96xbf16, #tpu.memory_space<vmem>>, vector<4x1x96xbf16>
    %8 = vector.shape_cast %7 : vector<4x1x96xbf16> to vector<4x96xbf16>
    %9 = arith.extf %8 : vector<4x96xbf16> to vector<4x96xf32>
    %10 = arith.addf %9, %5 : vector<4x96xf32>
    %11 = arith.truncf %6 : vector<4x32xf32> to vector<4x32xbf16>
    %cst = arith.constant dense<0.000000e+00> : vector<4x96xf32>
    %12 = tpu.matmul %11, %3, %cst {dimension_numbers = #tpu.dot_dimension_numbers<[1], [0], [0], [1], [0, 0, 1, 1], [], []>} : vector<4x32xbf16>, vector<32x96xbf16>, vector<4x96xf32> -> vector<4x96xf32>
    %13 = vector.broadcast %4 : vector<1x96xf32> to vector<4x96xf32>
    %14 = arith.addf %12, %13 : vector<4x96xf32>
    %15 = vector.extract_strided_slice %10 {offsets = [0, 0], sizes = [4, 32], strides = [1, 1]} : vector<4x96xf32> to vector<4x32xf32>
    %16 = vector.extract_strided_slice %14 {offsets = [0, 0], sizes = [4, 32], strides = [1, 1]} : vector<4x96xf32> to vector<4x32xf32>
    %17 = arith.addf %15, %16 : vector<4x32xf32>
    %18 = arith.negf %17 : vector<4x32xf32>
    %19 = math.exp %18 : vector<4x32xf32>
    %cst_11 = arith.constant 1.000000e+00 : f32
    %20 = vector.broadcast %cst_11 : f32 to vector<4x32xf32>
    %21 = arith.addf %20, %19 : vector<4x32xf32>
    %22 = arith.divf %20, %21 : vector<4x32xf32>
    %23 = vector.extract_strided_slice %10 {offsets = [0, 32], sizes = [4, 32], strides = [1, 1]} : vector<4x96xf32> to vector<4x32xf32>
    %24 = vector.extract_strided_slice %14 {offsets = [0, 32], sizes = [4, 32], strides = [1, 1]} : vector<4x96xf32> to vector<4x32xf32>
    %25 = arith.addf %23, %24 : vector<4x32xf32>
    %26 = arith.negf %25 : vector<4x32xf32>
    %27 = math.exp %26 : vector<4x32xf32>
    %cst_12 = arith.constant 1.000000e+00 : f32
    %28 = vector.broadcast %cst_12 : f32 to vector<4x32xf32>
    %29 = arith.addf %28, %27 : vector<4x32xf32>
    %30 = arith.divf %28, %29 : vector<4x32xf32>
    %31 = vector.extract_strided_slice %10 {offsets = [0, 64], sizes = [4, 32], strides = [1, 1]} : vector<4x96xf32> to vector<4x32xf32>
    %32 = vector.extract_strided_slice %14 {offsets = [0, 64], sizes = [4, 32], strides = [1, 1]} : vector<4x96xf32> to vector<4x32xf32>
    %33 = arith.mulf %22, %32 : vector<4x32xf32>
    %34 = arith.addf %31, %33 : vector<4x32xf32>
    %35 = math.tanh %34 : vector<4x32xf32>
    %cst_13 = arith.constant 1.000000e+00 : f32
    %36 = vector.broadcast %cst_13 : f32 to vector<4x32xf32>
    %37 = arith.subf %36, %30 : vector<4x32xf32>
    %38 = arith.mulf %37, %35 : vector<4x32xf32>
    %39 = arith.mulf %30, %6 : vector<4x32xf32>
    %40 = arith.addf %38, %39 : vector<4x32xf32>
    %41 = arith.truncf %40 : vector<4x32xf32> to vector<4x32xbf16>
    %c0_14 = arith.constant 0 : index
    %c0_15 = arith.constant 0 : index
    %c0_16 = arith.constant 0 : index
    %42 = vector.load %arg7[%c0_14, %c0_15, %c0_16] : memref<4x8x32xbf16, #tpu.memory_space<vmem>>, vector<4x1x32xbf16>
    %43 = vector.shape_cast %42 : vector<4x1x32xbf16> to vector<4x32xbf16>
    %44 = vector.shape_cast %41 : vector<4x32xbf16> to vector<4x1x32xbf16>
    tpu.vector_store %arg7[%c0_14, %c0_15, %c0_16], %44 {strides = array<i32>} : memref<4x8x32xbf16, #tpu.memory_space<vmem>>, vector<4x1x32xbf16>,
    %c0_17 = arith.constant 0 : index
    %c1 = arith.constant 1 : index
    %c0_18 = arith.constant 0 : index
    %45 = vector.load %arg2[%c0_17, %c1, %c0_18] : memref<4x8x96xbf16, #tpu.memory_space<vmem>>, vector<4x1x96xbf16>
    %46 = vector.shape_cast %45 : vector<4x1x96xbf16> to vector<4x96xbf16>
    %47 = arith.extf %46 : vector<4x96xbf16> to vector<4x96xf32>
    %48 = arith.addf %47, %5 : vector<4x96xf32>
    %49 = arith.truncf %40 : vector<4x32xf32> to vector<4x32xbf16>
    %cst_19 = arith.constant dense<0.000000e+00> : vector<4x96xf32>
    %50 = tpu.matmul %49, %3, %cst_19 {dimension_numbers = #tpu.dot_dimension_numbers<[1], [0], [0], [1], [0, 0, 1, 1], [], []>} : vector<4x32xbf16>, vector<32x96xbf16>, vector<4x96xf32> -> vector<4x96xf32>
    %51 = vector.broadcast %4 : vector<1x96xf32> to vector<4x96xf32>
    %52 = arith.addf %50, %51 : vector<4x96xf32>
    %53 = vector.extract_strided_slice %48 {offsets = [0, 0], sizes = [4, 32], strides = [1, 1]} : vector<4x96xf32> to vector<4x32xf32>
    %54 = vector.extract_strided_slice %52 {offsets = [0, 0], sizes = [4, 32], strides = [1, 1]} : vector<4x96xf32> to vector<4x32xf32>
    %55 = arith.addf %53, %54 : vector<4x32xf32>
    %56 = arith.negf %55 : vector<4x32xf32>
    %57 = math.exp %56 : vector<4x32xf32>
    %cst_20 = arith.constant 1.000000e+00 : f32
    %58 = vector.broadcast %cst_20 : f32 to vector<4x32xf32>
    %59 = arith.addf %58, %57 : vector<4x32xf32>
    %60 = arith.divf %58, %59 : vector<4x32xf32>
    %61 = vector.extract_strided_slice %48 {offsets = [0, 32], sizes = [4, 32], strides = [1, 1]} : vector<4x96xf32> to vector<4x32xf32>
    %62 = vector.extract_strided_slice %52 {offsets = [0, 32], sizes = [4, 32], strides = [1, 1]} : vector<4x96xf32> to vector<4x32xf32>
    %63 = arith.addf %61, %62 : vector<4x32xf32>
    %64 = arith.negf %63 : vector<4x32xf32>
    %65 = math.exp %64 : vector<4x32xf32>
    %cst_21 = arith.constant 1.000000e+00 : f32
    %66 = vector.broadcast %cst_21 : f32 to vector<4x32xf32>
    %67 = arith.addf %66, %65 : vector<4x32xf32>
    %68 = arith.divf %66, %67 : vector<4x32xf32>
    %69 = vector.extract_strided_slice %48 {offsets = [0, 64], sizes = [4, 32], strides = [1, 1]} : vector<4x96xf32> to vector<4x32xf32>
    %70 = vector.extract_strided_slice %52 {offsets = [0, 64], sizes = [4, 32], strides = [1, 1]} : vector<4x96xf32> to vector<4x32xf32>
    %71 = arith.mulf %60, %70 : vector<4x32xf32>
    %72 = arith.addf %69, %71 : vector<4x32xf32>
    %73 = math.tanh %72 : vector<4x32xf32>
    %cst_22 = arith.constant 1.000000e+00 : f32
    %74 = vector.broadcast %cst_22 : f32 to vector<4x32xf32>
    %75 = arith.subf %74, %68 : vector<4x32xf32>
    %76 = arith.mulf %75, %73 : vector<4x32xf32>
    %77 = arith.mulf %68, %40 : vector<4x32xf32>
    %78 = arith.addf %76, %77 : vector<4x32xf32>
    %79 = arith.truncf %78 : vector<4x32xf32> to vector<4x32xbf16>
    %c0_23 = arith.constant 0 : index
    %c1_24 = arith.constant 1 : index
    %c0_25 = arith.constant 0 : index
    %80 = vector.load %arg7[%c0_23, %c1_24, %c0_25] : memref<4x8x32xbf16, #tpu.memory_space<vmem>>, vector<4x1x32xbf16>
    %81 = vector.shape_cast %80 : vector<4x1x32xbf16> to vector<4x32xbf16>
    %82 = vector.shape_cast %79 : vector<4x32xbf16> to vector<4x1x32xbf16>
    tpu.vector_store %arg7[%c0_23, %c1_24, %c0_25], %82 {strides = array<i32>} : memref<4x8x32xbf16, #tpu.memory_space<vmem>>, vector<4x1x32xbf16>,
    %c0_26 = arith.constant 0 : index
    %c2 = arith.constant 2 : index
    %c0_27 = arith.constant 0 : index
    %83 = vector.load %arg2[%c0_26, %c2, %c0_27] : memref<4x8x96xbf16, #tpu.memory_space<vmem>>, vector<4x1x96xbf16>
    %84 = vector.shape_cast %83 : vector<4x1x96xbf16> to vector<4x96xbf16>
    %85 = arith.extf %84 : vector<4x96xbf16> to vector<4x96xf32>
    %86 = arith.addf %85, %5 : vector<4x96xf32>
    %87 = arith.truncf %78 : vector<4x32xf32> to vector<4x32xbf16>
    %cst_28 = arith.constant dense<0.000000e+00> : vector<4x96xf32>
    %88 = tpu.matmul %87, %3, %cst_28 {dimension_numbers = #tpu.dot_dimension_numbers<[1], [0], [0], [1], [0, 0, 1, 1], [], []>} : vector<4x32xbf16>, vector<32x96xbf16>, vector<4x96xf32> -> vector<4x96xf32>
    %89 = vector.broadcast %4 : vector<1x96xf32> to vector<4x96xf32>
    %90 = arith.addf %88, %89 : vector<4x96xf32>
    %91 = vector.extract_strided_slice %86 {offsets = [0, 0], sizes = [4, 32], strides = [1, 1]} : vector<4x96xf32> to vector<4x32xf32>
    %92 = vector.extract_strided_slice %90 {offsets = [0, 0], sizes = [4, 32], strides = [1, 1]} : vector<4x96xf32> to vector<4x32xf32>
    %93 = arith.addf %91, %92 : vector<4x32xf32>
    %94 = arith.negf %93 : vector<4x32xf32>
    %95 = math.exp %94 : vector<4x32xf32>
    %cst_29 = arith.constant 1.000000e+00 : f32
    %96 = vector.broadcast %cst_29 : f32 to vector<4x32xf32>
    %97 = arith.addf %96, %95 : vector<4x32xf32>
    %98 = arith.divf %96, %97 : vector<4x32xf32>
    %99 = vector.extract_strided_slice %86 {offsets = [0, 32], sizes = [4, 32], strides = [1, 1]} : vector<4x96xf32> to vector<4x32xf32>
    %100 = vector.extract_strided_slice %90 {offsets = [0, 32], sizes = [4, 32], strides = [1, 1]} : vector<4x96xf32> to vector<4x32xf32>
    %101 = arith.addf %99, %100 : vector<4x32xf32>
    %102 = arith.negf %101 : vector<4x32xf32>
    %103 = math.exp %102 : vector<4x32xf32>
    %cst_30 = arith.constant 1.000000e+00 : f32
    %104 = vector.broadcast %cst_30 : f32 to vector<4x32xf32>
    %105 = arith.addf %104, %103 : vector<4x32xf32>
    %106 = arith.divf %104, %105 : vector<4x32xf32>
    %107 = vector.extract_strided_slice %86 {offsets = [0, 64], sizes = [4, 32], strides = [1, 1]} : vector<4x96xf32> to vector<4x32xf32>
    %108 = vector.extract_strided_slice %90 {offsets = [0, 64], sizes = [4, 32], strides = [1, 1]} : vector<4x96xf32> to vector<4x32xf32>
    %109 = arith.mulf %98, %108 : vector<4x32xf32>
    %110 = arith.addf %107, %109 : vector<4x32xf32>
    %111 = math.tanh %110 : vector<4x32xf32>
    %cst_31 = arith.constant 1.000000e+00 : f32
    %112 = vector.broadcast %cst_31 : f32 to vector<4x32xf32>
    %113 = arith.subf %112, %106 : vector<4x32xf32>
    %114 = arith.mulf %113, %111 : vector<4x32xf32>
    %115 = arith.mulf %106, %78 : vector<4x32xf32>
    %116 = arith.addf %114, %115 : vector<4x32xf32>
    %117 = arith.truncf %116 : vector<4x32xf32> to vector<4x32xbf16>
    %c0_32 = arith.constant 0 : index
    %c2_33 = arith.constant 2 : index
    %c0_34 = arith.constant 0 : index
    %118 = vector.load %arg7[%c0_32, %c2_33, %c0_34] : memref<4x8x32xbf16, #tpu.memory_space<vmem>>, vector<4x1x32xbf16>
    %119 = vector.shape_cast %118 : vector<4x1x32xbf16> to vector<4x32xbf16>
    %120 = vector.shape_cast %117 : vector<4x32xbf16> to vector<4x1x32xbf16>
    tpu.vector_store %arg7[%c0_32, %c2_33, %c0_34], %120 {strides = array<i32>} : memref<4x8x32xbf16, #tpu.memory_space<vmem>>, vector<4x1x32xbf16>,
    %c0_35 = arith.constant 0 : index
    %c3 = arith.constant 3 : index
    %c0_36 = arith.constant 0 : index
    %121 = vector.load %arg2[%c0_35, %c3, %c0_36] : memref<4x8x96xbf16, #tpu.memory_space<vmem>>, vector<4x1x96xbf16>
    %122 = vector.shape_cast %121 : vector<4x1x96xbf16> to vector<4x96xbf16>
    %123 = arith.extf %122 : vector<4x96xbf16> to vector<4x96xf32>
    %124 = arith.addf %123, %5 : vector<4x96xf32>
    %125 = arith.truncf %116 : vector<4x32xf32> to vector<4x32xbf16>
    %cst_37 = arith.constant dense<0.000000e+00> : vector<4x96xf32>
    %126 = tpu.matmul %125, %3, %cst_37 {dimension_numbers = #tpu.dot_dimension_numbers<[1], [0], [0], [1], [0, 0, 1, 1], [], []>} : vector<4x32xbf16>, vector<32x96xbf16>, vector<4x96xf32> -> vector<4x96xf32>
    %127 = vector.broadcast %4 : vector<1x96xf32> to vector<4x96xf32>
    %128 = arith.addf %126, %127 : vector<4x96xf32>
    %129 = vector.extract_strided_slice %124 {offsets = [0, 0], sizes = [4, 32], strides = [1, 1]} : vector<4x96xf32> to vector<4x32xf32>
    %130 = vector.extract_strided_slice %128 {offsets = [0, 0], sizes = [4, 32], strides = [1, 1]} : vector<4x96xf32> to vector<4x32xf32>
    %131 = arith.addf %129, %130 : vector<4x32xf32>
    %132 = arith.negf %131 : vector<4x32xf32>
    %133 = math.exp %132 : vector<4x32xf32>
    %cst_38 = arith.constant 1.000000e+00 : f32
    %134 = vector.broadcast %cst_38 : f32 to vector<4x32xf32>
    %135 = arith.addf %134, %133 : vector<4x32xf32>
    %136 = arith.divf %134, %135 : vector<4x32xf32>
    %137 = vector.extract_strided_slice %124 {offsets = [0, 32], sizes = [4, 32], strides = [1, 1]} : vector<4x96xf32> to vector<4x32xf32>
    %138 = vector.extract_strided_slice %128 {offsets = [0, 32], sizes = [4, 32], strides = [1, 1]} : vector<4x96xf32> to vector<4x32xf32>
    %139 = arith.addf %137, %138 : vector<4x32xf32>
    %140 = arith.negf %139 : vector<4x32xf32>
    %141 = math.exp %140 : vector<4x32xf32>
    %cst_39 = arith.constant 1.000000e+00 : f32
    %142 = vector.broadcast %cst_39 : f32 to vector<4x32xf32>
    %143 = arith.addf %142, %141 : vector<4x32xf32>
    %144 = arith.divf %142, %143 : vector<4x32xf32>
    %145 = vector.extract_strided_slice %124 {offsets = [0, 64], sizes = [4, 32], strides = [1, 1]} : vector<4x96xf32> to vector<4x32xf32>
    %146 = vector.extract_strided_slice %128 {offsets = [0, 64], sizes = [4, 32], strides = [1, 1]} : vector<4x96xf32> to vector<4x32xf32>
    %147 = arith.mulf %136, %146 : vector<4x32xf32>
    %148 = arith.addf %145, %147 : vector<4x32xf32>
    %149 = math.tanh %148 : vector<4x32xf32>
    %cst_40 = arith.constant 1.000000e+00 : f32
    %150 = vector.broadcast %cst_40 : f32 to vector<4x32xf32>
    %151 = arith.subf %150, %144 : vector<4x32xf32>
    %152 = arith.mulf %151, %149 : vector<4x32xf32>
    %153 = arith.mulf %144, %116 : vector<4x32xf32>
    %154 = arith.addf %152, %153 : vector<4x32xf32>
    %155 = arith.truncf %154 : vector<4x32xf32> to vector<4x32xbf16>
    %c0_41 = arith.constant 0 : index
    %c3_42 = arith.constant 3 : index
    %c0_43 = arith.constant 0 : index
    %156 = vector.load %arg7[%c0_41, %c3_42, %c0_43] : memref<4x8x32xbf16, #tpu.memory_space<vmem>>, vector<4x1x32xbf16>
    %157 = vector.shape_cast %156 : vector<4x1x32xbf16> to vector<4x32xbf16>
    %158 = vector.shape_cast %155 : vector<4x32xbf16> to vector<4x1x32xbf16>
    tpu.vector_store %arg7[%c0_41, %c3_42, %c0_43], %158 {strides = array<i32>} : memref<4x8x32xbf16, #tpu.memory_space<vmem>>, vector<4x1x32xbf16>,
    %c0_44 = arith.constant 0 : index
    %c4 = arith.constant 4 : index
    %c0_45 = arith.constant 0 : index
    %159 = vector.load %arg2[%c0_44, %c4, %c0_45] : memref<4x8x96xbf16, #tpu.memory_space<vmem>>, vector<4x1x96xbf16>
    %160 = vector.shape_cast %159 : vector<4x1x96xbf16> to vector<4x96xbf16>
    %161 = arith.extf %160 : vector<4x96xbf16> to vector<4x96xf32>
    %162 = arith.addf %161, %5 : vector<4x96xf32>
    %163 = arith.truncf %154 : vector<4x32xf32> to vector<4x32xbf16>
    %cst_46 = arith.constant dense<0.000000e+00> : vector<4x96xf32>
    %164 = tpu.matmul %163, %3, %cst_46 {dimension_numbers = #tpu.dot_dimension_numbers<[1], [0], [0], [1], [0, 0, 1, 1], [], []>} : vector<4x32xbf16>, vector<32x96xbf16>, vector<4x96xf32> -> vector<4x96xf32>
    %165 = vector.broadcast %4 : vector<1x96xf32> to vector<4x96xf32>
    %166 = arith.addf %164, %165 : vector<4x96xf32>
    %167 = vector.extract_strided_slice %162 {offsets = [0, 0], sizes = [4, 32], strides = [1, 1]} : vector<4x96xf32> to vector<4x32xf32>
    %168 = vector.extract_strided_slice %166 {offsets = [0, 0], sizes = [4, 32], strides = [1, 1]} : vector<4x96xf32> to vector<4x32xf32>
    %169 = arith.addf %167, %168 : vector<4x32xf32>
    %170 = arith.negf %169 : vector<4x32xf32>
    %171 = math.exp %170 : vector<4x32xf32>
    %cst_47 = arith.constant 1.000000e+00 : f32
    %172 = vector.broadcast %cst_47 : f32 to vector<4x32xf32>
    %173 = arith.addf %172, %171 : vector<4x32xf32>
    %174 = arith.divf %172, %173 : vector<4x32xf32>
    %175 = vector.extract_strided_slice %162 {offsets = [0, 32], sizes = [4, 32], strides = [1, 1]} : vector<4x96xf32> to vector<4x32xf32>
    %176 = vector.extract_strided_slice %166 {offsets = [0, 32], sizes = [4, 32], strides = [1, 1]} : vector<4x96xf32> to vector<4x32xf32>
    %177 = arith.addf %175, %176 : vector<4x32xf32>
    %178 = arith.negf %177 : vector<4x32xf32>
    %179 = math.exp %178 : vector<4x32xf32>
    %cst_48 = arith.constant 1.000000e+00 : f32
    %180 = vector.broadcast %cst_48 : f32 to vector<4x32xf32>
    %181 = arith.addf %180, %179 : vector<4x32xf32>
    %182 = arith.divf %180, %181 : vector<4x32xf32>
    %183 = vector.extract_strided_slice %162 {offsets = [0, 64], sizes = [4, 32], strides = [1, 1]} : vector<4x96xf32> to vector<4x32xf32>
    %184 = vector.extract_strided_slice %166 {offsets = [0, 64], sizes = [4, 32], strides = [1, 1]} : vector<4x96xf32> to vector<4x32xf32>
    %185 = arith.mulf %174, %184 : vector<4x32xf32>
    %186 = arith.addf %183, %185 : vector<4x32xf32>
    %187 = math.tanh %186 : vector<4x32xf32>
    %cst_49 = arith.constant 1.000000e+00 : f32
    %188 = vector.broadcast %cst_49 : f32 to vector<4x32xf32>
    %189 = arith.subf %188, %182 : vector<4x32xf32>
    %190 = arith.mulf %189, %187 : vector<4x32xf32>
    %191 = arith.mulf %182, %154 : vector<4x32xf32>
    %192 = arith.addf %190, %191 : vector<4x32xf32>
    %193 = arith.truncf %192 : vector<4x32xf32> to vector<4x32xbf16>
    %c0_50 = arith.constant 0 : index
    %c4_51 = arith.constant 4 : index
    %c0_52 = arith.constant 0 : index
    %194 = vector.load %arg7[%c0_50, %c4_51, %c0_52] : memref<4x8x32xbf16, #tpu.memory_space<vmem>>, vector<4x1x32xbf16>
    %195 = vector.shape_cast %194 : vector<4x1x32xbf16> to vector<4x32xbf16>
    %196 = vector.shape_cast %193 : vector<4x32xbf16> to vector<4x1x32xbf16>
    tpu.vector_store %arg7[%c0_50, %c4_51, %c0_52], %196 {strides = array<i32>} : memref<4x8x32xbf16, #tpu.memory_space<vmem>>, vector<4x1x32xbf16>,
    %c0_53 = arith.constant 0 : index
    %c5 = arith.constant 5 : index
    %c0_54 = arith.constant 0 : index
    %197 = vector.load %arg2[%c0_53, %c5, %c0_54] : memref<4x8x96xbf16, #tpu.memory_space<vmem>>, vector<4x1x96xbf16>
    %198 = vector.shape_cast %197 : vector<4x1x96xbf16> to vector<4x96xbf16>
    %199 = arith.extf %198 : vector<4x96xbf16> to vector<4x96xf32>
    %200 = arith.addf %199, %5 : vector<4x96xf32>
    %201 = arith.truncf %192 : vector<4x32xf32> to vector<4x32xbf16>
    %cst_55 = arith.constant dense<0.000000e+00> : vector<4x96xf32>
    %202 = tpu.matmul %201, %3, %cst_55 {dimension_numbers = #tpu.dot_dimension_numbers<[1], [0], [0], [1], [0, 0, 1, 1], [], []>} : vector<4x32xbf16>, vector<32x96xbf16>, vector<4x96xf32> -> vector<4x96xf32>
    %203 = vector.broadcast %4 : vector<1x96xf32> to vector<4x96xf32>
    %204 = arith.addf %202, %203 : vector<4x96xf32>
    %205 = vector.extract_strided_slice %200 {offsets = [0, 0], sizes = [4, 32], strides = [1, 1]} : vector<4x96xf32> to vector<4x32xf32>
    %206 = vector.extract_strided_slice %204 {offsets = [0, 0], sizes = [4, 32], strides = [1, 1]} : vector<4x96xf32> to vector<4x32xf32>
    %207 = arith.addf %205, %206 : vector<4x32xf32>
    %208 = arith.negf %207 : vector<4x32xf32>
    %209 = math.exp %208 : vector<4x32xf32>
    %cst_56 = arith.constant 1.000000e+00 : f32
    %210 = vector.broadcast %cst_56 : f32 to vector<4x32xf32>
    %211 = arith.addf %210, %209 : vector<4x32xf32>
    %212 = arith.divf %210, %211 : vector<4x32xf32>
    %213 = vector.extract_strided_slice %200 {offsets = [0, 32], sizes = [4, 32], strides = [1, 1]} : vector<4x96xf32> to vector<4x32xf32>
    %214 = vector.extract_strided_slice %204 {offsets = [0, 32], sizes = [4, 32], strides = [1, 1]} : vector<4x96xf32> to vector<4x32xf32>
    %215 = arith.addf %213, %214 : vector<4x32xf32>
    %216 = arith.negf %215 : vector<4x32xf32>
    %217 = math.exp %216 : vector<4x32xf32>
    %cst_57 = arith.constant 1.000000e+00 : f32
    %218 = vector.broadcast %cst_57 : f32 to vector<4x32xf32>
    %219 = arith.addf %218, %217 : vector<4x32xf32>
    %220 = arith.divf %218, %219 : vector<4x32xf32>
    %221 = vector.extract_strided_slice %200 {offsets = [0, 64], sizes = [4, 32], strides = [1, 1]} : vector<4x96xf32> to vector<4x32xf32>
    %222 = vector.extract_strided_slice %204 {offsets = [0, 64], sizes = [4, 32], strides = [1, 1]} : vector<4x96xf32> to vector<4x32xf32>
    %223 = arith.mulf %212, %222 : vector<4x32xf32>
    %224 = arith.addf %221, %223 : vector<4x32xf32>
    %225 = math.tanh %224 : vector<4x32xf32>
    %cst_58 = arith.constant 1.000000e+00 : f32
    %226 = vector.broadcast %cst_58 : f32 to vector<4x32xf32>
    %227 = arith.subf %226, %220 : vector<4x32xf32>
    %228 = arith.mulf %227, %225 : vector<4x32xf32>
    %229 = arith.mulf %220, %192 : vector<4x32xf32>
    %230 = arith.addf %228, %229 : vector<4x32xf32>
    %231 = arith.truncf %230 : vector<4x32xf32> to vector<4x32xbf16>
    %c0_59 = arith.constant 0 : index
    %c5_60 = arith.constant 5 : index
    %c0_61 = arith.constant 0 : index
    %232 = vector.load %arg7[%c0_59, %c5_60, %c0_61] : memref<4x8x32xbf16, #tpu.memory_space<vmem>>, vector<4x1x32xbf16>
    %233 = vector.shape_cast %232 : vector<4x1x32xbf16> to vector<4x32xbf16>
    %234 = vector.shape_cast %231 : vector<4x32xbf16> to vector<4x1x32xbf16>
    tpu.vector_store %arg7[%c0_59, %c5_60, %c0_61], %234 {strides = array<i32>} : memref<4x8x32xbf16, #tpu.memory_space<vmem>>, vector<4x1x32xbf16>,
    %c0_62 = arith.constant 0 : index
    %c6 = arith.constant 6 : index
    %c0_63 = arith.constant 0 : index
    %235 = vector.load %arg2[%c0_62, %c6, %c0_63] : memref<4x8x96xbf16, #tpu.memory_space<vmem>>, vector<4x1x96xbf16>
    %236 = vector.shape_cast %235 : vector<4x1x96xbf16> to vector<4x96xbf16>
    %237 = arith.extf %236 : vector<4x96xbf16> to vector<4x96xf32>
    %238 = arith.addf %237, %5 : vector<4x96xf32>
    %239 = arith.truncf %230 : vector<4x32xf32> to vector<4x32xbf16>
    %cst_64 = arith.constant dense<0.000000e+00> : vector<4x96xf32>
    %240 = tpu.matmul %239, %3, %cst_64 {dimension_numbers = #tpu.dot_dimension_numbers<[1], [0], [0], [1], [0, 0, 1, 1], [], []>} : vector<4x32xbf16>, vector<32x96xbf16>, vector<4x96xf32> -> vector<4x96xf32>
    %241 = vector.broadcast %4 : vector<1x96xf32> to vector<4x96xf32>
    %242 = arith.addf %240, %241 : vector<4x96xf32>
    %243 = vector.extract_strided_slice %238 {offsets = [0, 0], sizes = [4, 32], strides = [1, 1]} : vector<4x96xf32> to vector<4x32xf32>
    %244 = vector.extract_strided_slice %242 {offsets = [0, 0], sizes = [4, 32], strides = [1, 1]} : vector<4x96xf32> to vector<4x32xf32>
    %245 = arith.addf %243, %244 : vector<4x32xf32>
    %246 = arith.negf %245 : vector<4x32xf32>
    %247 = math.exp %246 : vector<4x32xf32>
    %cst_65 = arith.constant 1.000000e+00 : f32
    %248 = vector.broadcast %cst_65 : f32 to vector<4x32xf32>
    %249 = arith.addf %248, %247 : vector<4x32xf32>
    %250 = arith.divf %248, %249 : vector<4x32xf32>
    %251 = vector.extract_strided_slice %238 {offsets = [0, 32], sizes = [4, 32], strides = [1, 1]} : vector<4x96xf32> to vector<4x32xf32>
    %252 = vector.extract_strided_slice %242 {offsets = [0, 32], sizes = [4, 32], strides = [1, 1]} : vector<4x96xf32> to vector<4x32xf32>
    %253 = arith.addf %251, %252 : vector<4x32xf32>
    %254 = arith.negf %253 : vector<4x32xf32>
    %255 = math.exp %254 : vector<4x32xf32>
    %cst_66 = arith.constant 1.000000e+00 : f32
    %256 = vector.broadcast %cst_66 : f32 to vector<4x32xf32>
    %257 = arith.addf %256, %255 : vector<4x32xf32>
    %258 = arith.divf %256, %257 : vector<4x32xf32>
    %259 = vector.extract_strided_slice %238 {offsets = [0, 64], sizes = [4, 32], strides = [1, 1]} : vector<4x96xf32> to vector<4x32xf32>
    %260 = vector.extract_strided_slice %242 {offsets = [0, 64], sizes = [4, 32], strides = [1, 1]} : vector<4x96xf32> to vector<4x32xf32>
    %261 = arith.mulf %250, %260 : vector<4x32xf32>
    %262 = arith.addf %259, %261 : vector<4x32xf32>
    %263 = math.tanh %262 : vector<4x32xf32>
    %cst_67 = arith.constant 1.000000e+00 : f32
    %264 = vector.broadcast %cst_67 : f32 to vector<4x32xf32>
    %265 = arith.subf %264, %258 : vector<4x32xf32>
    %266 = arith.mulf %265, %263 : vector<4x32xf32>
    %267 = arith.mulf %258, %230 : vector<4x32xf32>
    %268 = arith.addf %266, %267 : vector<4x32xf32>
    %269 = arith.truncf %268 : vector<4x32xf32> to vector<4x32xbf16>
    %c0_68 = arith.constant 0 : index
    %c6_69 = arith.constant 6 : index
    %c0_70 = arith.constant 0 : index
    %270 = vector.load %arg7[%c0_68, %c6_69, %c0_70] : memref<4x8x32xbf16, #tpu.memory_space<vmem>>, vector<4x1x32xbf16>
    %271 = vector.shape_cast %270 : vector<4x1x32xbf16> to vector<4x32xbf16>
    %272 = vector.shape_cast %269 : vector<4x32xbf16> to vector<4x1x32xbf16>
    tpu.vector_store %arg7[%c0_68, %c6_69, %c0_70], %272 {strides = array<i32>} : memref<4x8x32xbf16, #tpu.memory_space<vmem>>, vector<4x1x32xbf16>,
    %c0_71 = arith.constant 0 : index
    %c7 = arith.constant 7 : index
    %c0_72 = arith.constant 0 : index
    %273 = vector.load %arg2[%c0_71, %c7, %c0_72] : memref<4x8x96xbf16, #tpu.memory_space<vmem>>, vector<4x1x96xbf16>
    %274 = vector.shape_cast %273 : vector<4x1x96xbf16> to vector<4x96xbf16>
    %275 = arith.extf %274 : vector<4x96xbf16> to vector<4x96xf32>
    %276 = arith.addf %275, %5 : vector<4x96xf32>
    %277 = arith.truncf %268 : vector<4x32xf32> to vector<4x32xbf16>
    %cst_73 = arith.constant dense<0.000000e+00> : vector<4x96xf32>
    %278 = tpu.matmul %277, %3, %cst_73 {dimension_numbers = #tpu.dot_dimension_numbers<[1], [0], [0], [1], [0, 0, 1, 1], [], []>} : vector<4x32xbf16>, vector<32x96xbf16>, vector<4x96xf32> -> vector<4x96xf32>
    %279 = vector.broadcast %4 : vector<1x96xf32> to vector<4x96xf32>
    %280 = arith.addf %278, %279 : vector<4x96xf32>
    %281 = vector.extract_strided_slice %276 {offsets = [0, 0], sizes = [4, 32], strides = [1, 1]} : vector<4x96xf32> to vector<4x32xf32>
    %282 = vector.extract_strided_slice %280 {offsets = [0, 0], sizes = [4, 32], strides = [1, 1]} : vector<4x96xf32> to vector<4x32xf32>
    %283 = arith.addf %281, %282 : vector<4x32xf32>
    %284 = arith.negf %283 : vector<4x32xf32>
    %285 = math.exp %284 : vector<4x32xf32>
    %cst_74 = arith.constant 1.000000e+00 : f32
    %286 = vector.broadcast %cst_74 : f32 to vector<4x32xf32>
    %287 = arith.addf %286, %285 : vector<4x32xf32>
    %288 = arith.divf %286, %287 : vector<4x32xf32>
    %289 = vector.extract_strided_slice %276 {offsets = [0, 32], sizes = [4, 32], strides = [1, 1]} : vector<4x96xf32> to vector<4x32xf32>
    %290 = vector.extract_strided_slice %280 {offsets = [0, 32], sizes = [4, 32], strides = [1, 1]} : vector<4x96xf32> to vector<4x32xf32>
    %291 = arith.addf %289, %290 : vector<4x32xf32>
    %292 = arith.negf %291 : vector<4x32xf32>
    %293 = math.exp %292 : vector<4x32xf32>
    %cst_75 = arith.constant 1.000000e+00 : f32
    %294 = vector.broadcast %cst_75 : f32 to vector<4x32xf32>
    %295 = arith.addf %294, %293 : vector<4x32xf32>
    %296 = arith.divf %294, %295 : vector<4x32xf32>
    %297 = vector.extract_strided_slice %276 {offsets = [0, 64], sizes = [4, 32], strides = [1, 1]} : vector<4x96xf32> to vector<4x32xf32>
    %298 = vector.extract_strided_slice %280 {offsets = [0, 64], sizes = [4, 32], strides = [1, 1]} : vector<4x96xf32> to vector<4x32xf32>
    %299 = arith.mulf %288, %298 : vector<4x32xf32>
    %300 = arith.addf %297, %299 : vector<4x32xf32>
    %301 = math.tanh %300 : vector<4x32xf32>
    %cst_76 = arith.constant 1.000000e+00 : f32
    %302 = vector.broadcast %cst_76 : f32 to vector<4x32xf32>
    %303 = arith.subf %302, %296 : vector<4x32xf32>
    %304 = arith.mulf %303, %301 : vector<4x32xf32>
    %305 = arith.mulf %296, %268 : vector<4x32xf32>
    %306 = arith.addf %304, %305 : vector<4x32xf32>
    %307 = arith.truncf %306 : vector<4x32xf32> to vector<4x32xbf16>
    %c0_77 = arith.constant 0 : index
    %c7_78 = arith.constant 7 : index
    %c0_79 = arith.constant 0 : index
    %308 = vector.load %arg7[%c0_77, %c7_78, %c0_79] : memref<4x8x32xbf16, #tpu.memory_space<vmem>>, vector<4x1x32xbf16>
    %309 = vector.shape_cast %308 : vector<4x1x32xbf16> to vector<4x32xbf16>
    %310 = vector.shape_cast %307 : vector<4x32xbf16> to vector<4x1x32xbf16>
    tpu.vector_store %arg7[%c0_77, %c7_78, %c0_79], %310 {strides = array<i32>} : memref<4x8x32xbf16, #tpu.memory_space<vmem>>, vector<4x1x32xbf16>,
    %c0_80 = arith.constant 0 : index
    %c0_81 = arith.constant 0 : index
    %311 = vector.load %arg9[%c0_80, %c0_81] : memref<4x32xf32, #tpu.memory_space<vmem>>, vector<4x32xf32>
    tpu.vector_store %arg9[%c0_80, %c0_81], %306 {strides = array<i32>} : memref<4x32xf32, #tpu.memory_space<vmem>>, vector<4x32xf32>,
    %c0_82 = arith.constant 0 : index
    %c0_83 = arith.constant 0 : index
    %312 = vector.load %arg8[%c0_82, %c0_83] : memref<4x32xf32, #tpu.memory_space<vmem>>, vector<4x32xf32>
    tpu.vector_store %arg8[%c0_82, %c0_83], %306 {strides = array<i32>} : memref<4x32xf32, #tpu.memory_space<vmem>>, vector<4x32xf32>,
    return
  }
  func.func @transform_0(%arg0: i32, %arg1: i32) -> (i32, i32, i32) {
    %c0_i32 = arith.constant 0 : i32
    %c0_i32_0 = arith.constant 0 : i32
    return %arg0, %arg1, %c0_i32 : i32, i32, i32
  }
  func.func @transform_1(%arg0: i32, %arg1: i32) -> (i32, i32) {
    %c0_i32 = arith.constant 0 : i32
    %c0_i32_0 = arith.constant 0 : i32
    return %arg0, %c0_i32 : i32, i32
  }
  func.func @transform_2(%arg0: i32, %arg1: i32) -> (i32, i32) {
    %c0_i32 = arith.constant 0 : i32
    %c0_i32_0 = arith.constant 0 : i32
    %c0_i32_1 = arith.constant 0 : i32
    return %c0_i32, %c0_i32_0 : i32, i32
  }
  func.func @transform_3(%arg0: i32, %arg1: i32) -> (i32, i32) {
    %c0_i32 = arith.constant 0 : i32
    %c0_i32_0 = arith.constant 0 : i32
    %c0_i32_1 = arith.constant 0 : i32
    return %c0_i32, %c0_i32_0 : i32, i32
  }
  func.func @transform_4(%arg0: i32, %arg1: i32) -> (i32, i32) {
    %c0_i32 = arith.constant 0 : i32
    %c0_i32_0 = arith.constant 0 : i32
    return %arg0, %c0_i32 : i32, i32
  }
  func.func @transform_5(%arg0: i32, %arg1: i32) -> (i32, i32, i32) {
    %c0_i32 = arith.constant 0 : i32
    %c0_i32_0 = arith.constant 0 : i32
    return %arg0, %arg1, %c0_i32 : i32, i32, i32
  }
  func.func @transform_6(%arg0: i32, %arg1: i32) -> (i32, i32) {
    %c0_i32 = arith.constant 0 : i32
    %c0_i32_0 = arith.constant 0 : i32
    return %arg0, %c0_i32 : i32, i32
  }
}

module attributes {stable_mosaic.version = 11 : i64} {
  func.func @_matmul_bias_kernel(%arg0: i32, %arg1: i32, %arg2: i32, %arg3: memref<8x128xf32, #tpu.memory_space<vmem>>, %arg4: memref<128x128xbf16, #tpu.memory_space<vmem>>, %arg5: memref<1x128xf32, #tpu.memory_space<vmem>>, %arg6: memref<8x128xf32, #tpu.memory_space<vmem>>, %arg7: memref<8x128xf32, #tpu.memory_space<vmem>>) attributes {dimension_semantics = [#tpu.dimension_semantics<parallel>, #tpu.dimension_semantics<parallel>, #tpu.dimension_semantics<arbitrary>], iteration_bounds = array<i64: 1, 1, 1>, scalar_prefetch = 0 : i64, scratch_operands = 1 : i64, tpu.core_type = #tpu.core_type<tc>, window_params = [{transform_indices = @transform_0, window_bounds = array<i64: 8, 128>}, {transform_indices = @transform_1, window_bounds = array<i64: 128, 128>}, {transform_indices = @transform_2, window_bounds = array<i64: 1, 128>}, {transform_indices = @transform_3, window_bounds = array<i64: 8, 128>}]} {
    %c0_i32 = arith.constant 0 : i32
    %0 = arith.cmpi eq, %arg2, %c0_i32 : i32
    %1 = arith.extui %0 : i1 to i32
    %c0_i32_0 = arith.constant 0 : i32
    %2 = arith.cmpi ne, %1, %c0_i32_0 : i32
    scf.if %2 {
      %cst_10 = arith.constant 0.000000e+00 : f32
      %13 = vector.broadcast %cst_10 : f32 to vector<8x128xf32>
      %c0_11 = arith.constant 0 : index
      %c0_12 = arith.constant 0 : index
      %14 = vector.load %arg7[%c0_11, %c0_12] : memref<8x128xf32, #tpu.memory_space<vmem>>, vector<8x128xf32>
      tpu.vector_store %arg7[%c0_11, %c0_12], %13 {strides = array<i32>} : memref<8x128xf32, #tpu.memory_space<vmem>>, vector<8x128xf32>,
    } else {
    }
    %c0 = arith.constant 0 : index
    %c0_1 = arith.constant 0 : index
    %3 = vector.load %arg7[%c0, %c0_1] : memref<8x128xf32, #tpu.memory_space<vmem>>, vector<8x128xf32>
    %c0_2 = arith.constant 0 : index
    %c0_3 = arith.constant 0 : index
    %4 = vector.load %arg3[%c0_2, %c0_3] : memref<8x128xf32, #tpu.memory_space<vmem>>, vector<8x128xf32>
    %5 = arith.truncf %4 : vector<8x128xf32> to vector<8x128xbf16>
    %c0_4 = arith.constant 0 : index
    %c0_5 = arith.constant 0 : index
    %6 = vector.load %arg4[%c0_4, %c0_5] : memref<128x128xbf16, #tpu.memory_space<vmem>>, vector<128x128xbf16>
    %cst = arith.constant dense<0.000000e+00> : vector<8x128xf32>
    %7 = tpu.matmul %5, %6, %cst {dimension_numbers = #tpu.dot_dimension_numbers<[1], [0], [0], [1], [0, 0, 1, 1], [], []>} : vector<8x128xbf16>, vector<128x128xbf16>, vector<8x128xf32> -> vector<8x128xf32>
    %8 = arith.addf %3, %7 : vector<8x128xf32>
    %c0_6 = arith.constant 0 : index
    %c0_7 = arith.constant 0 : index
    %9 = vector.load %arg7[%c0_6, %c0_7] : memref<8x128xf32, #tpu.memory_space<vmem>>, vector<8x128xf32>
    tpu.vector_store %arg7[%c0_6, %c0_7], %8 {strides = array<i32>} : memref<8x128xf32, #tpu.memory_space<vmem>>, vector<8x128xf32>,
    %c0_i32_8 = arith.constant 0 : i32
    %10 = arith.cmpi eq, %arg2, %c0_i32_8 : i32
    %11 = arith.extui %10 : i1 to i32
    %c0_i32_9 = arith.constant 0 : i32
    %12 = arith.cmpi ne, %11, %c0_i32_9 : i32
    scf.if %12 {
      %c0_10 = arith.constant 0 : index
      %c0_11 = arith.constant 0 : index
      %13 = vector.load %arg7[%c0_10, %c0_11] : memref<8x128xf32, #tpu.memory_space<vmem>>, vector<8x128xf32>
      %c0_12 = arith.constant 0 : index
      %c0_13 = arith.constant 0 : index
      %14 = vector.load %arg5[%c0_12, %c0_13] : memref<1x128xf32, #tpu.memory_space<vmem>>, vector<1x128xf32>
      %15 = vector.broadcast %14 : vector<1x128xf32> to vector<8x128xf32>
      %16 = arith.addf %13, %15 : vector<8x128xf32>
      %c0_14 = arith.constant 0 : index
      %c0_15 = arith.constant 0 : index
      %17 = vector.load %arg6[%c0_14, %c0_15] : memref<8x128xf32, #tpu.memory_space<vmem>>, vector<8x128xf32>
      tpu.vector_store %arg6[%c0_14, %c0_15], %16 {strides = array<i32>} : memref<8x128xf32, #tpu.memory_space<vmem>>, vector<8x128xf32>,
    } else {
    }
    return
  }
  func.func @transform_0(%arg0: i32, %arg1: i32, %arg2: i32) -> (i32, i32) {
    %c0_i32 = arith.constant 0 : i32
    return %arg0, %arg2 : i32, i32
  }
  func.func @transform_1(%arg0: i32, %arg1: i32, %arg2: i32) -> (i32, i32) {
    %c0_i32 = arith.constant 0 : i32
    return %arg2, %arg1 : i32, i32
  }
  func.func @transform_2(%arg0: i32, %arg1: i32, %arg2: i32) -> (i32, i32) {
    %c0_i32 = arith.constant 0 : i32
    %c0_i32_0 = arith.constant 0 : i32
    return %c0_i32, %arg1 : i32, i32
  }
  func.func @transform_3(%arg0: i32, %arg1: i32, %arg2: i32) -> (i32, i32) {
    %c0_i32 = arith.constant 0 : i32
    return %arg0, %arg1 : i32, i32
  }
}

module attributes {stable_mosaic.version = 11 : i64} {
  func.func @_matmul_bias_kernel(%arg0: i32, %arg1: i32, %arg2: i32, %arg3: memref<32x128xbf16, #tpu.memory_space<vmem>>, %arg4: memref<128x128xbf16, #tpu.memory_space<vmem>>, %arg5: memref<1x128xf32, #tpu.memory_space<vmem>>, %arg6: memref<32x128xbf16, #tpu.memory_space<vmem>>, %arg7: memref<32x128xf32, #tpu.memory_space<vmem>>) attributes {dimension_semantics = [#tpu.dimension_semantics<parallel>, #tpu.dimension_semantics<parallel>, #tpu.dimension_semantics<arbitrary>], iteration_bounds = array<i64: 1, 1, 1>, scalar_prefetch = 0 : i64, scratch_operands = 1 : i64, tpu.core_type = #tpu.core_type<tc>, window_params = [{transform_indices = @transform_0, window_bounds = array<i64: 32, 128>}, {transform_indices = @transform_1, window_bounds = array<i64: 128, 128>}, {transform_indices = @transform_2, window_bounds = array<i64: 1, 128>}, {transform_indices = @transform_3, window_bounds = array<i64: 32, 128>}]} {
    %c0_i32 = arith.constant 0 : i32
    %0 = arith.cmpi eq, %arg2, %c0_i32 : i32
    %1 = arith.extui %0 : i1 to i32
    %c0_i32_0 = arith.constant 0 : i32
    %2 = arith.cmpi ne, %1, %c0_i32_0 : i32
    scf.if %2 {
      %cst_10 = arith.constant 0.000000e+00 : f32
      %12 = vector.broadcast %cst_10 : f32 to vector<32x128xf32>
      %c0_11 = arith.constant 0 : index
      %c0_12 = arith.constant 0 : index
      %13 = vector.load %arg7[%c0_11, %c0_12] : memref<32x128xf32, #tpu.memory_space<vmem>>, vector<32x128xf32>
      tpu.vector_store %arg7[%c0_11, %c0_12], %12 {strides = array<i32>} : memref<32x128xf32, #tpu.memory_space<vmem>>, vector<32x128xf32>,
    } else {
    }
    %c0 = arith.constant 0 : index
    %c0_1 = arith.constant 0 : index
    %3 = vector.load %arg7[%c0, %c0_1] : memref<32x128xf32, #tpu.memory_space<vmem>>, vector<32x128xf32>
    %c0_2 = arith.constant 0 : index
    %c0_3 = arith.constant 0 : index
    %4 = vector.load %arg3[%c0_2, %c0_3] : memref<32x128xbf16, #tpu.memory_space<vmem>>, vector<32x128xbf16>
    %c0_4 = arith.constant 0 : index
    %c0_5 = arith.constant 0 : index
    %5 = vector.load %arg4[%c0_4, %c0_5] : memref<128x128xbf16, #tpu.memory_space<vmem>>, vector<128x128xbf16>
    %cst = arith.constant dense<0.000000e+00> : vector<32x128xf32>
    %6 = tpu.matmul %4, %5, %cst {dimension_numbers = #tpu.dot_dimension_numbers<[1], [0], [0], [1], [0, 0, 1, 1], [], []>} : vector<32x128xbf16>, vector<128x128xbf16>, vector<32x128xf32> -> vector<32x128xf32>
    %7 = arith.addf %3, %6 : vector<32x128xf32>
    %c0_6 = arith.constant 0 : index
    %c0_7 = arith.constant 0 : index
    %8 = vector.load %arg7[%c0_6, %c0_7] : memref<32x128xf32, #tpu.memory_space<vmem>>, vector<32x128xf32>
    tpu.vector_store %arg7[%c0_6, %c0_7], %7 {strides = array<i32>} : memref<32x128xf32, #tpu.memory_space<vmem>>, vector<32x128xf32>,
    %c0_i32_8 = arith.constant 0 : i32
    %9 = arith.cmpi eq, %arg2, %c0_i32_8 : i32
    %10 = arith.extui %9 : i1 to i32
    %c0_i32_9 = arith.constant 0 : i32
    %11 = arith.cmpi ne, %10, %c0_i32_9 : i32
    scf.if %11 {
      %c0_10 = arith.constant 0 : index
      %c0_11 = arith.constant 0 : index
      %12 = vector.load %arg7[%c0_10, %c0_11] : memref<32x128xf32, #tpu.memory_space<vmem>>, vector<32x128xf32>
      %c0_12 = arith.constant 0 : index
      %c0_13 = arith.constant 0 : index
      %13 = vector.load %arg5[%c0_12, %c0_13] : memref<1x128xf32, #tpu.memory_space<vmem>>, vector<1x128xf32>
      %14 = vector.broadcast %13 : vector<1x128xf32> to vector<32x128xf32>
      %15 = arith.addf %12, %14 : vector<32x128xf32>
      %16 = arith.truncf %15 : vector<32x128xf32> to vector<32x128xbf16>
      %c0_14 = arith.constant 0 : index
      %c0_15 = arith.constant 0 : index
      %17 = vector.load %arg6[%c0_14, %c0_15] : memref<32x128xbf16, #tpu.memory_space<vmem>>, vector<32x128xbf16>
      tpu.vector_store %arg6[%c0_14, %c0_15], %16 {strides = array<i32>} : memref<32x128xbf16, #tpu.memory_space<vmem>>, vector<32x128xbf16>,
    } else {
    }
    return
  }
  func.func @transform_0(%arg0: i32, %arg1: i32, %arg2: i32) -> (i32, i32) {
    %c0_i32 = arith.constant 0 : i32
    return %arg0, %arg2 : i32, i32
  }
  func.func @transform_1(%arg0: i32, %arg1: i32, %arg2: i32) -> (i32, i32) {
    %c0_i32 = arith.constant 0 : i32
    return %arg2, %arg1 : i32, i32
  }
  func.func @transform_2(%arg0: i32, %arg1: i32, %arg2: i32) -> (i32, i32) {
    %c0_i32 = arith.constant 0 : i32
    %c0_i32_0 = arith.constant 0 : i32
    return %c0_i32, %arg1 : i32, i32
  }
  func.func @transform_3(%arg0: i32, %arg1: i32, %arg2: i32) -> (i32, i32) {
    %c0_i32 = arith.constant 0 : i32
    return %arg0, %arg1 : i32, i32
  }
}

module attributes {stable_mosaic.version = 11 : i64} {
  func.func @kernel(%arg0: i32, %arg1: i32, %arg2: memref<4x8x96xbf16, #tpu.memory_space<vmem>>, %arg3: memref<4x32xf32, #tpu.memory_space<vmem>>, %arg4: memref<32x96xbf16, #tpu.memory_space<vmem>>, %arg5: memref<1x96xf32, #tpu.memory_space<vmem>>, %arg6: memref<4x8x32xbf16, #tpu.memory_space<vmem>>, %arg7: memref<4x32xf32, #tpu.memory_space<vmem>>, %arg8: memref<4x32xf32, #tpu.memory_space<vmem>>) attributes {dimension_semantics = [#tpu.dimension_semantics<parallel>, #tpu.dimension_semantics<arbitrary>], iteration_bounds = array<i64: 1, 1>, scalar_prefetch = 0 : i64, scratch_operands = 1 : i64, tpu.core_type = #tpu.core_type<tc>, window_params = [{transform_indices = @transform_0, window_bounds = array<i64: 4, 8, 96>}, {transform_indices = @transform_1, window_bounds = array<i64: 4, 32>}, {pipeline_mode = #tpu.pipeline_mode<synchronous>, transform_indices = @transform_2, window_bounds = array<i64: 32, 96>}, {pipeline_mode = #tpu.pipeline_mode<synchronous>, transform_indices = @transform_3, window_bounds = array<i64: 1, 96>}, {transform_indices = @transform_4, window_bounds = array<i64: 4, 8, 32>}, {transform_indices = @transform_5, window_bounds = array<i64: 4, 32>}]} {
    %c0_i32 = arith.constant 0 : i32
    %0 = arith.cmpi eq, %arg1, %c0_i32 : i32
    %1 = arith.extui %0 : i1 to i32
    %c0_i32_0 = arith.constant 0 : i32
    %2 = arith.cmpi ne, %1, %c0_i32_0 : i32
    scf.if %2 {
      %c0_82 = arith.constant 0 : index
      %c0_83 = arith.constant 0 : index
      %304 = vector.load %arg3[%c0_82, %c0_83] : memref<4x32xf32, #tpu.memory_space<vmem>>, vector<4x32xf32>
      %c0_84 = arith.constant 0 : index
      %c0_85 = arith.constant 0 : index
      %305 = vector.load %arg8[%c0_84, %c0_85] : memref<4x32xf32, #tpu.memory_space<vmem>>, vector<4x32xf32>
      tpu.vector_store %arg8[%c0_84, %c0_85], %304 {strides = array<i32>} : memref<4x32xf32, #tpu.memory_space<vmem>>, vector<4x32xf32>,
    } else {
    }
    %c0 = arith.constant 0 : index
    %c0_1 = arith.constant 0 : index
    %3 = vector.load %arg4[%c0, %c0_1] : memref<32x96xbf16, #tpu.memory_space<vmem>>, vector<32x96xbf16>
    %c0_2 = arith.constant 0 : index
    %c0_3 = arith.constant 0 : index
    %4 = vector.load %arg5[%c0_2, %c0_3] : memref<1x96xf32, #tpu.memory_space<vmem>>, vector<1x96xf32>
    %c0_4 = arith.constant 0 : index
    %c0_5 = arith.constant 0 : index
    %5 = vector.load %arg8[%c0_4, %c0_5] : memref<4x32xf32, #tpu.memory_space<vmem>>, vector<4x32xf32>
    %c0_6 = arith.constant 0 : index
    %c0_7 = arith.constant 0 : index
    %c0_8 = arith.constant 0 : index
    %6 = vector.load %arg2[%c0_6, %c0_7, %c0_8] : memref<4x8x96xbf16, #tpu.memory_space<vmem>>, vector<4x1x96xbf16>
    %7 = vector.shape_cast %6 : vector<4x1x96xbf16> to vector<4x96xbf16>
    %8 = arith.extf %7 : vector<4x96xbf16> to vector<4x96xf32>
    %9 = arith.truncf %5 : vector<4x32xf32> to vector<4x32xbf16>
    %cst = arith.constant dense<0.000000e+00> : vector<4x96xf32>
    %10 = tpu.matmul %9, %3, %cst {dimension_numbers = #tpu.dot_dimension_numbers<[1], [0], [0], [1], [0, 0, 1, 1], [], []>} : vector<4x32xbf16>, vector<32x96xbf16>, vector<4x96xf32> -> vector<4x96xf32>
    %11 = vector.broadcast %4 : vector<1x96xf32> to vector<4x96xf32>
    %12 = arith.addf %10, %11 : vector<4x96xf32>
    %13 = vector.extract_strided_slice %8 {offsets = [0, 0], sizes = [4, 32], strides = [1, 1]} : vector<4x96xf32> to vector<4x32xf32>
    %14 = vector.extract_strided_slice %12 {offsets = [0, 0], sizes = [4, 32], strides = [1, 1]} : vector<4x96xf32> to vector<4x32xf32>
    %15 = arith.addf %13, %14 : vector<4x32xf32>
    %16 = arith.negf %15 : vector<4x32xf32>
    %17 = math.exp %16 : vector<4x32xf32>
    %cst_9 = arith.constant 1.000000e+00 : f32
    %18 = vector.broadcast %cst_9 : f32 to vector<4x32xf32>
    %19 = arith.addf %18, %17 : vector<4x32xf32>
    %20 = arith.divf %18, %19 : vector<4x32xf32>
    %21 = vector.extract_strided_slice %8 {offsets = [0, 32], sizes = [4, 32], strides = [1, 1]} : vector<4x96xf32> to vector<4x32xf32>
    %22 = vector.extract_strided_slice %12 {offsets = [0, 32], sizes = [4, 32], strides = [1, 1]} : vector<4x96xf32> to vector<4x32xf32>
    %23 = arith.addf %21, %22 : vector<4x32xf32>
    %24 = arith.negf %23 : vector<4x32xf32>
    %25 = math.exp %24 : vector<4x32xf32>
    %cst_10 = arith.constant 1.000000e+00 : f32
    %26 = vector.broadcast %cst_10 : f32 to vector<4x32xf32>
    %27 = arith.addf %26, %25 : vector<4x32xf32>
    %28 = arith.divf %26, %27 : vector<4x32xf32>
    %29 = vector.extract_strided_slice %8 {offsets = [0, 64], sizes = [4, 32], strides = [1, 1]} : vector<4x96xf32> to vector<4x32xf32>
    %30 = vector.extract_strided_slice %12 {offsets = [0, 64], sizes = [4, 32], strides = [1, 1]} : vector<4x96xf32> to vector<4x32xf32>
    %31 = arith.mulf %20, %30 : vector<4x32xf32>
    %32 = arith.addf %29, %31 : vector<4x32xf32>
    %33 = math.tanh %32 : vector<4x32xf32>
    %cst_11 = arith.constant 1.000000e+00 : f32
    %34 = vector.broadcast %cst_11 : f32 to vector<4x32xf32>
    %35 = arith.subf %34, %28 : vector<4x32xf32>
    %36 = arith.mulf %35, %33 : vector<4x32xf32>
    %37 = arith.mulf %28, %5 : vector<4x32xf32>
    %38 = arith.addf %36, %37 : vector<4x32xf32>
    %39 = arith.truncf %38 : vector<4x32xf32> to vector<4x32xbf16>
    %c0_12 = arith.constant 0 : index
    %c0_13 = arith.constant 0 : index
    %c0_14 = arith.constant 0 : index
    %40 = vector.load %arg6[%c0_12, %c0_13, %c0_14] : memref<4x8x32xbf16, #tpu.memory_space<vmem>>, vector<4x1x32xbf16>
    %41 = vector.shape_cast %40 : vector<4x1x32xbf16> to vector<4x32xbf16>
    %42 = vector.shape_cast %39 : vector<4x32xbf16> to vector<4x1x32xbf16>
    tpu.vector_store %arg6[%c0_12, %c0_13, %c0_14], %42 {strides = array<i32>} : memref<4x8x32xbf16, #tpu.memory_space<vmem>>, vector<4x1x32xbf16>,
    %c0_15 = arith.constant 0 : index
    %c1 = arith.constant 1 : index
    %c0_16 = arith.constant 0 : index
    %43 = vector.load %arg2[%c0_15, %c1, %c0_16] : memref<4x8x96xbf16, #tpu.memory_space<vmem>>, vector<4x1x96xbf16>
    %44 = vector.shape_cast %43 : vector<4x1x96xbf16> to vector<4x96xbf16>
    %45 = arith.extf %44 : vector<4x96xbf16> to vector<4x96xf32>
    %46 = arith.truncf %38 : vector<4x32xf32> to vector<4x32xbf16>
    %cst_17 = arith.constant dense<0.000000e+00> : vector<4x96xf32>
    %47 = tpu.matmul %46, %3, %cst_17 {dimension_numbers = #tpu.dot_dimension_numbers<[1], [0], [0], [1], [0, 0, 1, 1], [], []>} : vector<4x32xbf16>, vector<32x96xbf16>, vector<4x96xf32> -> vector<4x96xf32>
    %48 = vector.broadcast %4 : vector<1x96xf32> to vector<4x96xf32>
    %49 = arith.addf %47, %48 : vector<4x96xf32>
    %50 = vector.extract_strided_slice %45 {offsets = [0, 0], sizes = [4, 32], strides = [1, 1]} : vector<4x96xf32> to vector<4x32xf32>
    %51 = vector.extract_strided_slice %49 {offsets = [0, 0], sizes = [4, 32], strides = [1, 1]} : vector<4x96xf32> to vector<4x32xf32>
    %52 = arith.addf %50, %51 : vector<4x32xf32>
    %53 = arith.negf %52 : vector<4x32xf32>
    %54 = math.exp %53 : vector<4x32xf32>
    %cst_18 = arith.constant 1.000000e+00 : f32
    %55 = vector.broadcast %cst_18 : f32 to vector<4x32xf32>
    %56 = arith.addf %55, %54 : vector<4x32xf32>
    %57 = arith.divf %55, %56 : vector<4x32xf32>
    %58 = vector.extract_strided_slice %45 {offsets = [0, 32], sizes = [4, 32], strides = [1, 1]} : vector<4x96xf32> to vector<4x32xf32>
    %59 = vector.extract_strided_slice %49 {offsets = [0, 32], sizes = [4, 32], strides = [1, 1]} : vector<4x96xf32> to vector<4x32xf32>
    %60 = arith.addf %58, %59 : vector<4x32xf32>
    %61 = arith.negf %60 : vector<4x32xf32>
    %62 = math.exp %61 : vector<4x32xf32>
    %cst_19 = arith.constant 1.000000e+00 : f32
    %63 = vector.broadcast %cst_19 : f32 to vector<4x32xf32>
    %64 = arith.addf %63, %62 : vector<4x32xf32>
    %65 = arith.divf %63, %64 : vector<4x32xf32>
    %66 = vector.extract_strided_slice %45 {offsets = [0, 64], sizes = [4, 32], strides = [1, 1]} : vector<4x96xf32> to vector<4x32xf32>
    %67 = vector.extract_strided_slice %49 {offsets = [0, 64], sizes = [4, 32], strides = [1, 1]} : vector<4x96xf32> to vector<4x32xf32>
    %68 = arith.mulf %57, %67 : vector<4x32xf32>
    %69 = arith.addf %66, %68 : vector<4x32xf32>
    %70 = math.tanh %69 : vector<4x32xf32>
    %cst_20 = arith.constant 1.000000e+00 : f32
    %71 = vector.broadcast %cst_20 : f32 to vector<4x32xf32>
    %72 = arith.subf %71, %65 : vector<4x32xf32>
    %73 = arith.mulf %72, %70 : vector<4x32xf32>
    %74 = arith.mulf %65, %38 : vector<4x32xf32>
    %75 = arith.addf %73, %74 : vector<4x32xf32>
    %76 = arith.truncf %75 : vector<4x32xf32> to vector<4x32xbf16>
    %c0_21 = arith.constant 0 : index
    %c1_22 = arith.constant 1 : index
    %c0_23 = arith.constant 0 : index
    %77 = vector.load %arg6[%c0_21, %c1_22, %c0_23] : memref<4x8x32xbf16, #tpu.memory_space<vmem>>, vector<4x1x32xbf16>
    %78 = vector.shape_cast %77 : vector<4x1x32xbf16> to vector<4x32xbf16>
    %79 = vector.shape_cast %76 : vector<4x32xbf16> to vector<4x1x32xbf16>
    tpu.vector_store %arg6[%c0_21, %c1_22, %c0_23], %79 {strides = array<i32>} : memref<4x8x32xbf16, #tpu.memory_space<vmem>>, vector<4x1x32xbf16>,
    %c0_24 = arith.constant 0 : index
    %c2 = arith.constant 2 : index
    %c0_25 = arith.constant 0 : index
    %80 = vector.load %arg2[%c0_24, %c2, %c0_25] : memref<4x8x96xbf16, #tpu.memory_space<vmem>>, vector<4x1x96xbf16>
    %81 = vector.shape_cast %80 : vector<4x1x96xbf16> to vector<4x96xbf16>
    %82 = arith.extf %81 : vector<4x96xbf16> to vector<4x96xf32>
    %83 = arith.truncf %75 : vector<4x32xf32> to vector<4x32xbf16>
    %cst_26 = arith.constant dense<0.000000e+00> : vector<4x96xf32>
    %84 = tpu.matmul %83, %3, %cst_26 {dimension_numbers = #tpu.dot_dimension_numbers<[1], [0], [0], [1], [0, 0, 1, 1], [], []>} : vector<4x32xbf16>, vector<32x96xbf16>, vector<4x96xf32> -> vector<4x96xf32>
    %85 = vector.broadcast %4 : vector<1x96xf32> to vector<4x96xf32>
    %86 = arith.addf %84, %85 : vector<4x96xf32>
    %87 = vector.extract_strided_slice %82 {offsets = [0, 0], sizes = [4, 32], strides = [1, 1]} : vector<4x96xf32> to vector<4x32xf32>
    %88 = vector.extract_strided_slice %86 {offsets = [0, 0], sizes = [4, 32], strides = [1, 1]} : vector<4x96xf32> to vector<4x32xf32>
    %89 = arith.addf %87, %88 : vector<4x32xf32>
    %90 = arith.negf %89 : vector<4x32xf32>
    %91 = math.exp %90 : vector<4x32xf32>
    %cst_27 = arith.constant 1.000000e+00 : f32
    %92 = vector.broadcast %cst_27 : f32 to vector<4x32xf32>
    %93 = arith.addf %92, %91 : vector<4x32xf32>
    %94 = arith.divf %92, %93 : vector<4x32xf32>
    %95 = vector.extract_strided_slice %82 {offsets = [0, 32], sizes = [4, 32], strides = [1, 1]} : vector<4x96xf32> to vector<4x32xf32>
    %96 = vector.extract_strided_slice %86 {offsets = [0, 32], sizes = [4, 32], strides = [1, 1]} : vector<4x96xf32> to vector<4x32xf32>
    %97 = arith.addf %95, %96 : vector<4x32xf32>
    %98 = arith.negf %97 : vector<4x32xf32>
    %99 = math.exp %98 : vector<4x32xf32>
    %cst_28 = arith.constant 1.000000e+00 : f32
    %100 = vector.broadcast %cst_28 : f32 to vector<4x32xf32>
    %101 = arith.addf %100, %99 : vector<4x32xf32>
    %102 = arith.divf %100, %101 : vector<4x32xf32>
    %103 = vector.extract_strided_slice %82 {offsets = [0, 64], sizes = [4, 32], strides = [1, 1]} : vector<4x96xf32> to vector<4x32xf32>
    %104 = vector.extract_strided_slice %86 {offsets = [0, 64], sizes = [4, 32], strides = [1, 1]} : vector<4x96xf32> to vector<4x32xf32>
    %105 = arith.mulf %94, %104 : vector<4x32xf32>
    %106 = arith.addf %103, %105 : vector<4x32xf32>
    %107 = math.tanh %106 : vector<4x32xf32>
    %cst_29 = arith.constant 1.000000e+00 : f32
    %108 = vector.broadcast %cst_29 : f32 to vector<4x32xf32>
    %109 = arith.subf %108, %102 : vector<4x32xf32>
    %110 = arith.mulf %109, %107 : vector<4x32xf32>
    %111 = arith.mulf %102, %75 : vector<4x32xf32>
    %112 = arith.addf %110, %111 : vector<4x32xf32>
    %113 = arith.truncf %112 : vector<4x32xf32> to vector<4x32xbf16>
    %c0_30 = arith.constant 0 : index
    %c2_31 = arith.constant 2 : index
    %c0_32 = arith.constant 0 : index
    %114 = vector.load %arg6[%c0_30, %c2_31, %c0_32] : memref<4x8x32xbf16, #tpu.memory_space<vmem>>, vector<4x1x32xbf16>
    %115 = vector.shape_cast %114 : vector<4x1x32xbf16> to vector<4x32xbf16>
    %116 = vector.shape_cast %113 : vector<4x32xbf16> to vector<4x1x32xbf16>
    tpu.vector_store %arg6[%c0_30, %c2_31, %c0_32], %116 {strides = array<i32>} : memref<4x8x32xbf16, #tpu.memory_space<vmem>>, vector<4x1x32xbf16>,
    %c0_33 = arith.constant 0 : index
    %c3 = arith.constant 3 : index
    %c0_34 = arith.constant 0 : index
    %117 = vector.load %arg2[%c0_33, %c3, %c0_34] : memref<4x8x96xbf16, #tpu.memory_space<vmem>>, vector<4x1x96xbf16>
    %118 = vector.shape_cast %117 : vector<4x1x96xbf16> to vector<4x96xbf16>
    %119 = arith.extf %118 : vector<4x96xbf16> to vector<4x96xf32>
    %120 = arith.truncf %112 : vector<4x32xf32> to vector<4x32xbf16>
    %cst_35 = arith.constant dense<0.000000e+00> : vector<4x96xf32>
    %121 = tpu.matmul %120, %3, %cst_35 {dimension_numbers = #tpu.dot_dimension_numbers<[1], [0], [0], [1], [0, 0, 1, 1], [], []>} : vector<4x32xbf16>, vector<32x96xbf16>, vector<4x96xf32> -> vector<4x96xf32>
    %122 = vector.broadcast %4 : vector<1x96xf32> to vector<4x96xf32>
    %123 = arith.addf %121, %122 : vector<4x96xf32>
    %124 = vector.extract_strided_slice %119 {offsets = [0, 0], sizes = [4, 32], strides = [1, 1]} : vector<4x96xf32> to vector<4x32xf32>
    %125 = vector.extract_strided_slice %123 {offsets = [0, 0], sizes = [4, 32], strides = [1, 1]} : vector<4x96xf32> to vector<4x32xf32>
    %126 = arith.addf %124, %125 : vector<4x32xf32>
    %127 = arith.negf %126 : vector<4x32xf32>
    %128 = math.exp %127 : vector<4x32xf32>
    %cst_36 = arith.constant 1.000000e+00 : f32
    %129 = vector.broadcast %cst_36 : f32 to vector<4x32xf32>
    %130 = arith.addf %129, %128 : vector<4x32xf32>
    %131 = arith.divf %129, %130 : vector<4x32xf32>
    %132 = vector.extract_strided_slice %119 {offsets = [0, 32], sizes = [4, 32], strides = [1, 1]} : vector<4x96xf32> to vector<4x32xf32>
    %133 = vector.extract_strided_slice %123 {offsets = [0, 32], sizes = [4, 32], strides = [1, 1]} : vector<4x96xf32> to vector<4x32xf32>
    %134 = arith.addf %132, %133 : vector<4x32xf32>
    %135 = arith.negf %134 : vector<4x32xf32>
    %136 = math.exp %135 : vector<4x32xf32>
    %cst_37 = arith.constant 1.000000e+00 : f32
    %137 = vector.broadcast %cst_37 : f32 to vector<4x32xf32>
    %138 = arith.addf %137, %136 : vector<4x32xf32>
    %139 = arith.divf %137, %138 : vector<4x32xf32>
    %140 = vector.extract_strided_slice %119 {offsets = [0, 64], sizes = [4, 32], strides = [1, 1]} : vector<4x96xf32> to vector<4x32xf32>
    %141 = vector.extract_strided_slice %123 {offsets = [0, 64], sizes = [4, 32], strides = [1, 1]} : vector<4x96xf32> to vector<4x32xf32>
    %142 = arith.mulf %131, %141 : vector<4x32xf32>
    %143 = arith.addf %140, %142 : vector<4x32xf32>
    %144 = math.tanh %143 : vector<4x32xf32>
    %cst_38 = arith.constant 1.000000e+00 : f32
    %145 = vector.broadcast %cst_38 : f32 to vector<4x32xf32>
    %146 = arith.subf %145, %139 : vector<4x32xf32>
    %147 = arith.mulf %146, %144 : vector<4x32xf32>
    %148 = arith.mulf %139, %112 : vector<4x32xf32>
    %149 = arith.addf %147, %148 : vector<4x32xf32>
    %150 = arith.truncf %149 : vector<4x32xf32> to vector<4x32xbf16>
    %c0_39 = arith.constant 0 : index
    %c3_40 = arith.constant 3 : index
    %c0_41 = arith.constant 0 : index
    %151 = vector.load %arg6[%c0_39, %c3_40, %c0_41] : memref<4x8x32xbf16, #tpu.memory_space<vmem>>, vector<4x1x32xbf16>
    %152 = vector.shape_cast %151 : vector<4x1x32xbf16> to vector<4x32xbf16>
    %153 = vector.shape_cast %150 : vector<4x32xbf16> to vector<4x1x32xbf16>
    tpu.vector_store %arg6[%c0_39, %c3_40, %c0_41], %153 {strides = array<i32>} : memref<4x8x32xbf16, #tpu.memory_space<vmem>>, vector<4x1x32xbf16>,
    %c0_42 = arith.constant 0 : index
    %c4 = arith.constant 4 : index
    %c0_43 = arith.constant 0 : index
    %154 = vector.load %arg2[%c0_42, %c4, %c0_43] : memref<4x8x96xbf16, #tpu.memory_space<vmem>>, vector<4x1x96xbf16>
    %155 = vector.shape_cast %154 : vector<4x1x96xbf16> to vector<4x96xbf16>
    %156 = arith.extf %155 : vector<4x96xbf16> to vector<4x96xf32>
    %157 = arith.truncf %149 : vector<4x32xf32> to vector<4x32xbf16>
    %cst_44 = arith.constant dense<0.000000e+00> : vector<4x96xf32>
    %158 = tpu.matmul %157, %3, %cst_44 {dimension_numbers = #tpu.dot_dimension_numbers<[1], [0], [0], [1], [0, 0, 1, 1], [], []>} : vector<4x32xbf16>, vector<32x96xbf16>, vector<4x96xf32> -> vector<4x96xf32>
    %159 = vector.broadcast %4 : vector<1x96xf32> to vector<4x96xf32>
    %160 = arith.addf %158, %159 : vector<4x96xf32>
    %161 = vector.extract_strided_slice %156 {offsets = [0, 0], sizes = [4, 32], strides = [1, 1]} : vector<4x96xf32> to vector<4x32xf32>
    %162 = vector.extract_strided_slice %160 {offsets = [0, 0], sizes = [4, 32], strides = [1, 1]} : vector<4x96xf32> to vector<4x32xf32>
    %163 = arith.addf %161, %162 : vector<4x32xf32>
    %164 = arith.negf %163 : vector<4x32xf32>
    %165 = math.exp %164 : vector<4x32xf32>
    %cst_45 = arith.constant 1.000000e+00 : f32
    %166 = vector.broadcast %cst_45 : f32 to vector<4x32xf32>
    %167 = arith.addf %166, %165 : vector<4x32xf32>
    %168 = arith.divf %166, %167 : vector<4x32xf32>
    %169 = vector.extract_strided_slice %156 {offsets = [0, 32], sizes = [4, 32], strides = [1, 1]} : vector<4x96xf32> to vector<4x32xf32>
    %170 = vector.extract_strided_slice %160 {offsets = [0, 32], sizes = [4, 32], strides = [1, 1]} : vector<4x96xf32> to vector<4x32xf32>
    %171 = arith.addf %169, %170 : vector<4x32xf32>
    %172 = arith.negf %171 : vector<4x32xf32>
    %173 = math.exp %172 : vector<4x32xf32>
    %cst_46 = arith.constant 1.000000e+00 : f32
    %174 = vector.broadcast %cst_46 : f32 to vector<4x32xf32>
    %175 = arith.addf %174, %173 : vector<4x32xf32>
    %176 = arith.divf %174, %175 : vector<4x32xf32>
    %177 = vector.extract_strided_slice %156 {offsets = [0, 64], sizes = [4, 32], strides = [1, 1]} : vector<4x96xf32> to vector<4x32xf32>
    %178 = vector.extract_strided_slice %160 {offsets = [0, 64], sizes = [4, 32], strides = [1, 1]} : vector<4x96xf32> to vector<4x32xf32>
    %179 = arith.mulf %168, %178 : vector<4x32xf32>
    %180 = arith.addf %177, %179 : vector<4x32xf32>
    %181 = math.tanh %180 : vector<4x32xf32>
    %cst_47 = arith.constant 1.000000e+00 : f32
    %182 = vector.broadcast %cst_47 : f32 to vector<4x32xf32>
    %183 = arith.subf %182, %176 : vector<4x32xf32>
    %184 = arith.mulf %183, %181 : vector<4x32xf32>
    %185 = arith.mulf %176, %149 : vector<4x32xf32>
    %186 = arith.addf %184, %185 : vector<4x32xf32>
    %187 = arith.truncf %186 : vector<4x32xf32> to vector<4x32xbf16>
    %c0_48 = arith.constant 0 : index
    %c4_49 = arith.constant 4 : index
    %c0_50 = arith.constant 0 : index
    %188 = vector.load %arg6[%c0_48, %c4_49, %c0_50] : memref<4x8x32xbf16, #tpu.memory_space<vmem>>, vector<4x1x32xbf16>
    %189 = vector.shape_cast %188 : vector<4x1x32xbf16> to vector<4x32xbf16>
    %190 = vector.shape_cast %187 : vector<4x32xbf16> to vector<4x1x32xbf16>
    tpu.vector_store %arg6[%c0_48, %c4_49, %c0_50], %190 {strides = array<i32>} : memref<4x8x32xbf16, #tpu.memory_space<vmem>>, vector<4x1x32xbf16>,
    %c0_51 = arith.constant 0 : index
    %c5 = arith.constant 5 : index
    %c0_52 = arith.constant 0 : index
    %191 = vector.load %arg2[%c0_51, %c5, %c0_52] : memref<4x8x96xbf16, #tpu.memory_space<vmem>>, vector<4x1x96xbf16>
    %192 = vector.shape_cast %191 : vector<4x1x96xbf16> to vector<4x96xbf16>
    %193 = arith.extf %192 : vector<4x96xbf16> to vector<4x96xf32>
    %194 = arith.truncf %186 : vector<4x32xf32> to vector<4x32xbf16>
    %cst_53 = arith.constant dense<0.000000e+00> : vector<4x96xf32>
    %195 = tpu.matmul %194, %3, %cst_53 {dimension_numbers = #tpu.dot_dimension_numbers<[1], [0], [0], [1], [0, 0, 1, 1], [], []>} : vector<4x32xbf16>, vector<32x96xbf16>, vector<4x96xf32> -> vector<4x96xf32>
    %196 = vector.broadcast %4 : vector<1x96xf32> to vector<4x96xf32>
    %197 = arith.addf %195, %196 : vector<4x96xf32>
    %198 = vector.extract_strided_slice %193 {offsets = [0, 0], sizes = [4, 32], strides = [1, 1]} : vector<4x96xf32> to vector<4x32xf32>
    %199 = vector.extract_strided_slice %197 {offsets = [0, 0], sizes = [4, 32], strides = [1, 1]} : vector<4x96xf32> to vector<4x32xf32>
    %200 = arith.addf %198, %199 : vector<4x32xf32>
    %201 = arith.negf %200 : vector<4x32xf32>
    %202 = math.exp %201 : vector<4x32xf32>
    %cst_54 = arith.constant 1.000000e+00 : f32
    %203 = vector.broadcast %cst_54 : f32 to vector<4x32xf32>
    %204 = arith.addf %203, %202 : vector<4x32xf32>
    %205 = arith.divf %203, %204 : vector<4x32xf32>
    %206 = vector.extract_strided_slice %193 {offsets = [0, 32], sizes = [4, 32], strides = [1, 1]} : vector<4x96xf32> to vector<4x32xf32>
    %207 = vector.extract_strided_slice %197 {offsets = [0, 32], sizes = [4, 32], strides = [1, 1]} : vector<4x96xf32> to vector<4x32xf32>
    %208 = arith.addf %206, %207 : vector<4x32xf32>
    %209 = arith.negf %208 : vector<4x32xf32>
    %210 = math.exp %209 : vector<4x32xf32>
    %cst_55 = arith.constant 1.000000e+00 : f32
    %211 = vector.broadcast %cst_55 : f32 to vector<4x32xf32>
    %212 = arith.addf %211, %210 : vector<4x32xf32>
    %213 = arith.divf %211, %212 : vector<4x32xf32>
    %214 = vector.extract_strided_slice %193 {offsets = [0, 64], sizes = [4, 32], strides = [1, 1]} : vector<4x96xf32> to vector<4x32xf32>
    %215 = vector.extract_strided_slice %197 {offsets = [0, 64], sizes = [4, 32], strides = [1, 1]} : vector<4x96xf32> to vector<4x32xf32>
    %216 = arith.mulf %205, %215 : vector<4x32xf32>
    %217 = arith.addf %214, %216 : vector<4x32xf32>
    %218 = math.tanh %217 : vector<4x32xf32>
    %cst_56 = arith.constant 1.000000e+00 : f32
    %219 = vector.broadcast %cst_56 : f32 to vector<4x32xf32>
    %220 = arith.subf %219, %213 : vector<4x32xf32>
    %221 = arith.mulf %220, %218 : vector<4x32xf32>
    %222 = arith.mulf %213, %186 : vector<4x32xf32>
    %223 = arith.addf %221, %222 : vector<4x32xf32>
    %224 = arith.truncf %223 : vector<4x32xf32> to vector<4x32xbf16>
    %c0_57 = arith.constant 0 : index
    %c5_58 = arith.constant 5 : index
    %c0_59 = arith.constant 0 : index
    %225 = vector.load %arg6[%c0_57, %c5_58, %c0_59] : memref<4x8x32xbf16, #tpu.memory_space<vmem>>, vector<4x1x32xbf16>
    %226 = vector.shape_cast %225 : vector<4x1x32xbf16> to vector<4x32xbf16>
    %227 = vector.shape_cast %224 : vector<4x32xbf16> to vector<4x1x32xbf16>
    tpu.vector_store %arg6[%c0_57, %c5_58, %c0_59], %227 {strides = array<i32>} : memref<4x8x32xbf16, #tpu.memory_space<vmem>>, vector<4x1x32xbf16>,
    %c0_60 = arith.constant 0 : index
    %c6 = arith.constant 6 : index
    %c0_61 = arith.constant 0 : index
    %228 = vector.load %arg2[%c0_60, %c6, %c0_61] : memref<4x8x96xbf16, #tpu.memory_space<vmem>>, vector<4x1x96xbf16>
    %229 = vector.shape_cast %228 : vector<4x1x96xbf16> to vector<4x96xbf16>
    %230 = arith.extf %229 : vector<4x96xbf16> to vector<4x96xf32>
    %231 = arith.truncf %223 : vector<4x32xf32> to vector<4x32xbf16>
    %cst_62 = arith.constant dense<0.000000e+00> : vector<4x96xf32>
    %232 = tpu.matmul %231, %3, %cst_62 {dimension_numbers = #tpu.dot_dimension_numbers<[1], [0], [0], [1], [0, 0, 1, 1], [], []>} : vector<4x32xbf16>, vector<32x96xbf16>, vector<4x96xf32> -> vector<4x96xf32>
    %233 = vector.broadcast %4 : vector<1x96xf32> to vector<4x96xf32>
    %234 = arith.addf %232, %233 : vector<4x96xf32>
    %235 = vector.extract_strided_slice %230 {offsets = [0, 0], sizes = [4, 32], strides = [1, 1]} : vector<4x96xf32> to vector<4x32xf32>
    %236 = vector.extract_strided_slice %234 {offsets = [0, 0], sizes = [4, 32], strides = [1, 1]} : vector<4x96xf32> to vector<4x32xf32>
    %237 = arith.addf %235, %236 : vector<4x32xf32>
    %238 = arith.negf %237 : vector<4x32xf32>
    %239 = math.exp %238 : vector<4x32xf32>
    %cst_63 = arith.constant 1.000000e+00 : f32
    %240 = vector.broadcast %cst_63 : f32 to vector<4x32xf32>
    %241 = arith.addf %240, %239 : vector<4x32xf32>
    %242 = arith.divf %240, %241 : vector<4x32xf32>
    %243 = vector.extract_strided_slice %230 {offsets = [0, 32], sizes = [4, 32], strides = [1, 1]} : vector<4x96xf32> to vector<4x32xf32>
    %244 = vector.extract_strided_slice %234 {offsets = [0, 32], sizes = [4, 32], strides = [1, 1]} : vector<4x96xf32> to vector<4x32xf32>
    %245 = arith.addf %243, %244 : vector<4x32xf32>
    %246 = arith.negf %245 : vector<4x32xf32>
    %247 = math.exp %246 : vector<4x32xf32>
    %cst_64 = arith.constant 1.000000e+00 : f32
    %248 = vector.broadcast %cst_64 : f32 to vector<4x32xf32>
    %249 = arith.addf %248, %247 : vector<4x32xf32>
    %250 = arith.divf %248, %249 : vector<4x32xf32>
    %251 = vector.extract_strided_slice %230 {offsets = [0, 64], sizes = [4, 32], strides = [1, 1]} : vector<4x96xf32> to vector<4x32xf32>
    %252 = vector.extract_strided_slice %234 {offsets = [0, 64], sizes = [4, 32], strides = [1, 1]} : vector<4x96xf32> to vector<4x32xf32>
    %253 = arith.mulf %242, %252 : vector<4x32xf32>
    %254 = arith.addf %251, %253 : vector<4x32xf32>
    %255 = math.tanh %254 : vector<4x32xf32>
    %cst_65 = arith.constant 1.000000e+00 : f32
    %256 = vector.broadcast %cst_65 : f32 to vector<4x32xf32>
    %257 = arith.subf %256, %250 : vector<4x32xf32>
    %258 = arith.mulf %257, %255 : vector<4x32xf32>
    %259 = arith.mulf %250, %223 : vector<4x32xf32>
    %260 = arith.addf %258, %259 : vector<4x32xf32>
    %261 = arith.truncf %260 : vector<4x32xf32> to vector<4x32xbf16>
    %c0_66 = arith.constant 0 : index
    %c6_67 = arith.constant 6 : index
    %c0_68 = arith.constant 0 : index
    %262 = vector.load %arg6[%c0_66, %c6_67, %c0_68] : memref<4x8x32xbf16, #tpu.memory_space<vmem>>, vector<4x1x32xbf16>
    %263 = vector.shape_cast %262 : vector<4x1x32xbf16> to vector<4x32xbf16>
    %264 = vector.shape_cast %261 : vector<4x32xbf16> to vector<4x1x32xbf16>
    tpu.vector_store %arg6[%c0_66, %c6_67, %c0_68], %264 {strides = array<i32>} : memref<4x8x32xbf16, #tpu.memory_space<vmem>>, vector<4x1x32xbf16>,
    %c0_69 = arith.constant 0 : index
    %c7 = arith.constant 7 : index
    %c0_70 = arith.constant 0 : index
    %265 = vector.load %arg2[%c0_69, %c7, %c0_70] : memref<4x8x96xbf16, #tpu.memory_space<vmem>>, vector<4x1x96xbf16>
    %266 = vector.shape_cast %265 : vector<4x1x96xbf16> to vector<4x96xbf16>
    %267 = arith.extf %266 : vector<4x96xbf16> to vector<4x96xf32>
    %268 = arith.truncf %260 : vector<4x32xf32> to vector<4x32xbf16>
    %cst_71 = arith.constant dense<0.000000e+00> : vector<4x96xf32>
    %269 = tpu.matmul %268, %3, %cst_71 {dimension_numbers = #tpu.dot_dimension_numbers<[1], [0], [0], [1], [0, 0, 1, 1], [], []>} : vector<4x32xbf16>, vector<32x96xbf16>, vector<4x96xf32> -> vector<4x96xf32>
    %270 = vector.broadcast %4 : vector<1x96xf32> to vector<4x96xf32>
    %271 = arith.addf %269, %270 : vector<4x96xf32>
    %272 = vector.extract_strided_slice %267 {offsets = [0, 0], sizes = [4, 32], strides = [1, 1]} : vector<4x96xf32> to vector<4x32xf32>
    %273 = vector.extract_strided_slice %271 {offsets = [0, 0], sizes = [4, 32], strides = [1, 1]} : vector<4x96xf32> to vector<4x32xf32>
    %274 = arith.addf %272, %273 : vector<4x32xf32>
    %275 = arith.negf %274 : vector<4x32xf32>
    %276 = math.exp %275 : vector<4x32xf32>
    %cst_72 = arith.constant 1.000000e+00 : f32
    %277 = vector.broadcast %cst_72 : f32 to vector<4x32xf32>
    %278 = arith.addf %277, %276 : vector<4x32xf32>
    %279 = arith.divf %277, %278 : vector<4x32xf32>
    %280 = vector.extract_strided_slice %267 {offsets = [0, 32], sizes = [4, 32], strides = [1, 1]} : vector<4x96xf32> to vector<4x32xf32>
    %281 = vector.extract_strided_slice %271 {offsets = [0, 32], sizes = [4, 32], strides = [1, 1]} : vector<4x96xf32> to vector<4x32xf32>
    %282 = arith.addf %280, %281 : vector<4x32xf32>
    %283 = arith.negf %282 : vector<4x32xf32>
    %284 = math.exp %283 : vector<4x32xf32>
    %cst_73 = arith.constant 1.000000e+00 : f32
    %285 = vector.broadcast %cst_73 : f32 to vector<4x32xf32>
    %286 = arith.addf %285, %284 : vector<4x32xf32>
    %287 = arith.divf %285, %286 : vector<4x32xf32>
    %288 = vector.extract_strided_slice %267 {offsets = [0, 64], sizes = [4, 32], strides = [1, 1]} : vector<4x96xf32> to vector<4x32xf32>
    %289 = vector.extract_strided_slice %271 {offsets = [0, 64], sizes = [4, 32], strides = [1, 1]} : vector<4x96xf32> to vector<4x32xf32>
    %290 = arith.mulf %279, %289 : vector<4x32xf32>
    %291 = arith.addf %288, %290 : vector<4x32xf32>
    %292 = math.tanh %291 : vector<4x32xf32>
    %cst_74 = arith.constant 1.000000e+00 : f32
    %293 = vector.broadcast %cst_74 : f32 to vector<4x32xf32>
    %294 = arith.subf %293, %287 : vector<4x32xf32>
    %295 = arith.mulf %294, %292 : vector<4x32xf32>
    %296 = arith.mulf %287, %260 : vector<4x32xf32>
    %297 = arith.addf %295, %296 : vector<4x32xf32>
    %298 = arith.truncf %297 : vector<4x32xf32> to vector<4x32xbf16>
    %c0_75 = arith.constant 0 : index
    %c7_76 = arith.constant 7 : index
    %c0_77 = arith.constant 0 : index
    %299 = vector.load %arg6[%c0_75, %c7_76, %c0_77] : memref<4x8x32xbf16, #tpu.memory_space<vmem>>, vector<4x1x32xbf16>
    %300 = vector.shape_cast %299 : vector<4x1x32xbf16> to vector<4x32xbf16>
    %301 = vector.shape_cast %298 : vector<4x32xbf16> to vector<4x1x32xbf16>
    tpu.vector_store %arg6[%c0_75, %c7_76, %c0_77], %301 {strides = array<i32>} : memref<4x8x32xbf16, #tpu.memory_space<vmem>>, vector<4x1x32xbf16>,
    %c0_78 = arith.constant 0 : index
    %c0_79 = arith.constant 0 : index
    %302 = vector.load %arg8[%c0_78, %c0_79] : memref<4x32xf32, #tpu.memory_space<vmem>>, vector<4x32xf32>
    tpu.vector_store %arg8[%c0_78, %c0_79], %297 {strides = array<i32>} : memref<4x32xf32, #tpu.memory_space<vmem>>, vector<4x32xf32>,
    %c0_80 = arith.constant 0 : index
    %c0_81 = arith.constant 0 : index
    %303 = vector.load %arg7[%c0_80, %c0_81] : memref<4x32xf32, #tpu.memory_space<vmem>>, vector<4x32xf32>
    tpu.vector_store %arg7[%c0_80, %c0_81], %297 {strides = array<i32>} : memref<4x32xf32, #tpu.memory_space<vmem>>, vector<4x32xf32>,
    return
  }
  func.func @transform_0(%arg0: i32, %arg1: i32) -> (i32, i32, i32) {
    %c0_i32 = arith.constant 0 : i32
    %c0_i32_0 = arith.constant 0 : i32
    return %arg0, %arg1, %c0_i32 : i32, i32, i32
  }
  func.func @transform_1(%arg0: i32, %arg1: i32) -> (i32, i32) {
    %c0_i32 = arith.constant 0 : i32
    %c0_i32_0 = arith.constant 0 : i32
    return %arg0, %c0_i32 : i32, i32
  }
  func.func @transform_2(%arg0: i32, %arg1: i32) -> (i32, i32) {
    %c0_i32 = arith.constant 0 : i32
    %c0_i32_0 = arith.constant 0 : i32
    %c0_i32_1 = arith.constant 0 : i32
    return %c0_i32, %c0_i32_0 : i32, i32
  }
  func.func @transform_3(%arg0: i32, %arg1: i32) -> (i32, i32) {
    %c0_i32 = arith.constant 0 : i32
    %c0_i32_0 = arith.constant 0 : i32
    %c0_i32_1 = arith.constant 0 : i32
    return %c0_i32, %c0_i32_0 : i32, i32
  }
  func.func @transform_4(%arg0: i32, %arg1: i32) -> (i32, i32, i32) {
    %c0_i32 = arith.constant 0 : i32
    %c0_i32_0 = arith.constant 0 : i32
    return %arg0, %arg1, %c0_i32 : i32, i32, i32
  }
  func.func @transform_5(%arg0: i32, %arg1: i32) -> (i32, i32) {
    %c0_i32 = arith.constant 0 : i32
    %c0_i32_0 = arith.constant 0 : i32
    return %arg0, %c0_i32 : i32, i32
  }
}

module attributes {stable_mosaic.version = 11 : i64} {
  func.func @_matmul_bias_kernel(%arg0: i32, %arg1: i32, %arg2: i32, %arg3: memref<32x128xbf16, #tpu.memory_space<vmem>>, %arg4: memref<128x128xbf16, #tpu.memory_space<vmem>>, %arg5: memref<1x128xf32, #tpu.memory_space<vmem>>, %arg6: memref<32x128xf32, #tpu.memory_space<vmem>>, %arg7: memref<32x128xf32, #tpu.memory_space<vmem>>) attributes {dimension_semantics = [#tpu.dimension_semantics<parallel>, #tpu.dimension_semantics<parallel>, #tpu.dimension_semantics<arbitrary>], iteration_bounds = array<i64: 1, 1, 1>, scalar_prefetch = 0 : i64, scratch_operands = 1 : i64, tpu.core_type = #tpu.core_type<tc>, window_params = [{transform_indices = @transform_0, window_bounds = array<i64: 32, 128>}, {transform_indices = @transform_1, window_bounds = array<i64: 128, 128>}, {transform_indices = @transform_2, window_bounds = array<i64: 1, 128>}, {transform_indices = @transform_3, window_bounds = array<i64: 32, 128>}]} {
    %c0_i32 = arith.constant 0 : i32
    %0 = arith.cmpi eq, %arg2, %c0_i32 : i32
    %1 = arith.extui %0 : i1 to i32
    %c0_i32_0 = arith.constant 0 : i32
    %2 = arith.cmpi ne, %1, %c0_i32_0 : i32
    scf.if %2 {
      %cst_10 = arith.constant 0.000000e+00 : f32
      %12 = vector.broadcast %cst_10 : f32 to vector<32x128xf32>
      %c0_11 = arith.constant 0 : index
      %c0_12 = arith.constant 0 : index
      %13 = vector.load %arg7[%c0_11, %c0_12] : memref<32x128xf32, #tpu.memory_space<vmem>>, vector<32x128xf32>
      tpu.vector_store %arg7[%c0_11, %c0_12], %12 {strides = array<i32>} : memref<32x128xf32, #tpu.memory_space<vmem>>, vector<32x128xf32>,
    } else {
    }
    %c0 = arith.constant 0 : index
    %c0_1 = arith.constant 0 : index
    %3 = vector.load %arg7[%c0, %c0_1] : memref<32x128xf32, #tpu.memory_space<vmem>>, vector<32x128xf32>
    %c0_2 = arith.constant 0 : index
    %c0_3 = arith.constant 0 : index
    %4 = vector.load %arg3[%c0_2, %c0_3] : memref<32x128xbf16, #tpu.memory_space<vmem>>, vector<32x128xbf16>
    %c0_4 = arith.constant 0 : index
    %c0_5 = arith.constant 0 : index
    %5 = vector.load %arg4[%c0_4, %c0_5] : memref<128x128xbf16, #tpu.memory_space<vmem>>, vector<128x128xbf16>
    %cst = arith.constant dense<0.000000e+00> : vector<32x128xf32>
    %6 = tpu.matmul %4, %5, %cst {dimension_numbers = #tpu.dot_dimension_numbers<[1], [0], [0], [1], [0, 0, 1, 1], [], []>} : vector<32x128xbf16>, vector<128x128xbf16>, vector<32x128xf32> -> vector<32x128xf32>
    %7 = arith.addf %3, %6 : vector<32x128xf32>
    %c0_6 = arith.constant 0 : index
    %c0_7 = arith.constant 0 : index
    %8 = vector.load %arg7[%c0_6, %c0_7] : memref<32x128xf32, #tpu.memory_space<vmem>>, vector<32x128xf32>
    tpu.vector_store %arg7[%c0_6, %c0_7], %7 {strides = array<i32>} : memref<32x128xf32, #tpu.memory_space<vmem>>, vector<32x128xf32>,
    %c0_i32_8 = arith.constant 0 : i32
    %9 = arith.cmpi eq, %arg2, %c0_i32_8 : i32
    %10 = arith.extui %9 : i1 to i32
    %c0_i32_9 = arith.constant 0 : i32
    %11 = arith.cmpi ne, %10, %c0_i32_9 : i32
    scf.if %11 {
      %c0_10 = arith.constant 0 : index
      %c0_11 = arith.constant 0 : index
      %12 = vector.load %arg7[%c0_10, %c0_11] : memref<32x128xf32, #tpu.memory_space<vmem>>, vector<32x128xf32>
      %c0_12 = arith.constant 0 : index
      %c0_13 = arith.constant 0 : index
      %13 = vector.load %arg5[%c0_12, %c0_13] : memref<1x128xf32, #tpu.memory_space<vmem>>, vector<1x128xf32>
      %14 = vector.broadcast %13 : vector<1x128xf32> to vector<32x128xf32>
      %15 = arith.addf %12, %14 : vector<32x128xf32>
      %c0_14 = arith.constant 0 : index
      %c0_15 = arith.constant 0 : index
      %16 = vector.load %arg6[%c0_14, %c0_15] : memref<32x128xf32, #tpu.memory_space<vmem>>, vector<32x128xf32>
      tpu.vector_store %arg6[%c0_14, %c0_15], %15 {strides = array<i32>} : memref<32x128xf32, #tpu.memory_space<vmem>>, vector<32x128xf32>,
    } else {
    }
    return
  }
  func.func @transform_0(%arg0: i32, %arg1: i32, %arg2: i32) -> (i32, i32) {
    %c0_i32 = arith.constant 0 : i32
    return %arg0, %arg2 : i32, i32
  }
  func.func @transform_1(%arg0: i32, %arg1: i32, %arg2: i32) -> (i32, i32) {
    %c0_i32 = arith.constant 0 : i32
    return %arg2, %arg1 : i32, i32
  }
  func.func @transform_2(%arg0: i32, %arg1: i32, %arg2: i32) -> (i32, i32) {
    %c0_i32 = arith.constant 0 : i32
    %c0_i32_0 = arith.constant 0 : i32
    return %c0_i32, %arg1 : i32, i32
  }
  func.func @transform_3(%arg0: i32, %arg1: i32, %arg2: i32) -> (i32, i32) {
    %c0_i32 = arith.constant 0 : i32
    return %arg0, %arg1 : i32, i32
  }
}

</mosaic_0001>

<bundles_post_ra>
// kernel: decoder_forward.6
= control target key start
LH: loop header
LB: loop body
LE: loop exit
PB: predicated region body
PF: predicated region fallthrough
CT: control target
= control target key end

     0   :  { %s327_s1 = inlined_call_operand.vmem [shape: bf16[128,128], index: 1, kind: input, shape index: {}]   ;;  %s328_s0 = inlined_call_operand.vmem [shape: f32[32,128], index: 0, kind: input, shape index: {}]   ;;  %s329_s2 = inlined_call_operand.vmem [shape: f32[1,128], index: 2, kind: input, shape index: {}]   ;;  %s330_s3 = inlined_call_operand.vmem [shape: bf16[32,128], index: 3, kind: output, shape index: {}]  }
   0x1   :  { %v254_v0 = vld [vmem:[%s327_s1 + $0x38] sm:$0xff]   ;;  %v255_v1 = vld [vmem:[%s327_s1 + $0x30] sm:$0xff]   ;;  %v256_v2 = vld [vmem:[%s327_s1 + $0x28] sm:$0xff]  }
   0x2   :  { %234 = vmatprep.subr.bf16.mxu0 %v254_v0  ;;  %v257_v3 = vld [vmem:[%s327_s1 + $0x20] sm:$0xff]   ;;  %v28_v5 = vld [vmem:[%s328_s0 + $0x8] sm:$0xff]  ;;  %v258_v7 = vld [vmem:[%s327_s1 + $0x18] sm:$0xff]  }
   0x3   :  { %235 = vmatpush3.bf16.msra.mxu0 %v254_v0  ;;  %v27_v4 = vld [vmem:[%s328_s0] sm:$0xff]  ;;  %v259_v8 = vld [vmem:[%s327_s1 + $0x10] sm:$0xff]   ;;  %v260_v9 = vld [vmem:[%s327_s1 + $0x8] sm:$0xff]  }
   0x4   :  { %236 = vmatprep.subr.bf16.mxu0 %v255_v1  ;;  %v31_v6 = vpack.c.bf16 %v28_v5, %v27_v4  ;;  %v261_v10 = vld [vmem:[%s327_s1] sm:$0xff]   ;;  %v29_v11 = vld [vmem:[%s328_s0 + $0x10] sm:$0xff]  ;;  %v30_v12 = vld [vmem:[%s328_s0 + $0x18] sm:$0xff] }
   0x5   :  { %v32_v13 = vpack.c.bf16 %v30_v12, %v29_v11  ;;  %v204_v15 = vld [vmem:[%s329_s2] ss:$0 sm:$0xff] }
   0x6   :  { %250 = vmatprep.mubr.bf16.mxu0 %v31_v6 }
   0x7   :  { %237 = vmatpush3.bf16.msra.mxu0 %v255_v1 }
   0x8   :  { %238 = vmatprep.subr.bf16.mxu0 %v256_v2 }
   0xb   :  { %239 = vmatpush3.bf16.msra.mxu0 %v256_v2 }
   0xc   :  { %240 = vmatprep.subr.bf16.mxu0 %v257_v3 }
   0xf   :  { %241 = vmatpush3.bf16.msra.mxu0 %v257_v3 }
  0x10   :  { %242 = vmatprep.subr.bf16.mxu0 %v258_v7 }
  0x13   :  { %243 = vmatpush3.bf16.msra.mxu0 %v258_v7 }
  0x14   :  { %244 = vmatprep.subr.bf16.mxu0 %v259_v8 }
  0x17   :  { %245 = vmatpush3.bf16.msra.mxu0 %v259_v8 }
  0x18   :  { %246 = vmatprep.subr.bf16.mxu0 %v260_v9 }
  0x1b   :  { %247 = vmatpush3.bf16.msra.mxu0 %v260_v9 }
  0x1c   :  { %248 = vmatprep.subr.bf16.mxu0 %v261_v10 }
  0x1f   :  { %249 = vmatpush3.bf16.msra.mxu0 %v261_v10 }
  0x22   :  { %251 = vmatmul.mubr.bf16.vlgmr.msra.gmra.mxu0 %v32_v13 }
  0xe2   :  { %v252_v14 = vpop.f32.mrf.mxu0 }
  0xe3   :  { %v170_v18 = vadd.f32 %v252_v14, %v204_v15 }
  0xe4   :  { %v131_v16 = vpop.f32.mrf.mxu0 }
  0xe5   :  { %v168_v21 = vadd.f32 %v204_v15, %v131_v16 }
  0xe6   :  { %v253_v17 = vpop.f32.mrf.mxu0 }
  0xe7   :  { %v171_v19 = vadd.f32 %v253_v17, %v204_v15 }
  0xe8   :  { %v134_v20 = vpop.f32.mrf.mxu0 }
  0xe9   :  { %v221_v22 = vpack.c.bf16 %v171_v19, %v170_v18  ;;  %v169_v23 = vadd.f32 %v204_v15, %v134_v20 }
  0xeb   :  { %223 = vst [vmem:[%s330_s3 + $0x8] sm:$0xff] %v221_v22   ;;  %v216_v24 = vpack.c.bf16 %v169_v23, %v168_v21 }
  0xed   :  { %217 = vst [vmem:[%s330_s3] sm:$0xff] %v216_v24  }

// kernel: decoder_forward.7
= control target key start
LH: loop header
LB: loop body
LE: loop exit
PB: predicated region body
PF: predicated region fallthrough
CT: control target
= control target key end

     0   :  { %v194_v0 = vmov 0.0   ;;  %vm195_vm0 = vmmov 0   ;;  %s249_s1 = inlined_call_operand.vmem [shape: bf16[128,128], index: 1, kind: input, shape index: {}]   ;;  %s250_s0 = inlined_call_operand.vmem [shape: f32[8,128], index: 0, kind: input, shape index: {}]   ;;  %s251_s2 = inlined_call_operand.vmem [shape: f32[1,128], index: 2, kind: input, shape index: {}]   ;;  %s252_s3 = inlined_call_operand.vmem [shape: f32[8,128], index: 3, kind: output, shape index: {}]  }
   0x1   :  { %164 = vmatprep.subr.bf16.mxu0 %v194_v0  ;;  %v186_v1 = vld [vmem:[%s249_s1 + $0x38] sm:$0xff]   ;;  %180 = vmatprep.mubr.msk.bf16.mxu0 %vm195_vm0, %v194_v0  ;;  %v187_v2 = vld [vmem:[%s249_s1 + $0x30] sm:$0xff]   ;;  %v188_v3 = vld [vmem:[%s249_s1 + $0x28] sm:$0xff]  }
   0x2   :  { %165 = vmatpush3.bf16.msra.mxu0 %v186_v1  ;;  %v189_v4 = vld [vmem:[%s249_s1 + $0x20] sm:$0xff]   ;;  %v190_v5 = vld [vmem:[%s249_s1 + $0x18] sm:$0xff]   ;;  %v191_v6 = vld [vmem:[%s249_s1 + $0x10] sm:$0xff]  }
   0x3   :  { %166 = vmatprep.subr.bf16.mxu0 %v194_v0  ;;  %v192_v7 = vld [vmem:[%s249_s1 + $0x8] sm:$0xff]   ;;  %v193_v8 = vld [vmem:[%s249_s1] sm:$0xff]  }
   0x4   :  { %v21_v9 = vld [vmem:[%s250_s0] sm:$0xff] }
   0x5   :  { %v22_v10 = vpack.c.bf16 %v21_v9, %v21_v9  ;;  %v154_v11 = vld [vmem:[%s251_s2] ss:$0 sm:$0xff] }
   0x6   :  { %167 = vmatpush3.bf16.msra.mxu0 %v187_v2 }
   0x7   :  { %168 = vmatprep.subr.bf16.mxu0 %v194_v0 }
   0xa   :  { %169 = vmatpush3.bf16.msra.mxu0 %v188_v3 }
   0xb   :  { %170 = vmatprep.subr.bf16.mxu0 %v194_v0 }
   0xe   :  { %171 = vmatpush3.bf16.msra.mxu0 %v189_v4 }
   0xf   :  { %172 = vmatprep.subr.bf16.mxu0 %v194_v0 }
  0x12   :  { %173 = vmatpush3.bf16.msra.mxu0 %v190_v5 }
  0x13   :  { %174 = vmatprep.subr.bf16.mxu0 %v194_v0 }
  0x16   :  { %175 = vmatpush3.bf16.msra.mxu0 %v191_v6 }
  0x17   :  { %176 = vmatprep.subr.bf16.mxu0 %v194_v0 }
  0x1a   :  { %177 = vmatpush3.bf16.msra.mxu0 %v192_v7 }
  0x1b   :  { %178 = vmatprep.subr.bf16.mxu0 %v194_v0 }
  0x1e   :  { %179 = vmatpush3.bf16.msra.mxu0 %v193_v8 }
  0x21   :  { %181 = vmatmul.mubr.bf16.vlgmr.msra.gmra.mxu0 %v22_v10 }
  0xe1   :  { %v121_v12 = vpop.f32.mrf.mxu0 }
  0xe2   :  { %v140_v13 = vadd.f32 %v154_v11, %v121_v12 }
  0xe3   :  { %v182_v14 = vpop.f32.mrf.mxu0 }
  0xe4   :  { %141 = vst [vmem:[%s252_s3] sm:$0xff] %v140_v13 }
  0xe5   :  { %v124_v15 = vpop.f32.mrf.mxu0 }
  0xe7   :  { %v183_v16 = vpop.f32.mrf.mxu0 }

// kernel: decoder_forward.9
= control target key start
LH: loop header
LB: loop body
LE: loop exit
PB: predicated region body
PF: predicated region fallthrough
CT: control target
= control target key end

     0   :  { %s335_s1 = inlined_call_operand.vmem [shape: bf16[128,128], index: 1, kind: input, shape index: {}]   ;;  %s336_s0 = inlined_call_operand.vmem [shape: bf16[32,128], index: 0, kind: input, shape index: {}]   ;;  %s337_s2 = inlined_call_operand.vmem [shape: f32[1,128], index: 2, kind: input, shape index: {}]   ;;  %s338_s3 = inlined_call_operand.vmem [shape: bf16[32,128], index: 3, kind: output, shape index: {}]  }
   0x1   :  { %v266_v0 = vld [vmem:[%s335_s1 + $0x38] sm:$0xff]   ;;  %v267_v1 = vld [vmem:[%s335_s1 + $0x30] sm:$0xff]   ;;  %v268_v2 = vld [vmem:[%s335_s1 + $0x28] sm:$0xff]  }
   0x2   :  { %246 = vmatprep.subr.bf16.mxu0 %v266_v0  ;;  %v269_v3 = vld [vmem:[%s335_s1 + $0x20] sm:$0xff]   ;;  %v270_v5 = vld [vmem:[%s335_s1 + $0x18] sm:$0xff]   ;;  %v271_v6 = vld [vmem:[%s335_s1 + $0x10] sm:$0xff]  }
   0x3   :  { %247 = vmatpush3.bf16.msra.mxu0 %v266_v0  ;;  %v274_v4 = vld [vmem:[%s336_s0] sm:$0xff]   ;;  %v272_v7 = vld [vmem:[%s335_s1 + $0x8] sm:$0xff]  }
   0x4   :  { %248 = vmatprep.subr.bf16.mxu0 %v267_v1  ;;  %262 = vmatprep.mubr.bf16.mxu0 %v274_v4  ;;  %v273_v8 = vld [vmem:[%s335_s1] sm:$0xff]   ;;  %v275_v9 = vld [vmem:[%s336_s0 + $0x8] sm:$0xff]  }
   0x5   :  { %v216_v11 = vld [vmem:[%s337_s2] ss:$0 sm:$0xff] }
   0x7   :  { %249 = vmatpush3.bf16.msra.mxu0 %v267_v1 }
   0x8   :  { %250 = vmatprep.subr.bf16.mxu0 %v268_v2 }
   0xb   :  { %251 = vmatpush3.bf16.msra.mxu0 %v268_v2 }
   0xc   :  { %252 = vmatprep.subr.bf16.mxu0 %v269_v3 }
   0xf   :  { %253 = vmatpush3.bf16.msra.mxu0 %v269_v3 }
  0x10   :  { %254 = vmatprep.subr.bf16.mxu0 %v270_v5 }
  0x13   :  { %255 = vmatpush3.bf16.msra.mxu0 %v270_v5 }
  0x14   :  { %256 = vmatprep.subr.bf16.mxu0 %v271_v6 }
  0x17   :  { %257 = vmatpush3.bf16.msra.mxu0 %v271_v6 }
  0x18   :  { %258 = vmatprep.subr.bf16.mxu0 %v272_v7 }
  0x1b   :  { %259 = vmatpush3.bf16.msra.mxu0 %v272_v7 }
  0x1c   :  { %260 = vmatprep.subr.bf16.mxu0 %v273_v8 }
  0x1f   :  { %261 = vmatpush3.bf16.msra.mxu0 %v273_v8 }
  0x22   :  { %263 = vmatmul.mubr.bf16.vlgmr.msra.gmra.mxu0 %v275_v9 }
  0xe2   :  { %v264_v10 = vpop.f32.mrf.mxu0 }
  0xe3   :  { %v180_v14 = vadd.f32 %v264_v10, %v216_v11 }
  0xe4   :  { %v141_v12 = vpop.f32.mrf.mxu0 }
  0xe5   :  { %v178_v17 = vadd.f32 %v216_v11, %v141_v12 }
  0xe6   :  { %v265_v13 = vpop.f32.mrf.mxu0 }
  0xe7   :  { %v181_v15 = vadd.f32 %v265_v13, %v216_v11 }
  0xe8   :  { %v144_v16 = vpop.f32.mrf.mxu0 }
  0xe9   :  { %v233_v18 = vpack.c.bf16 %v181_v15, %v180_v14  ;;  %v179_v19 = vadd.f32 %v216_v11, %v144_v16 }
  0xeb   :  { %235 = vst [vmem:[%s338_s3 + $0x8] sm:$0xff] %v233_v18   ;;  %v228_v20 = vpack.c.bf16 %v179_v19, %v178_v17 }
  0xed   :  { %229 = vst [vmem:[%s338_s3] sm:$0xff] %v228_v20  }

// kernel: decoder_forward.8
= control target key start
LH: loop header
LB: loop body
LE: loop exit
PB: predicated region body
PF: predicated region fallthrough
CT: control target
= control target key end

     0   :  { %v2317_v0 = vmov 0.0   ;;  %vm2318_vm0 = vmmov 0   ;;  %vm28_vm1 = vcmask 257024   ;;  %vm76_vm2 = vcmask 261120   ;;  %s2319_s28 = smov 64   ;;  %s2320_s15 = smov 32   ;;  %s3357_s2 = inlined_call_operand.vmem [shape: bf16[32,96], index: 2, kind: input, shape index: {}]   ;;  %s3358_s1 = inlined_call_operand.vmem [shape: f32[4,32], index: 1, kind: input, shape index: {}]   ;;  %s3359_s3 = inlined_call_operand.vmem [shape: f32[1,96], index: 3, kind: input, shape index: {}]   ;;  %s3360_s4 = inlined_call_operand.vmem [shape: f32[4,96], index: 4, kind: input, shape index: {}]   ;;  %s3361_s0 = inlined_call_operand.vmem [shape: bf16[4,8,96], index: 0, kind: input, shape index: {}]   ;;  %s3362_s5 = inlined_call_operand.vmem [shape: bf16[4,8,32], index: 5, kind: output, shape index: {0}]   ;;  %s3363_s6 = inlined_call_operand.vmem [shape: f32[4,32], index: 6, kind: output, shape index: {1}]  }
   0x1   :  { %2050 = vmatprep.subr.bf16.mxu0 %v2317_v0  ;;  %v2361_v1 = vld [vmem:[%s3357_s2 + $0x8] sm:$0xff]   ;;  %2054 = vmatprep.mubr.msk.bf16.mxu0 %vm2318_vm0, %v2317_v0  ;;  %v2372_v2 = vld [vmem:[%s3357_s2] sm:$0xff]   ;;  %s2321_s16 = smov 96   ;;  %vm302_vm3 = vcmask 1041409   ;;  %vm305_vm4 = vcmask 1042434   ;;  %vm308_vm5 = vcmask 1043459  }
   0x2   :  { %2058 = vmatprep.subr.bf16.mxu1 %v2317_v0  ;;  %2062 = vmatprep.mubr.msk.bf16.mxu1 %vm2318_vm0, %v2317_v0  ;;  %v27_v3 = vld [vmem:[%s3358_s1] sm:$0xf]  ;;  %v38_v16 = vld [vmem:[%s3361_s0 + $0x4] sm:$0x1]  ;;  %v39_v20 = vld [vmem:[%s3361_s0 + $0x8] sm:$0x1] }
   0x3   :  { %2051 = vmatpush3.bf16.msra.mxu0 %v2361_v1  ;;  %2059 = vmatpush3.bf16.msra.mxu1 %v2361_v1  ;;  %29 = vst.msk [vmem:[#allocation2] sm:$0xf] %vm28_vm1, %v27_v3  ;;  %v2398_v6 = vld [vmem:[%s3359_s3] ss:$0 sm:$0xff]  ;;  %v42_v19 = vunpack.c.l.bf16 %v38_v16  ;;  %v43_v24 = vunpack.c.l.bf16 %v39_v20  ;;  %v40_v25 = vld [vmem:[%s3361_s0 + $0xc] sm:$0x1] }
   0x4   :  { %2052 = vmatprep.subr.bf16.mxu0 %v2317_v0  ;;  %2060 = vmatprep.subr.bf16.mxu1 %v2317_v0  ;;  %v2408_v15 = vld [vmem:[%s3360_s4] sm:$0xf]  ;;  %v44_v29 = vunpack.c.l.bf16 %v40_v25  ;;  %vm272_vm6 = vcmask 253952   ;;  %vm273_vm7 = vsmask.f32 256  ;;  %vm732_vm9 = vcmask 254977  }
   0x5   :  { %v37_v17 = vld [vmem:[%s3361_s0] sm:$0x1]  ;;  %v2417_v18 = vrot.slane %v2408_v15, 1  ;;  %v2424_v23 = vrot.slane %v2408_v15, 2  ;;  %v2431_v28 = vrot.slane %v2408_v15, 3  ;;  %vm3048_vm8 = vmand %vm272_vm6, %vm273_vm7  ;;  %vm1190_vm12 = vcmask 256002  }
   0x6   :  { %v41_v21 = vunpack.c.l.bf16 %v37_v17  ;;  %vm733_vm10 = vsmask.f32 1280  ;;  %vm1191_vm13 = vsmask.f32 2304  ;;  %vm1647_vm15 = vcmask 257027  }
   0x7   :  { %2053 = vmatpush3.bf16.msra.mxu0 %v2372_v2  ;;  %2061 = vmatpush3.bf16.msra.mxu1 %v2372_v2  ;;  %v54_v22 = vadd.f32 %v2417_v18, %v42_v19  ;;  %v55_v30 = vadd.f32 %v2424_v23, %v43_v24  ;;  %v56_v33 = vadd.f32 %v2431_v28, %v44_v29  ;;  %vm3087_vm11 = vmand %vm732_vm9, %vm733_vm10  ;;  %vm1907_vm10 = vcmask 256000  }
   0x8   :  { %2066 = vmatprep.subr.bf16.mxu0 %v2317_v0  ;;  %2074 = vmatprep.subr.bf16.mxu1 %v2317_v0  ;;  %v53_v26 = vadd.f32 %v41_v21, %v2408_v15  ;;  %vm3127_vm14 = vmand %vm1190_vm12, %vm1191_vm13 }
   0xa   :  { %v2384_v4 = vld [vmem:[#allocation2] sm:$0xf] }
   0xb   :  { %v57_v5 = vpack.c.bf16 %v2384_v4, %v2384_v4  ;;  %v221_v59 = vrot.slane %v2384_v4, 1  ;;  %v222_v60 = vrot.slane %v2384_v4, 2 }
   0xd   :  { %2055 = vmatmul.mubr.msk.bf16.vlgmr.msra.gmra.mxu0 %vm76_vm2, %v57_v5 }
   0xe   :  { %2067 = vmatpush3.bf16.msra.mxu0 %v2361_v1  ;;  %2070 = vmatprep.mubr.msk.bf16.mxu0 %vm2318_vm0, %v2317_v0 }
   0xf   :  { %2068 = vmatprep.subr.bf16.mxu0 %v2317_v0 }
  0x12   :  { %2069 = vmatpush3.bf16.msra.mxu0 %v2372_v2 }
  0x13   :  { %2082 = vmatprep.subr.bf16.mxu0 %v2317_v0 }
  0xcd   :  { %v114_v7 = vpop.f32.mrf.mxu0 }
  0xce   :  { %v115_v8 = vadd.f32 %v2398_v6, %v114_v7 }
  0xcf   :  { %v2056_v9 = vpop.f32.mrf.mxu0 }
  0xd0   :  { %156 = vrot.lane.b32.xlu1 %v115_v8, %s2319_s28  ;;  %v121_v10 = vrot.slane %v115_v8, 1  ;;  %v123_v12 = vrot.slane %v115_v8, 3  ;;  %v122_v14 = vrot.slane %v115_v8, 2  ;;  %v128_v31 = vadd.f32 %v115_v8, %v53_v26 }
  0xd1   :  { %v117_v11 = vpop.f32.mrf.mxu0 }
  0xd2   :  { %158 = vrot.lane.b32.xlu0 %v121_v10, %s2319_s28  ;;  %v129_v27 = vadd.f32 %v121_v10, %v54_v22  ;;  %v130_v34 = vadd.f32 %v122_v14, %v55_v30  ;;  %v1923_v35 = vmul.f32 -1.442695, %v128_v31  ;;  %v131_v36 = vadd.f32 %v123_v12, %v56_v33 }
  0xd3   :  { %v2057_v13 = vpop.f32.mrf.mxu0 }
  0xd4   :  { %162 = vrot.lane.b32.xlu1 %v123_v12, %s2319_s28  ;;  %v1924_v32 = vmul.f32 -1.442695, %v129_v27  ;;  %v1925_v37 = vmul.f32 -1.442695, %v130_v34  ;;  %v1926_v38 = vmul.f32 -1.442695, %v131_v36 }
  0xd5   :  { %v223_v13 = vrot.slane %v2384_v4, 3 }
  0xd6   :  { %160 = vrot.lane.b32.xlu0 %v122_v14, %s2319_s28  ;;  %2121 = vpow2.f32 %v1924_v32 }
  0xd7   :  { %2123 = vpow2.f32 %v1923_v35 }
  0xd8   :  { %2125 = vpow2.f32 %v1925_v37 }
  0xd9   :  { %2127 = vpow2.f32 %v1926_v38 }
  0xe3   :  { %v2122_v39 = vpop.eup %2121 }
  0xe4   :  { %v2124_v40 = vpop.eup %2123  ;;  %v145_v41 = vadd.f32 1.0, %v2122_v39 }
  0xe5   :  { %v2126_v42 = vpop.eup %2125  ;;  %v144_v43 = vadd.f32 1.0, %v2124_v40 }
  0xe6   :  { %2129 = vrcp.f32 %v145_v41  ;;  %v146_v44 = vadd.f32 1.0, %v2126_v42  ;;  %v2128_v45 = vpop.eup %2127 }
  0xe7   :  { %2131 = vrcp.f32 %v144_v43  ;;  %v147_v46 = vadd.f32 1.0, %v2128_v45 }
  0xe8   :  { %2133 = vrcp.f32 %v146_v44 }
  0xe9   :  { %2135 = vrcp.f32 %v147_v46 }
  0xf3   :  { %v2130_v47 = vpop.eup %2129 }
  0xf4   :  { %v2435_v51 = vpop.eup %2131  ;;  %v197_v21 = vsub.f32 1.0, %v2130_v47 }
  0xf5   :  { %v2134_v52 = vpop.eup %2133 }
  0xf6   :  { %v2136_v57 = vpop.eup %2135 }
 0x142   :  { %v157_v48 = vpop.permute.xlu1 %156 }
 0x143   :  { %v168_v54 = vmul.f32 %v2435_v51, %v157_v48 }
 0x144   :  { %v159_v49 = vpop.permute.xlu0 %158 }
 0x145   :  { %v169_v50 = vmul.f32 %v2130_v47, %v159_v49 }
 0x146   :  { %v163_v56 = vpop.permute.xlu1 %162 }
 0x147   :  { %178 = vrot.lane.b32.xlu0 %v169_v50, %s2319_s28  ;;  %v171_v58 = vmul.f32 %v2136_v57, %v163_v56 }
 0x148   :  { %v161_v53 = vpop.permute.xlu0 %160 }
 0x149   :  { %v170_v55 = vmul.f32 %v2134_v52, %v161_v53 }
 0x14b   :  { %180 = vrot.lane.b32.xlu1 %v170_v55, %s2319_s28  ;;  %176 = vrot.lane.b32.xlu0 %v168_v54, %s2319_s28 }
 0x14f   :  { %182 = vrot.lane.b32.xlu1 %v171_v58, %s2319_s28 }
 0x153   :  { %226 = vrot.lane.b32.xlu1 %v221_v59, %s2320_s15 }
 0x157   :  { %228 = vrot.lane.b32.xlu1 %v222_v60, %s2320_s15 }
 0x1b9   :  { %v179_v61 = vpop.permute.xlu0 %178 }
 0x1ba   :  { %v189_v5 = vadd.f32 %v179_v61, %v54_v22 }
 0x1bd   :  { %v181_v62 = vpop.permute.xlu1 %180  ;;  %v177_v63 = vpop.permute.xlu0 %176 }
 0x1be   :  { %v188_v3 = vadd.f32 %v177_v63, %v53_v26  ;;  %v190_v9 = vadd.f32 %v181_v62, %v55_v30  ;;  %v199_v26 = vsub.f32 1.0, %v2136_v57  ;;  %v198_v30 = vsub.f32 1.0, %v2134_v52 }
 0x1c0   :  { %2137 = vtanh.f32 %v188_v3 }
 0x1c1   :  { %v183_v7 = vpop.permute.xlu1 %182 }
 0x1c2   :  { %v191_v8 = vadd.f32 %v183_v7, %v56_v33  ;;  %v289_v7 = vld [vmem:[%s3361_s0 + $0x8] sm:$0x1] }
 0x1c4   :  { %2139 = vtanh.f32 %v191_v8  ;;  %v287_v8 = vld [vmem:[%s3361_s0] sm:$0x1] }
 0x1c5   :  { %2141 = vtanh.f32 %v189_v5  ;;  %v227_v16 = vpop.permute.xlu1 %226 }
 0x1c6   :  { %2143 = vtanh.f32 %v190_v9  ;;  %v237_v24 = vmul.f32 %v2130_v47, %v227_v16  ;;  %v293_v9 = vunpack.c.l.bf16 %v289_v7 }
 0x1c8   :  { %v299_v16 = vadd.f32 %v293_v9, %v2417_v18 }
 0x1c9   :  { %v229_v17 = vpop.permute.xlu1 %228 }
 0x1ca   :  { %v238_v34 = vmul.f32 %v2134_v52, %v229_v17 }
 0x1cd   :  { %v2138_v10 = vpop.eup %2137 }
 0x1ce   :  { %204 = vrot.lane.b32.xlu0 %v2138_v10, %s2321_s16  ;;  %v288_v10 = vld [vmem:[%s3361_s0 + $0x4] sm:$0x1] }
 0x1d1   :  { %v2140_v11 = vpop.eup %2139 }
 0x1d2   :  { %v2142_v12 = vpop.eup %2141  ;;  %210 = vrot.lane.b32.xlu1 %v2140_v11, %s2321_s16  ;;  %v291_v11 = vunpack.c.l.bf16 %v287_v8 }
 0x1d3   :  { %206 = vrot.lane.b32.xlu0 %v2142_v12, %s2321_s16  ;;  %v2144_v14 = vpop.eup %2143  ;;  %v2506_v12 = vrot.slane %v2408_v15, 7 }
 0x1d5   :  { %v297_v17 = vadd.f32 %v2506_v12, %v291_v11 }
 0x1d6   :  { %230 = vrot.lane.b32.xlu1 %v223_v13, %s2320_s15  ;;  %v290_v13 = vld [vmem:[%s3361_s0 + $0xc] sm:$0x1] }
 0x1d7   :  { %208 = vrot.lane.b32.xlu0 %v2144_v14, %s2321_s16  ;;  %v292_v14 = vunpack.c.l.bf16 %v288_v10 }
 0x1db   :  { %224 = vrot.lane.b32.xlu0 %v2384_v4, %s2320_s15  ;;  %v196_v4 = vsub.f32 1.0, %v2435_v51 }
 0x240   :  { %v205_v19 = vpop.permute.xlu0 %204 }
 0x241   :  { %v216_v40 = vmul.f32 %v205_v19, %v196_v4  ;;  %v294_v19 = vunpack.c.l.bf16 %v290_v13 }
 0x244   :  { %v211_v20 = vpop.permute.xlu1 %210 }
 0x245   :  { %v207_v22 = vpop.permute.xlu0 %206  ;;  %v219_v31 = vmul.f32 %v211_v20, %v199_v26  ;;  %v298_v20 = vadd.f32 %v292_v14, %v2408_v15 }
 0x246   :  { %v217_v25 = vmul.f32 %v207_v22, %v197_v21 }
 0x248   :  { %v2450_v27 = vadd.f32 %v237_v24, %v217_v25  ;;  %v231_v29 = vpop.permute.xlu1 %230  ;;  %v300_v24 = vadd.f32 %v294_v19, %v2424_v23 }
 0x249   :  { %v239_v32 = vmul.f32 %v2136_v57, %v231_v29  ;;  %v209_v33 = vpop.permute.xlu0 %208 }
 0x24a   :  { %v218_v35 = vmul.f32 %v209_v33, %v198_v30  ;;  %v2457_v37 = vpack.c.bf16 %v2450_v27, %v2450_v27 }
 0x24b   :  { %v2452_v36 = vadd.f32 %v239_v32, %v219_v31 }
 0x24c   :  { %v2459_v38 = vadd.f32 %v238_v34, %v218_v35  ;;  %v253_v44 = vunpack.c.l.b16 %v2457_v37 }
 0x24d   :  { %v225_v39 = vpop.permute.xlu0 %224  ;;  %v2463_v41 = vpack.c.bf16 %v2452_v36, %v2452_v36 }
 0x24e   :  { %v2467_v42 = vpack.c.bf16 %v2459_v38, %v2459_v38  ;;  %v236_v43 = vmul.f32 %v2435_v51, %v225_v39  ;;  %v301_v49 = vrot.slane %v253_v44, 7  ;;  %v462_v13 = vrot.slane %v2459_v38, 7 }
 0x24f   :  { %v255_v47 = vunpack.c.l.b16 %v2463_v41 }
 0x250   :  { %v2471_v45 = vadd.f32 %v236_v43, %v216_v40  ;;  %v254_v46 = vunpack.c.l.b16 %v2467_v42 }
 0x251   :  { %v307_v51 = vrot.slane %v255_v47, 5 }
 0x252   :  { %v2477_v48 = vpack.c.bf16 %v2471_v45, %v2471_v45  ;;  %v304_v52 = vrot.slane %v254_v46, 6 }
 0x254   :  { %v252_v50 = vunpack.c.l.b16 %v2477_v48 }
 0x256   :  { %v303_v53 = vsel %vm302_vm3, %v301_v49, %v252_v50 }
 0x257   :  { %v306_v54 = vsel %vm305_vm4, %v304_v52, %v303_v53 }
 0x258   :  { %v309_v55 = vsel %vm308_vm5, %v307_v51, %v306_v54 }
 0x259   :  { %v310_v56 = vpack.c.b16 %v309_v55, %v309_v55 }
 0x25b   :  { %311 = vrot.lane.b32.xlu0 %v310_v56, %s2321_s16 }
 0x2cd   :  { %v312_v57 = vpop.permute.xlu0 %311 }
 0x2ce   :  { %2063 = vmatmul.mubr.msk.bf16.vlgmr.msra.gmra.mxu1 %vm76_vm2, %v312_v57 }
 0x2cf   :  { %2075 = vmatpush3.bf16.msra.mxu1 %v2361_v1  ;;  %2078 = vmatprep.mubr.msk.bf16.mxu1 %vm2318_vm0, %v2317_v0 }
 0x2d0   :  { %2076 = vmatprep.subr.bf16.mxu1 %v2317_v0 }
 0x2d3   :  { %2077 = vmatpush3.bf16.msra.mxu1 %v2372_v2 }
 0x2d4   :  { %2090 = vmatprep.subr.bf16.mxu1 %v2317_v0 }
 0x38e   :  { %v350_v58 = vpop.f32.mrf.mxu1 }
 0x38f   :  { %v351_v59 = vadd.f32 %v2398_v6, %v350_v58 }
 0x390   :  { %v2064_v60 = vpop.f32.mrf.mxu1 }
 0x391   :  { %v358_v61 = vrot.slane %v351_v59, 1  ;;  %v357_v62 = vrot.slane %v351_v59, 7  ;;  %v359_v5 = vrot.slane %v351_v59, 2  ;;  %v365_v25 = vadd.f32 %v351_v59, %v298_v20 }
 0x392   :  { %v353_v63 = vpop.f32.mrf.mxu1 }
 0x393   :  { %396 = vrot.lane.b32.xlu0 %v358_v61, %s2319_s28  ;;  %392 = vrot.lane.b32.xlu1 %v357_v62, %s2319_s28  ;;  %v366_v21 = vadd.f32 %v358_v61, %v299_v16  ;;  %v364_v22 = vadd.f32 %v357_v62, %v297_v17  ;;  %v367_v30 = vadd.f32 %v359_v5, %v300_v24  ;;  %v1933_v31 = vmul.f32 -1.442695, %v365_v25 }
 0x394   :  { %v2065_v3 = vpop.f32.mrf.mxu1 }
 0x395   :  { %v1934_v26 = vmul.f32 -1.442695, %v366_v21  ;;  %v1932_v29 = vmul.f32 -1.442695, %v364_v22  ;;  %v1935_v32 = vmul.f32 -1.442695, %v367_v30 }
 0x397   :  { %398 = vrot.lane.b32.xlu0 %v359_v5, %s2319_s28  ;;  %394 = vrot.lane.b32.xlu1 %v351_v59, %s2319_s28  ;;  %2145 = vpow2.f32 %v1934_v26  ;;  %v463_v26 = vrot.slane %v2452_v36, 7 }
 0x398   :  { %2147 = vpow2.f32 %v1932_v29 }
 0x399   :  { %2149 = vpow2.f32 %v1933_v31  ;;  %v461_v31 = vrot.slane %v2450_v27, 7 }
 0x39a   :  { %2151 = vpow2.f32 %v1935_v32 }
 0x3a4   :  { %v2146_v33 = vpop.eup %2145 }
 0x3a5   :  { %v2148_v34 = vpop.eup %2147  ;;  %v382_v35 = vadd.f32 1.0, %v2146_v33 }
 0x3a6   :  { %v2150_v4 = vpop.eup %2149  ;;  %v380_v39 = vadd.f32 1.0, %v2148_v34 }
 0x3a7   :  { %v2152_v40 = vpop.eup %2151  ;;  %v381_v43 = vadd.f32 1.0, %v2150_v4  ;;  %2153 = vrcp.f32 %v382_v35 }
 0x3a8   :  { %2155 = vrcp.f32 %v380_v39  ;;  %v383_v44 = vadd.f32 1.0, %v2152_v40 }
 0x3a9   :  { %2157 = vrcp.f32 %v381_v43 }
 0x3aa   :  { %2159 = vrcp.f32 %v383_v44 }
 0x3b4   :  { %v2154_v46 = vpop.eup %2153 }
 0x3b5   :  { %v2156_v47 = vpop.eup %2155  ;;  %v434_v14 = vsub.f32 1.0, %v2154_v46 }
 0x3b6   :  { %v2158_v53 = vpop.eup %2157  ;;  %v432_v19 = vsub.f32 1.0, %v2156_v47 }
 0x3b7   :  { %v2160_v54 = vpop.eup %2159  ;;  %v433_v33 = vsub.f32 1.0, %v2158_v53  ;;  %v469_v36 = vmul.f32 %v2158_v53, %v461_v31 }
 0x3b8   :  { %v435_v30 = vsub.f32 1.0, %v2160_v54  ;;  %v471_v34 = vmul.f32 %v2160_v54, %v463_v26 }
 0x405   :  { %v397_v49 = vpop.permute.xlu0 %396  ;;  %v393_v50 = vpop.permute.xlu1 %392 }
 0x406   :  { %v406_v52 = vmul.f32 %v2154_v46, %v397_v49  ;;  %v404_v51 = vmul.f32 %v2156_v47, %v393_v50 }
 0x408   :  { %416 = vrot.lane.b32.xlu0 %v406_v52, %s2319_s28  ;;  %412 = vrot.lane.b32.xlu1 %v404_v51, %s2319_s28 }
 0x409   :  { %v399_v55 = vpop.permute.xlu0 %398  ;;  %v395_v56 = vpop.permute.xlu1 %394 }
 0x40a   :  { %v407_v57 = vmul.f32 %v2160_v54, %v399_v55  ;;  %v405_v58 = vmul.f32 %v2158_v53, %v395_v56 }
 0x40c   :  { %418 = vrot.lane.b32.xlu0 %v407_v57, %s2319_s28  ;;  %414 = vrot.lane.b32.xlu1 %v405_v58, %s2319_s28 }
 0x47a   :  { %v417_v59 = vpop.permute.xlu0 %416  ;;  %v413_v60 = vpop.permute.xlu1 %412 }
 0x47b   :  { %v426_v61 = vadd.f32 %v417_v59, %v299_v16  ;;  %v424_v62 = vadd.f32 %v413_v60, %v297_v17  ;;  %v460_v16 = vrot.slane %v2471_v45, 7 }
 0x47d   :  { %2161 = vtanh.f32 %v426_v61 }
 0x47e   :  { %2163 = vtanh.f32 %v424_v62  ;;  %v419_v63 = vpop.permute.xlu0 %418  ;;  %v415_v3 = vpop.permute.xlu1 %414 }
 0x47f   :  { %v427_v5 = vadd.f32 %v419_v63, %v300_v24  ;;  %v425_v7 = vadd.f32 %v415_v3, %v298_v20  ;;  %v470_v20 = vmul.f32 %v2154_v46, %v462_v13  ;;  %v468_v24 = vmul.f32 %v2156_v47, %v460_v16  ;;  %v520_v13 = vld [vmem:[%s3361_s0 + $0x8] sm:$0x2] }
 0x480   :  { %v2581_v16 = vrot.slane %v2408_v15, 6 }
 0x481   :  { %2165 = vtanh.f32 %v427_v5 }
 0x482   :  { %2167 = vtanh.f32 %v425_v7 }
 0x48a   :  { %v2162_v8 = vpop.eup %2161 }
 0x48b   :  { %v2164_v9 = vpop.eup %2163  ;;  %444 = vrot.lane.b32.xlu0 %v2162_v8, %s2321_s16 }
 0x48c   :  { %440 = vrot.lane.b32.xlu1 %v2164_v9, %s2321_s16  ;;  %v519_v9 = vld [vmem:[%s3361_s0 + $0x4] sm:$0x2] }
 0x48e   :  { %v2166_v10 = vpop.eup %2165 }
 0x48f   :  { %v2168_v11 = vpop.eup %2167  ;;  %446 = vrot.lane.b32.xlu0 %v2166_v10, %s2321_s16  ;;  %v518_v10 = vld [vmem:[%s3361_s0] sm:$0x2] }
 0x490   :  { %442 = vrot.lane.b32.xlu1 %v2168_v11, %s2321_s16  ;;  %v523_v11 = vunpack.c.l.bf16 %v519_v9 }
 0x4fd   :  { %v445_v17 = vpop.permute.xlu0 %444 }
 0x4fe   :  { %v454_v21 = vmul.f32 %v445_v17, %v434_v14  ;;  %v441_v22 = vpop.permute.xlu1 %440  ;;  %v522_v14 = vunpack.c.l.bf16 %v518_v10  ;;  %v521_v17 = vld [vmem:[%s3361_s0 + $0xc] sm:$0x2] }
 0x4ff   :  { %v452_v25 = vmul.f32 %v441_v22, %v432_v19  ;;  %v524_v19 = vunpack.c.l.bf16 %v520_v13  ;;  %v525_v22 = vunpack.c.l.bf16 %v521_v17 }
 0x500   :  { %v2526_v29 = vadd.f32 %v470_v20, %v454_v21  ;;  %v529_v20 = vadd.f32 %v523_v11, %v2506_v12  ;;  %v528_v21 = vadd.f32 %v2581_v16, %v522_v14 }
 0x501   :  { %v2529_v32 = vadd.f32 %v468_v24, %v452_v25  ;;  %v447_v38 = vpop.permute.xlu0 %446  ;;  %v530_v24 = vadd.f32 %v524_v19, %v2408_v15 }
 0x502   :  { %v2533_v45 = vpack.c.bf16 %v2526_v29, %v2526_v29  ;;  %v455_v35 = vmul.f32 %v447_v38, %v435_v30  ;;  %v443_v4 = vpop.permute.xlu1 %442  ;;  %v531_v30 = vadd.f32 %v525_v22, %v2417_v18 }
 0x503   :  { %v2537_v39 = vpack.c.bf16 %v2529_v32, %v2529_v32  ;;  %v453_v40 = vmul.f32 %v443_v4, %v433_v33 }
 0x504   :  { %v2539_v43 = vadd.f32 %v471_v34, %v455_v35  ;;  %v486_v46 = vunpack.c.l.b16 %v2533_v45 }
 0x505   :  { %v484_v27 = vunpack.c.l.b16 %v2537_v39  ;;  %v2542_v44 = vadd.f32 %v469_v36, %v453_v40 }
 0x506   :  { %v2547_v47 = vpack.c.bf16 %v2539_v43, %v2539_v43  ;;  %v534_v53 = vrot.slane %v486_v46, 7 }
 0x507   :  { %v2551_v49 = vpack.c.bf16 %v2542_v44, %v2542_v44  ;;  %v532_v52 = vrot.slane %v484_v27, 1 }
 0x508   :  { %v487_v50 = vunpack.c.l.b16 %v2547_v47 }
 0x509   :  { %v485_v51 = vunpack.c.l.b16 %v2551_v49 }
 0x50a   :  { %v536_v54 = vrot.slane %v487_v50, 6 }
 0x50b   :  { %v533_v55 = vsel %vm302_vm3, %v485_v51, %v532_v52 }
 0x50c   :  { %v535_v56 = vsel %vm305_vm4, %v534_v53, %v533_v55 }
 0x50d   :  { %v537_v57 = vsel %vm308_vm5, %v536_v54, %v535_v56 }
 0x50e   :  { %v538_v58 = vpack.c.b16 %v537_v57, %v537_v57 }
 0x510   :  { %539 = vrot.lane.b32.xlu1 %v538_v58, %s2321_s16 }
 0x582   :  { %v540_v59 = vpop.permute.xlu1 %539 }
 0x583   :  { %2071 = vmatmul.mubr.msk.bf16.vlgmr.msra.gmra.mxu0 %vm76_vm2, %v540_v59 }
 0x584   :  { %2083 = vmatpush3.bf16.msra.mxu0 %v2361_v1  ;;  %2086 = vmatprep.mubr.msk.bf16.mxu0 %vm2318_vm0, %v2317_v0 }
 0x585   :  { %2084 = vmatprep.subr.bf16.mxu0 %v2317_v0 }
 0x588   :  { %2085 = vmatpush3.bf16.msra.mxu0 %v2372_v2 }
 0x589   :  { %2098 = vmatprep.subr.bf16.mxu0 %v2317_v0 }
 0x643   :  { %v578_v60 = vpop.f32.mrf.mxu0 }
 0x644   :  { %v579_v61 = vadd.f32 %v2398_v6, %v578_v60 }
 0x645   :  { %v2072_v62 = vpop.f32.mrf.mxu0 }
 0x646   :  { %v586_v63 = vrot.slane %v579_v61, 7  ;;  %v585_v3 = vrot.slane %v579_v61, 6  ;;  %v587_v8 = vrot.slane %v579_v61, 1  ;;  %v594_v31 = vadd.f32 %v579_v61, %v530_v24 }
 0x647   :  { %v581_v5 = vpop.f32.mrf.mxu0 }
 0x648   :  { %622 = vrot.lane.b32.xlu1 %v586_v63, %s2319_s28  ;;  %620 = vrot.lane.b32.xlu0 %v585_v3, %s2319_s28  ;;  %v593_v25 = vadd.f32 %v586_v63, %v529_v20  ;;  %v592_v26 = vadd.f32 %v585_v3, %v528_v21  ;;  %v595_v34 = vadd.f32 %v587_v8, %v531_v30  ;;  %v1943_v35 = vmul.f32 -1.442695, %v594_v31 }
 0x649   :  { %v2073_v7 = vpop.f32.mrf.mxu0 }
 0x64a   :  { %v1942_v38 = vmul.f32 -1.442695, %v593_v25  ;;  %v1941_v33 = vmul.f32 -1.442695, %v592_v26  ;;  %v1944_v4 = vmul.f32 -1.442695, %v595_v34 }
 0x64c   :  { %624 = vrot.lane.b32.xlu1 %v579_v61, %s2319_s28  ;;  %626 = vrot.lane.b32.xlu0 %v587_v8, %s2319_s28  ;;  %2169 = vpow2.f32 %v1942_v38 }
 0x64d   :  { %2171 = vpow2.f32 %v1941_v33 }
 0x64e   :  { %2173 = vpow2.f32 %v1943_v35 }
 0x64f   :  { %2175 = vpow2.f32 %v1944_v4 }
 0x659   :  { %v2170_v36 = vpop.eup %2169 }
 0x65a   :  { %v2172_v40 = vpop.eup %2171  ;;  %v609_v27 = vadd.f32 1.0, %v2170_v36  ;;  %v690_v36 = vrot.slane %v2526_v29, 7 }
 0x65b   :  { %v2174_v46 = vpop.eup %2173  ;;  %v608_v50 = vadd.f32 1.0, %v2172_v40 }
 0x65c   :  { %v2176_v52 = vpop.eup %2175  ;;  %v610_v51 = vadd.f32 1.0, %v2174_v46  ;;  %2177 = vrcp.f32 %v609_v27  ;;  %v691_v46 = vrot.slane %v2539_v43, 7 }
 0x65d   :  { %2179 = vrcp.f32 %v608_v50  ;;  %v611_v53 = vadd.f32 1.0, %v2176_v52 }
 0x65e   :  { %2181 = vrcp.f32 %v610_v51 }
 0x65f   :  { %2183 = vrcp.f32 %v611_v53 }
 0x669   :  { %v2178_v54 = vpop.eup %2177 }
 0x66a   :  { %v2180_v55 = vpop.eup %2179 }
 0x66b   :  { %v2182_v60 = vpop.eup %2181  ;;  %v660_v31 = vsub.f32 1.0, %v2180_v55 }
 0x66c   :  { %v2184_v61 = vpop.eup %2183  ;;  %v662_v27 = vsub.f32 1.0, %v2182_v60  ;;  %v698_v51 = vmul.f32 %v2182_v60, %v690_v36 }
 0x66d   :  { %v663_v52 = vsub.f32 1.0, %v2184_v61  ;;  %v699_v29 = vmul.f32 %v2184_v61, %v691_v46 }
 0x6ba   :  { %v623_v56 = vpop.permute.xlu1 %622  ;;  %v621_v57 = vpop.permute.xlu0 %620 }
 0x6bb   :  { %v633_v58 = vmul.f32 %v2178_v54, %v623_v56  ;;  %v632_v59 = vmul.f32 %v2180_v55, %v621_v57 }
 0x6bd   :  { %642 = vrot.lane.b32.xlu1 %v633_v58, %s2319_s28  ;;  %640 = vrot.lane.b32.xlu0 %v632_v59, %s2319_s28 }
 0x6be   :  { %v625_v62 = vpop.permute.xlu1 %624  ;;  %v627_v63 = vpop.permute.xlu0 %626 }
 0x6bf   :  { %v634_v3 = vmul.f32 %v2182_v60, %v625_v62  ;;  %v635_v5 = vmul.f32 %v2184_v61, %v627_v63 }
 0x6c1   :  { %644 = vrot.lane.b32.xlu1 %v634_v3, %s2319_s28  ;;  %646 = vrot.lane.b32.xlu0 %v635_v5, %s2319_s28 }
 0x72f   :  { %v643_v7 = vpop.permute.xlu1 %642  ;;  %v641_v8 = vpop.permute.xlu0 %640 }
 0x730   :  { %v653_v9 = vadd.f32 %v643_v7, %v529_v20  ;;  %v652_v10 = vadd.f32 %v641_v8, %v528_v21  ;;  %v689_v20 = vrot.slane %v2542_v44, 7  ;;  %v661_v21 = vsub.f32 1.0, %v2178_v54 }
 0x732   :  { %2185 = vtanh.f32 %v653_v9  ;;  %v697_v38 = vmul.f32 %v2178_v54, %v689_v20 }
 0x733   :  { %2187 = vtanh.f32 %v652_v10  ;;  %v645_v11 = vpop.permute.xlu1 %644  ;;  %v647_v13 = vpop.permute.xlu0 %646 }
 0x734   :  { %v654_v14 = vadd.f32 %v645_v11, %v530_v24  ;;  %v655_v17 = vadd.f32 %v647_v13, %v531_v30  ;;  %v688_v24 = vrot.slane %v2529_v32, 7 }
 0x736   :  { %2189 = vtanh.f32 %v654_v14  ;;  %v696_v35 = vmul.f32 %v2180_v55, %v688_v24  ;;  %v750_v24 = vld [vmem:[%s3361_s0 + $0xc] sm:$0x2] }
 0x737   :  { %2191 = vtanh.f32 %v655_v17 }
 0x73f   :  { %v2186_v19 = vpop.eup %2185 }
 0x740   :  { %v2188_v22 = vpop.eup %2187  ;;  %670 = vrot.lane.b32.xlu1 %v2186_v19, %s2321_s16 }
 0x741   :  { %668 = vrot.lane.b32.xlu0 %v2188_v22, %s2321_s16 }
 0x743   :  { %v2190_v25 = vpop.eup %2189 }
 0x744   :  { %v2192_v26 = vpop.eup %2191  ;;  %672 = vrot.lane.b32.xlu1 %v2190_v25, %s2321_s16 }
 0x745   :  { %674 = vrot.lane.b32.xlu0 %v2192_v26, %s2321_s16 }
 0x7b2   :  { %v671_v30 = vpop.permute.xlu1 %670 }
 0x7b3   :  { %v681_v33 = vmul.f32 %v671_v30, %v661_v21  ;;  %v669_v34 = vpop.permute.xlu0 %668 }
 0x7b4   :  { %v680_v4 = vmul.f32 %v669_v34, %v660_v31  ;;  %v2656_v31 = vrot.slane %v2408_v15, 5 }
 0x7b5   :  { %v2601_v40 = vadd.f32 %v697_v38, %v681_v33  ;;  %v749_v38 = vld [vmem:[%s3361_s0 + $0x8] sm:$0x2]  ;;  %v754_v33 = vunpack.c.l.bf16 %v750_v24 }
 0x7b6   :  { %v2604_v50 = vadd.f32 %v696_v35, %v680_v4  ;;  %v673_v44 = vpop.permute.xlu1 %672  ;;  %v753_v4 = vunpack.c.l.bf16 %v749_v38 }
 0x7b7   :  { %v2608_v32 = vpack.c.bf16 %v2601_v40, %v2601_v40  ;;  %v682_v53 = vmul.f32 %v673_v44, %v662_v27  ;;  %v675_v54 = vpop.permute.xlu0 %674  ;;  %v760_v36 = vadd.f32 %v754_v33, %v2408_v15 }
 0x7b8   :  { %v2612_v55 = vpack.c.bf16 %v2604_v50, %v2604_v50  ;;  %v683_v56 = vmul.f32 %v675_v54, %v663_v52  ;;  %v759_v44 = vadd.f32 %v753_v4, %v2506_v12 }
 0x7b9   :  { %v713_v57 = vunpack.c.l.b16 %v2608_v32  ;;  %v2615_v43 = vadd.f32 %v698_v51, %v682_v53 }
 0x7ba   :  { %v712_v58 = vunpack.c.l.b16 %v2612_v55  ;;  %v2618_v59 = vadd.f32 %v699_v29, %v683_v56 }
 0x7bb   :  { %v762_v62 = vrot.slane %v713_v57, 1  ;;  %v2622_v60 = vpack.c.bf16 %v2615_v43, %v2615_v43 }
 0x7bc   :  { %v761_v63 = vrot.slane %v712_v58, 2  ;;  %v2626_v3 = vpack.c.bf16 %v2618_v59, %v2618_v59 }
 0x7bd   :  { %v714_v61 = vunpack.c.l.b16 %v2622_v60 }
 0x7be   :  { %v715_v5 = vunpack.c.l.b16 %v2626_v3  ;;  %v763_v7 = vsel %vm302_vm3, %v762_v62, %v761_v63 }
 0x7bf   :  { %v764_v8 = vsel %vm305_vm4, %v714_v61, %v763_v7 }
 0x7c0   :  { %v765_v9 = vrot.slane %v715_v5, 7 }
 0x7c2   :  { %v766_v10 = vsel %vm308_vm5, %v765_v9, %v764_v8 }
 0x7c3   :  { %v767_v11 = vpack.c.b16 %v766_v10, %v766_v10 }
 0x7c5   :  { %768 = vrot.lane.b32.xlu0 %v767_v11, %s2321_s16 }
 0x837   :  { %v769_v13 = vpop.permute.xlu0 %768 }
 0x838   :  { %2079 = vmatmul.mubr.msk.bf16.vlgmr.msra.gmra.mxu1 %vm76_vm2, %v769_v13 }
 0x839   :  { %2091 = vmatpush3.bf16.msra.mxu1 %v2361_v1  ;;  %2094 = vmatprep.mubr.msk.bf16.mxu1 %vm2318_vm0, %v2317_v0 }
 0x83a   :  { %2092 = vmatprep.subr.bf16.mxu1 %v2317_v0 }
 0x83d   :  { %2093 = vmatpush3.bf16.msra.mxu1 %v2372_v2  ;;  %v748_v2 = vld [vmem:[%s3361_s0 + $0x4] sm:$0x2] }
 0x83e   :  { %2106 = vmatprep.subr.bf16.mxu1 %v2317_v0  ;;  %v752_v21 = vunpack.c.l.bf16 %v748_v2 }
 0x840   :  { %v758_v34 = vadd.f32 %v752_v21, %v2581_v16 }
 0x8f8   :  { %v807_v14 = vpop.f32.mrf.mxu1 }
 0x8f9   :  { %v808_v17 = vadd.f32 %v2398_v6, %v807_v14  ;;  %v747_v6 = vld [vmem:[%s3361_s0] sm:$0x2] }
 0x8fa   :  { %v2080_v19 = vpop.f32.mrf.mxu1  ;;  %v751_v30 = vunpack.c.l.bf16 %v747_v6 }
 0x8fb   :  { %v815_v22 = vrot.slane %v808_v17, 6  ;;  %v814_v25 = vrot.slane %v808_v17, 5  ;;  %v816_v20 = vrot.slane %v808_v17, 7  ;;  %v824_v52 = vadd.f32 %v808_v17, %v760_v36 }
 0x8fc   :  { %v810_v26 = vpop.f32.mrf.mxu1  ;;  %v757_v35 = vadd.f32 %v2656_v31, %v751_v30 }
 0x8fd   :  { %851 = vrot.lane.b32.xlu0 %v815_v22, %s2319_s28  ;;  %849 = vrot.lane.b32.xlu1 %v814_v25, %s2319_s28  ;;  %v822_v27 = vadd.f32 %v815_v22, %v758_v34  ;;  %v823_v54 = vadd.f32 %v816_v20, %v759_v44  ;;  %v1953_v29 = vmul.f32 -1.442695, %v824_v52 }
 0x8fe   :  { %v2081_v1 = vpop.f32.mrf.mxu1  ;;  %v821_v46 = vadd.f32 %v814_v25, %v757_v35 }
 0x8ff   :  { %v1951_v51 = vmul.f32 -1.442695, %v822_v27  ;;  %v1952_v56 = vmul.f32 -1.442695, %v823_v54 }
 0x900   :  { %v1950_v53 = vmul.f32 -1.442695, %v821_v46 }
 0x901   :  { %855 = vrot.lane.b32.xlu0 %v808_v17, %s2319_s28  ;;  %853 = vrot.lane.b32.xlu1 %v816_v20, %s2319_s28  ;;  %2193 = vpow2.f32 %v1951_v51 }
 0x902   :  { %2195 = vpow2.f32 %v1950_v53 }
 0x903   :  { %2197 = vpow2.f32 %v1953_v29 }
 0x904   :  { %2199 = vpow2.f32 %v1952_v56 }
 0x90e   :  { %v2194_v57 = vpop.eup %2193 }
 0x90f   :  { %v2196_v58 = vpop.eup %2195  ;;  %v838_v62 = vadd.f32 1.0, %v2194_v57 }
 0x910   :  { %v2198_v63 = vpop.eup %2197  ;;  %v837_v61 = vadd.f32 1.0, %v2196_v58  ;;  %v920_v58 = vrot.slane %v2618_v59, 7 }
 0x911   :  { %v2200_v15 = vpop.eup %2199  ;;  %v840_v5 = vadd.f32 1.0, %v2198_v63  ;;  %2201 = vrcp.f32 %v838_v62 }
 0x912   :  { %2203 = vrcp.f32 %v837_v61  ;;  %v839_v7 = vadd.f32 1.0, %v2200_v15  ;;  %v919_v61 = vrot.slane %v2615_v43, 7 }
 0x913   :  { %2205 = vrcp.f32 %v840_v5 }
 0x914   :  { %2207 = vrcp.f32 %v839_v7 }
 0x91e   :  { %v2202_v8 = vpop.eup %2201 }
 0x91f   :  { %v2204_v9 = vpop.eup %2203 }
 0x920   :  { %v2206_v17 = vpop.eup %2205  ;;  %v889_v51 = vsub.f32 1.0, %v2204_v9 }
 0x921   :  { %v2208_v19 = vpop.eup %2207  ;;  %v892_v63 = vsub.f32 1.0, %v2206_v17  ;;  %v928_v7 = vmul.f32 %v2206_v17, %v920_v58 }
 0x922   :  { %v891_v5 = vsub.f32 1.0, %v2208_v19  ;;  %v927_v59 = vmul.f32 %v2208_v19, %v919_v61 }
 0x96f   :  { %v852_v10 = vpop.permute.xlu0 %851  ;;  %v850_v11 = vpop.permute.xlu1 %849 }
 0x970   :  { %v862_v13 = vmul.f32 %v2202_v8, %v852_v10  ;;  %v861_v14 = vmul.f32 %v2204_v9, %v850_v11 }
 0x972   :  { %871 = vrot.lane.b32.xlu0 %v862_v13, %s2319_s28  ;;  %869 = vrot.lane.b32.xlu1 %v861_v14, %s2319_s28 }
 0x973   :  { %v856_v22 = vpop.permute.xlu0 %855  ;;  %v854_v25 = vpop.permute.xlu1 %853 }
 0x974   :  { %v864_v26 = vmul.f32 %v2206_v17, %v856_v22  ;;  %v863_v1 = vmul.f32 %v2208_v19, %v854_v25 }
 0x976   :  { %875 = vrot.lane.b32.xlu0 %v864_v26, %s2319_s28  ;;  %873 = vrot.lane.b32.xlu1 %v863_v1, %s2319_s28 }
 0x9e4   :  { %v872_v20 = vpop.permute.xlu0 %871  ;;  %v870_v2 = vpop.permute.xlu1 %869 }
 0x9e5   :  { %v882_v6 = vadd.f32 %v872_v20, %v758_v34  ;;  %v881_v21 = vadd.f32 %v870_v2, %v757_v35  ;;  %v918_v34 = vrot.slane %v2601_v40, 7  ;;  %v890_v35 = vsub.f32 1.0, %v2202_v8 }
 0x9e7   :  { %2209 = vtanh.f32 %v882_v6  ;;  %v926_v53 = vmul.f32 %v2202_v8, %v918_v34 }
 0x9e8   :  { %2211 = vtanh.f32 %v881_v21  ;;  %v876_v24 = vpop.permute.xlu0 %875  ;;  %v874_v30 = vpop.permute.xlu1 %873 }
 0x9e9   :  { %v884_v38 = vadd.f32 %v876_v24, %v760_v36  ;;  %v883_v33 = vadd.f32 %v874_v30, %v759_v44  ;;  %v917_v36 = vrot.slane %v2604_v50, 7 }
 0x9eb   :  { %2213 = vtanh.f32 %v884_v38  ;;  %v925_v56 = vmul.f32 %v2204_v9, %v917_v36 }
 0x9ec   :  { %2215 = vtanh.f32 %v883_v33  ;;  %v2713_v33 = vld [vmem:[%s3357_s2 + $0x8] sm:$0xff]  }
 0x9f4   :  { %v2210_v4 = vpop.eup %2209 }
 0x9f5   :  { %v2212_v27 = vpop.eup %2211  ;;  %899 = vrot.lane.b32.xlu0 %v2210_v4, %s2321_s16  ;;  %v2722_v4 = vld [vmem:[%s3357_s2] sm:$0xff]  }
 0x9f6   :  { %897 = vrot.lane.b32.xlu1 %v2212_v27, %s2321_s16 }
 0x9f8   :  { %v2214_v46 = vpop.eup %2213 }
 0x9f9   :  { %v2216_v52 = vpop.eup %2215  ;;  %903 = vrot.lane.b32.xlu0 %v2214_v46, %s2321_s16  ;;  %v2728_v46 = vld [vmem:[%s3359_s3] ss:$0 sm:$0xff] }
 0x9fa   :  { %901 = vrot.lane.b32.xlu1 %v2216_v52, %s2321_s16 }
 0xa67   :  { %v900_v44 = vpop.permute.xlu0 %899 }
 0xa68   :  { %v910_v54 = vmul.f32 %v900_v44, %v890_v35  ;;  %v898_v29 = vpop.permute.xlu1 %897 }
 0xa69   :  { %v909_v57 = vmul.f32 %v898_v29, %v889_v51  ;;  %v976_v29 = vld [vmem:[%s3361_s0 + $0x4] sm:$0x4] }
 0xa6a   :  { %v2676_v62 = vadd.f32 %v926_v53, %v910_v54 }
 0xa6b   :  { %v2679_v15 = vadd.f32 %v925_v56, %v909_v57  ;;  %v904_v40 = vpop.permute.xlu0 %903  ;;  %v975_v56 = vld [vmem:[%s3361_s0] sm:$0x4]  ;;  %v980_v57 = vunpack.c.l.bf16 %v976_v29 }
 0xa6c   :  { %v2683_v50 = vpack.c.bf16 %v2676_v62, %v2676_v62  ;;  %v912_v8 = vmul.f32 %v904_v40, %v892_v63  ;;  %v902_v10 = vpop.permute.xlu1 %901  ;;  %v979_v58 = vunpack.c.l.bf16 %v975_v56  ;;  %v2316_v63 = vld [vmem:[%s3360_s4] sm:$0xf]  ;;  %v978_v40 = vld [vmem:[%s3361_s0 + $0xc] sm:$0x4] }
 0xa6d   :  { %v2687_v9 = vpack.c.bf16 %v2679_v15, %v2679_v15  ;;  %v911_v11 = vmul.f32 %v902_v10, %v891_v5  ;;  %v2744_v61 = vrot.slane %v2316_v63, 4  ;;  %v977_v5 = vld [vmem:[%s3361_s0 + $0x8] sm:$0x4] }
 0xa6e   :  { %v942_v13 = vunpack.c.l.b16 %v2683_v50  ;;  %v2690_v43 = vadd.f32 %v928_v7, %v912_v8  ;;  %v986_v7 = vadd.f32 %v980_v57, %v2656_v31  ;;  %v982_v8 = vunpack.c.l.bf16 %v978_v40 }
 0xa6f   :  { %v941_v14 = vunpack.c.l.b16 %v2687_v9  ;;  %v2693_v22 = vadd.f32 %v927_v59, %v911_v11  ;;  %v985_v10 = vadd.f32 %v2744_v61, %v979_v58  ;;  %v981_v59 = vunpack.c.l.bf16 %v977_v5 }
 0xa70   :  { %v990_v17 = vrot.slane %v942_v13, 2  ;;  %v2701_v1 = vpack.c.bf16 %v2690_v43, %v2690_v43  ;;  %v988_v13 = vadd.f32 %v982_v8, %v2506_v12 }
 0xa71   :  { %v2697_v25 = vpack.c.bf16 %v2693_v22, %v2693_v22  ;;  %v989_v26 = vrot.slane %v941_v14, 3 }
 0xa72   :  { %v944_v2 = vunpack.c.l.b16 %v2701_v1 }
 0xa73   :  { %v943_v19 = vunpack.c.l.b16 %v2697_v25  ;;  %v991_v6 = vsel %vm302_vm3, %v990_v17, %v989_v26  ;;  %v987_v17 = vadd.f32 %v981_v59, %v2581_v16 }
 0xa75   :  { %v992_v20 = vrot.slane %v943_v19, 1 }
 0xa77   :  { %v993_v21 = vsel %vm305_vm4, %v992_v20, %v991_v6 }
 0xa78   :  { %v994_v24 = vsel %vm308_vm5, %v944_v2, %v993_v21 }
 0xa79   :  { %v995_v30 = vpack.c.b16 %v994_v24, %v994_v24 }
 0xa7b   :  { %996 = vrot.lane.b32.xlu1 %v995_v30, %s2321_s16 }
 0xaed   :  { %v997_v38 = vpop.permute.xlu1 %996 }
 0xaee   :  { %2087 = vmatmul.mubr.msk.bf16.vlgmr.msra.gmra.mxu0 %vm76_vm2, %v997_v38 }
 0xaef   :  { %2099 = vmatpush3.bf16.msra.mxu0 %v2713_v33  ;;  %2102 = vmatprep.mubr.msk.bf16.mxu0 %vm2318_vm0, %v2317_v0 }
 0xaf0   :  { %2100 = vmatprep.subr.bf16.mxu0 %v2317_v0 }
 0xaf3   :  { %2101 = vmatpush3.bf16.msra.mxu0 %v2722_v4 }
 0xbae   :  { %v1035_v27 = vpop.f32.mrf.mxu0 }
 0xbaf   :  { %v1036_v52 = vadd.f32 %v2728_v46, %v1035_v27 }
 0xbb0   :  { %v2088_v34 = vpop.f32.mrf.mxu0 }
 0xbb1   :  { %v1043_v35 = vrot.slane %v1036_v52, 5  ;;  %v1042_v36 = vrot.slane %v1036_v52, 4  ;;  %v1045_v53 = vrot.slane %v1036_v52, 7  ;;  %v1044_v54 = vrot.slane %v1036_v52, 6 }
 0xbb2   :  { %v1038_v44 = vpop.f32.mrf.mxu0 }
 0xbb3   :  { %1080 = vrot.lane.b32.xlu1 %v1043_v35, %s2319_s28  ;;  %1078 = vrot.lane.b32.xlu0 %v1042_v36, %s2319_s28  ;;  %v1051_v11 = vadd.f32 %v1043_v35, %v986_v7  ;;  %v1050_v14 = vadd.f32 %v1042_v36, %v985_v10  ;;  %v1053_v19 = vadd.f32 %v1045_v53, %v988_v13 }
 0xbb4   :  { %v2089_v51 = vpop.f32.mrf.mxu0  ;;  %v1052_v2 = vadd.f32 %v1044_v54, %v987_v17 }
 0xbb5   :  { %v1960_v26 = vmul.f32 -1.442695, %v1051_v11  ;;  %v1959_v20 = vmul.f32 -1.442695, %v1050_v14  ;;  %v1962_v6 = vmul.f32 -1.442695, %v1053_v19 }
 0xbb6   :  { %v1961_v21 = vmul.f32 -1.442695, %v1052_v2 }
 0xbb7   :  { %1084 = vrot.lane.b32.xlu1 %v1045_v53, %s2319_s28  ;;  %1082 = vrot.lane.b32.xlu0 %v1044_v54, %s2319_s28  ;;  %2217 = vpow2.f32 %v1960_v26 }
 0xbb8   :  { %2219 = vpow2.f32 %v1959_v20 }
 0xbb9   :  { %2221 = vpow2.f32 %v1962_v6 }
 0xbba   :  { %2223 = vpow2.f32 %v1961_v21 }
 0xbc4   :  { %v2218_v24 = vpop.eup %2217 }
 0xbc5   :  { %v2220_v30 = vpop.eup %2219  ;;  %v1067_v38 = vadd.f32 1.0, %v2218_v24 }
 0xbc6   :  { %v2222_v27 = vpop.eup %2221  ;;  %v1066_v52 = vadd.f32 1.0, %v2220_v30 }
 0xbc7   :  { %v2224_v34 = vpop.eup %2223  ;;  %2225 = vrcp.f32 %v1067_v38  ;;  %v1069_v12 = vadd.f32 1.0, %v2222_v27 }
 0xbc8   :  { %2227 = vrcp.f32 %v1066_v52  ;;  %v1068_v35 = vadd.f32 1.0, %v2224_v34 }
 0xbc9   :  { %2229 = vrcp.f32 %v1069_v12 }
 0xbca   :  { %2231 = vrcp.f32 %v1068_v35 }
 0xbd4   :  { %v2226_v36 = vpop.eup %2225 }
 0xbd5   :  { %v2228_v44 = vpop.eup %2227 }
 0xbd6   :  { %v2230_v56 = vpop.eup %2229  ;;  %v1118_v38 = vsub.f32 1.0, %v2228_v44 }
 0xbd7   :  { %v2232_v57 = vpop.eup %2231 }
 0xc25   :  { %v1081_v51 = vpop.permute.xlu1 %1080  ;;  %v1079_v53 = vpop.permute.xlu0 %1078 }
 0xc26   :  { %v1091_v54 = vmul.f32 %v2226_v36, %v1081_v51  ;;  %v1090_v29 = vmul.f32 %v2228_v44, %v1079_v53  ;;  %v1149_v51 = vrot.slane %v2690_v43, 7 }
 0xc28   :  { %1100 = vrot.lane.b32.xlu1 %v1091_v54, %s2319_s28  ;;  %1098 = vrot.lane.b32.xlu0 %v1090_v29, %s2319_s28  ;;  %v1121_v54 = vsub.f32 1.0, %v2230_v56  ;;  %v1148_v29 = vrot.slane %v2693_v22, 7 }
 0xc29   :  { %v1085_v58 = vpop.permute.xlu1 %1084  ;;  %v1083_v63 = vpop.permute.xlu0 %1082 }
 0xc2a   :  { %v1093_v40 = vmul.f32 %v2230_v56, %v1085_v58  ;;  %v1092_v5 = vmul.f32 %v2232_v57, %v1083_v63  ;;  %v1120_v63 = vsub.f32 1.0, %v2232_v57  ;;  %v1156_v43 = vmul.f32 %v2232_v57, %v1148_v29 }
 0xc2c   :  { %1104 = vrot.lane.b32.xlu1 %v1093_v40, %s2319_s28  ;;  %1102 = vrot.lane.b32.xlu0 %v1092_v5, %s2319_s28 }
 0xc9a   :  { %v1101_v8 = vpop.permute.xlu1 %1100  ;;  %v1099_v59 = vpop.permute.xlu0 %1098 }
 0xc9b   :  { %v1111_v11 = vadd.f32 %v1101_v8, %v986_v7  ;;  %v1110_v14 = vadd.f32 %v1099_v59, %v985_v10  ;;  %v1147_v7 = vrot.slane %v2676_v62, 7  ;;  %v1119_v10 = vsub.f32 1.0, %v2226_v36 }
 0xc9d   :  { %2233 = vtanh.f32 %v1111_v11  ;;  %v1155_v27 = vmul.f32 %v2226_v36, %v1147_v7  ;;  %v1157_v36 = vmul.f32 %v2230_v56, %v1149_v51 }
 0xc9e   :  { %2235 = vtanh.f32 %v1110_v14  ;;  %v1105_v26 = vpop.permute.xlu1 %1104  ;;  %v1103_v19 = vpop.permute.xlu0 %1102 }
 0xc9f   :  { %v1113_v20 = vadd.f32 %v1105_v26, %v988_v13  ;;  %v1112_v2 = vadd.f32 %v1103_v19, %v987_v17  ;;  %v1146_v13 = vrot.slane %v2679_v15, 7 }
 0xca1   :  { %2237 = vtanh.f32 %v1113_v20  ;;  %v1154_v12 = vmul.f32 %v2228_v44, %v1146_v13 }
 0xca2   :  { %2239 = vtanh.f32 %v1112_v2 }
 0xcaa   :  { %v2234_v6 = vpop.eup %2233 }
 0xcab   :  { %v2236_v21 = vpop.eup %2235  ;;  %1128 = vrot.lane.b32.xlu1 %v2234_v6, %s2321_s16 }
 0xcac   :  { %1126 = vrot.lane.b32.xlu0 %v2236_v21, %s2321_s16 }
 0xcae   :  { %v2238_v24 = vpop.eup %2237 }
 0xcaf   :  { %v2240_v30 = vpop.eup %2239  ;;  %1132 = vrot.lane.b32.xlu1 %v2238_v24, %s2321_s16 }
 0xcb0   :  { %1130 = vrot.lane.b32.xlu0 %v2240_v30, %s2321_s16 }
 0xd1d   :  { %v1129_v17 = vpop.permute.xlu1 %1128 }
 0xd1e   :  { %v1139_v52 = vmul.f32 %v1129_v17, %v1119_v10  ;;  %v1127_v34 = vpop.permute.xlu0 %1126 }
 0xd1f   :  { %v1138_v35 = vmul.f32 %v1127_v34, %v1118_v38 }
 0xd20   :  { %v2767_v53 = vadd.f32 %v1155_v27, %v1139_v52 }
 0xd21   :  { %v2770_v58 = vadd.f32 %v1154_v12, %v1138_v35  ;;  %v1133_v62 = vpop.permute.xlu1 %1132 }
 0xd22   :  { %v2774_v15 = vpack.c.bf16 %v2767_v53, %v2767_v53  ;;  %v1141_v40 = vmul.f32 %v1133_v62, %v1121_v54  ;;  %v1131_v5 = vpop.permute.xlu0 %1130  ;;  %v1208_v62 = vld [vmem:[%s3361_s0 + $0xc] sm:$0x4] }
 0xd23   :  { %v2778_v44 = vpack.c.bf16 %v2770_v58, %v2770_v58  ;;  %v1140_v8 = vmul.f32 %v1131_v5, %v1120_v63  ;;  %v1207_v63 = vld [vmem:[%s3361_s0 + $0x8] sm:$0x4] }
 0xd24   :  { %v1171_v59 = vunpack.c.l.b16 %v2774_v15  ;;  %v2781_v22 = vadd.f32 %v1157_v36, %v1141_v40  ;;  %v1212_v40 = vunpack.c.l.bf16 %v1208_v62 }
 0xd25   :  { %v1170_v11 = vunpack.c.l.b16 %v2778_v44  ;;  %v2784_v14 = vadd.f32 %v1156_v43, %v1140_v8  ;;  %v1211_v43 = vunpack.c.l.bf16 %v1207_v63 }
 0xd26   :  { %v2788_v26 = vpack.c.bf16 %v2781_v22, %v2781_v22  ;;  %v1218_v19 = vrot.slane %v1171_v59, 3  ;;  %v1216_v59 = vadd.f32 %v1212_v40, %v2581_v16 }
 0xd27   :  { %v2792_v56 = vpack.c.bf16 %v2784_v14, %v2784_v14  ;;  %v1217_v20 = vrot.slane %v1170_v11, 4 }
 0xd28   :  { %v1173_v57 = vunpack.c.l.b16 %v2788_v26 }
 0xd29   :  { %v1172_v2 = vunpack.c.l.b16 %v2792_v56  ;;  %v1219_v24 = vsel %vm302_vm3, %v1218_v19, %v1217_v20  ;;  %v1215_v19 = vadd.f32 %v1211_v43, %v2656_v31 }
 0xd2a   :  { %v1222_v6 = vrot.slane %v1173_v57, 1 }
 0xd2b   :  { %v1220_v21 = vrot.slane %v1172_v2, 2 }
 0xd2d   :  { %v1221_v30 = vsel %vm305_vm4, %v1220_v21, %v1219_v24 }
 0xd2e   :  { %v1223_v7 = vsel %vm308_vm5, %v1222_v6, %v1221_v30 }
 0xd2f   :  { %v1224_v10 = vpack.c.b16 %v1223_v7, %v1223_v7 }
 0xd31   :  { %1225 = vrot.lane.b32.xlu0 %v1224_v10, %s2321_s16 }
 0xda3   :  { %v1226_v13 = vpop.permute.xlu0 %1225 }
 0xda4   :  { %2095 = vmatmul.mubr.msk.bf16.vlgmr.msra.gmra.mxu1 %vm76_vm2, %v1226_v13 }
 0xda5   :  { %2107 = vmatpush3.bf16.msra.mxu1 %v2713_v33  ;;  %2110 = vmatprep.mubr.msk.bf16.mxu1 %vm2318_vm0, %v2317_v0  ;;  %vm1648_vm0 = vsmask.f32 3328 }
 0xda6   :  { %2108 = vmatprep.subr.bf16.mxu1 %v2317_v0  ;;  %v1206_v0 = vld [vmem:[%s3361_s0 + $0x4] sm:$0x4]  ;;  %vm3164_vm1 = vmand %vm1647_vm15, %vm1648_vm0 }
 0xda7   :  { %v1210_v54 = vunpack.c.l.bf16 %v1206_v0 }
 0xda9   :  { %2109 = vmatpush3.bf16.msra.mxu1 %v2722_v4  ;;  %v1205_v4 = vld [vmem:[%s3361_s0] sm:$0x4]  ;;  %v1214_v36 = vadd.f32 %v1210_v54, %v2744_v61 }
 0xdaa   :  { %v1209_v29 = vunpack.c.l.bf16 %v1205_v4 }
 0xdac   :  { %v1213_v5 = vadd.f32 %v1209_v29, %v2431_v28 }
 0xe64   :  { %v1264_v17 = vpop.f32.mrf.mxu1 }
 0xe65   :  { %v1265_v38 = vadd.f32 %v2728_v46, %v1264_v17 }
 0xe66   :  { %v2096_v27 = vpop.f32.mrf.mxu1 }
 0xe67   :  { %v1272_v52 = vrot.slane %v1265_v38, 4  ;;  %v1271_v34 = vrot.slane %v1265_v38, 3  ;;  %v1274_v33 = vrot.slane %v1265_v38, 6  ;;  %v1273_v51 = vrot.slane %v1265_v38, 5 }
 0xe68   :  { %v1267_v12 = vpop.f32.mrf.mxu1 }
 0xe69   :  { %1309 = vrot.lane.b32.xlu0 %v1272_v52, %s2319_s28  ;;  %1307 = vrot.lane.b32.xlu1 %v1271_v34, %s2319_s28  ;;  %v1280_v8 = vadd.f32 %v1272_v52, %v1214_v36  ;;  %v1279_v11 = vadd.f32 %v1271_v34, %v1213_v5  ;;  %v1282_v57 = vadd.f32 %v1274_v33, %v1216_v59 }
 0xe6a   :  { %v2097_v35 = vpop.f32.mrf.mxu1  ;;  %v1281_v6 = vadd.f32 %v1273_v51, %v1215_v19 }
 0xe6b   :  { %v1969_v20 = vmul.f32 -1.442695, %v1280_v8  ;;  %v1968_v2 = vmul.f32 -1.442695, %v1279_v11  ;;  %v1971_v21 = vmul.f32 -1.442695, %v1282_v57 }
 0xe6c   :  { %v1970_v24 = vmul.f32 -1.442695, %v1281_v6 }
 0xe6d   :  { %1313 = vrot.lane.b32.xlu0 %v1274_v33, %s2319_s28  ;;  %1311 = vrot.lane.b32.xlu1 %v1273_v51, %s2319_s28  ;;  %2241 = vpow2.f32 %v1969_v20 }
 0xe6e   :  { %2243 = vpow2.f32 %v1968_v2 }
 0xe6f   :  { %2245 = vpow2.f32 %v1971_v21 }
 0xe70   :  { %2247 = vpow2.f32 %v1970_v24 }
 0xe7a   :  { %v2242_v30 = vpop.eup %2241 }
 0xe7b   :  { %v2244_v7 = vpop.eup %2243  ;;  %v1296_v10 = vadd.f32 1.0, %v2242_v30 }
 0xe7c   :  { %v2246_v13 = vpop.eup %2245  ;;  %v1295_v17 = vadd.f32 1.0, %v2244_v7 }
 0xe7d   :  { %v2248_v38 = vpop.eup %2247  ;;  %2249 = vrcp.f32 %v1296_v10  ;;  %v1298_v16 = vadd.f32 1.0, %v2246_v13 }
 0xe7e   :  { %2251 = vrcp.f32 %v1295_v17  ;;  %v1297_v27 = vadd.f32 1.0, %v2248_v38 }
 0xe7f   :  { %2253 = vrcp.f32 %v1298_v16 }
 0xe80   :  { %2255 = vrcp.f32 %v1297_v27 }
 0xe8a   :  { %v2250_v52 = vpop.eup %2249 }
 0xe8b   :  { %v2252_v34 = vpop.eup %2251 }
 0xe8c   :  { %v2254_v0 = vpop.eup %2253  ;;  %v1347_v10 = vsub.f32 1.0, %v2252_v34 }
 0xe8d   :  { %v2256_v4 = vpop.eup %2255 }
 0xedb   :  { %v1310_v12 = vpop.permute.xlu0 %1309  ;;  %v1308_v35 = vpop.permute.xlu1 %1307 }
 0xedc   :  { %v1320_v33 = vmul.f32 %v2250_v52, %v1310_v12  ;;  %v1319_v51 = vmul.f32 %v2252_v34, %v1308_v35  ;;  %v1378_v12 = vrot.slane %v2781_v22, 7 }
 0xede   :  { %1329 = vrot.lane.b32.xlu0 %v1320_v33, %s2319_s28  ;;  %1327 = vrot.lane.b32.xlu1 %v1319_v51, %s2319_s28  ;;  %v1350_v33 = vsub.f32 1.0, %v2254_v0  ;;  %v1377_v51 = vrot.slane %v2784_v14, 7 }
 0xedf   :  { %v1314_v54 = vpop.permute.xlu0 %1313  ;;  %v1312_v29 = vpop.permute.xlu1 %1311 }
 0xee0   :  { %v1322_v62 = vmul.f32 %v2254_v0, %v1314_v54  ;;  %v1321_v63 = vmul.f32 %v2256_v4, %v1312_v29  ;;  %v1349_v29 = vsub.f32 1.0, %v2256_v4  ;;  %v1385_v22 = vmul.f32 %v2256_v4, %v1377_v51  ;;  %v1434_v51 = vld [vmem:[%s3361_s0 + $0x4] sm:$0x8] }
 0xee2   :  { %1333 = vrot.lane.b32.xlu0 %v1322_v62, %s2319_s28  ;;  %1331 = vrot.lane.b32.xlu1 %v1321_v63, %s2319_s28 }
 0xf50   :  { %v1330_v40 = vpop.permute.xlu0 %1329  ;;  %v1328_v43 = vpop.permute.xlu1 %1327 }
 0xf51   :  { %v1340_v8 = vadd.f32 %v1330_v40, %v1214_v36  ;;  %v1339_v11 = vadd.f32 %v1328_v43, %v1213_v5  ;;  %v1376_v36 = vrot.slane %v2767_v53, 7  ;;  %v1348_v5 = vsub.f32 1.0, %v2250_v52 }
 0xf53   :  { %2257 = vtanh.f32 %v1340_v8  ;;  %v1384_v13 = vmul.f32 %v2250_v52, %v1376_v36  ;;  %v1386_v52 = vmul.f32 %v2254_v0, %v1378_v12 }
 0xf54   :  { %2259 = vtanh.f32 %v1339_v11  ;;  %v1334_v20 = vpop.permute.xlu0 %1333  ;;  %v1332_v57 = vpop.permute.xlu1 %1331 }
 0xf55   :  { %v1342_v2 = vadd.f32 %v1334_v20, %v1216_v59  ;;  %v1341_v6 = vadd.f32 %v1332_v57, %v1215_v19  ;;  %v1375_v59 = vrot.slane %v2770_v58, 7 }
 0xf57   :  { %2261 = vtanh.f32 %v1342_v2  ;;  %v1383_v16 = vmul.f32 %v2252_v34, %v1375_v59 }
 0xf58   :  { %2263 = vtanh.f32 %v1341_v6 }
 0xf60   :  { %v2258_v21 = vpop.eup %2257 }
 0xf61   :  { %v2260_v24 = vpop.eup %2259  ;;  %1357 = vrot.lane.b32.xlu0 %v2258_v21, %s2321_s16 }
 0xf62   :  { %1355 = vrot.lane.b32.xlu1 %v2260_v24, %s2321_s16 }
 0xf64   :  { %v2262_v30 = vpop.eup %2261 }
 0xf65   :  { %v2264_v7 = vpop.eup %2263  ;;  %1361 = vrot.lane.b32.xlu0 %v2262_v30, %s2321_s16 }
 0xf66   :  { %1359 = vrot.lane.b32.xlu1 %v2264_v7, %s2321_s16 }
 0xfd3   :  { %v1358_v19 = vpop.permute.xlu0 %1357 }
 0xfd4   :  { %v1368_v17 = vmul.f32 %v1358_v19, %v1348_v5  ;;  %v1356_v38 = vpop.permute.xlu1 %1355 }
 0xfd5   :  { %v1367_v27 = vmul.f32 %v1356_v38, %v1347_v10 }
 0xfd6   :  { %v2838_v35 = vadd.f32 %v1384_v13, %v1368_v17 }
 0xfd7   :  { %v2841_v54 = vadd.f32 %v1383_v16, %v1367_v27  ;;  %v1362_v53 = vpop.permute.xlu0 %1361 }
 0xfd8   :  { %v2845_v58 = vpack.c.bf16 %v2838_v35, %v2838_v35  ;;  %v1370_v62 = vmul.f32 %v1362_v53, %v1350_v33  ;;  %v1360_v63 = vpop.permute.xlu1 %1359  ;;  %v1433_v53 = vld [vmem:[%s3361_s0] sm:$0x8] }
 0xfd9   :  { %v2849_v34 = vpack.c.bf16 %v2841_v54, %v2841_v54  ;;  %v1369_v40 = vmul.f32 %v1360_v63, %v1349_v29  ;;  %v1438_v29 = vunpack.c.l.bf16 %v1434_v51  ;;  %v1435_v63 = vld [vmem:[%s3361_s0 + $0x8] sm:$0x8] }
 0xfda   :  { %v1400_v43 = vunpack.c.l.b16 %v2845_v58  ;;  %v2852_v14 = vadd.f32 %v1386_v52, %v1370_v62  ;;  %v1437_v52 = vunpack.c.l.bf16 %v1433_v53  ;;  %v1436_v62 = vld [vmem:[%s3361_s0 + $0xc] sm:$0x8] }
 0xfdb   :  { %v1399_v8 = vunpack.c.l.b16 %v2849_v34  ;;  %v2855_v11 = vadd.f32 %v1385_v22, %v1369_v40  ;;  %v1442_v22 = vadd.f32 %v1438_v29, %v2431_v28  ;;  %v1440_v40 = vunpack.c.l.bf16 %v1436_v62 }
 0xfdc   :  { %v2859_v20 = vpack.c.bf16 %v2852_v14, %v2852_v14  ;;  %v1446_v57 = vrot.slane %v1400_v43, 4  ;;  %v1441_v43 = vadd.f32 %v1437_v52, %v2424_v23 }
 0xfdd   :  { %v2863_v0 = vpack.c.bf16 %v2855_v11, %v2855_v11  ;;  %v1445_v2 = vrot.slane %v1399_v8, 5  ;;  %v1439_v8 = vunpack.c.l.bf16 %v1435_v63 }
 0xfde   :  { %v1402_v4 = vunpack.c.l.b16 %v2859_v20 }
 0xfdf   :  { %v1401_v6 = vunpack.c.l.b16 %v2863_v0  ;;  %v1447_v30 = vsel %vm302_vm3, %v1446_v57, %v1445_v2  ;;  %v1444_v2 = vadd.f32 %v1440_v40, %v2656_v31 }
 0xfe0   :  { %v1450_v21 = vrot.slane %v1402_v4, 2 }
 0xfe1   :  { %v1448_v24 = vrot.slane %v1401_v6, 3  ;;  %v1443_v6 = vadd.f32 %v1439_v8, %v2744_v61 }
 0xfe3   :  { %v1449_v7 = vsel %vm305_vm4, %v1448_v24, %v1447_v30 }
 0xfe4   :  { %v1451_v36 = vsel %vm308_vm5, %v1450_v21, %v1449_v7 }
 0xfe5   :  { %v1452_v5 = vpack.c.b16 %v1451_v36, %v1451_v36 }
 0xfe7   :  { %1453 = vrot.lane.b32.xlu1 %v1452_v5, %s2321_s16 }
0x1059   :  { %v1454_v59 = vpop.permute.xlu1 %1453 }
0x105a   :  { %2103 = vmatmul.mubr.msk.bf16.vlgmr.msra.gmra.mxu0 %vm76_vm2, %v1454_v59 }
0x111a   :  { %v1492_v19 = vpop.f32.mrf.mxu0 }
0x111b   :  { %v1493_v10 = vadd.f32 %v2728_v46, %v1492_v19 }
0x111c   :  { %v2104_v13 = vpop.f32.mrf.mxu0 }
0x111d   :  { %v1500_v17 = vrot.slane %v1493_v10, 3  ;;  %v1499_v38 = vrot.slane %v1493_v10, 2  ;;  %v1502_v12 = vrot.slane %v1493_v10, 5  ;;  %v1501_v33 = vrot.slane %v1493_v10, 4 }
0x111e   :  { %v1495_v16 = vpop.f32.mrf.mxu0 }
0x111f   :  { %1537 = vrot.lane.b32.xlu1 %v1500_v17, %s2319_s28  ;;  %1535 = vrot.lane.b32.xlu0 %v1499_v38, %s2319_s28  ;;  %v1508_v57 = vadd.f32 %v1500_v17, %v1442_v22  ;;  %v1507_v4 = vadd.f32 %v1499_v38, %v1441_v43  ;;  %v1510_v24 = vadd.f32 %v1502_v12, %v1444_v2 }
0x1120   :  { %v2105_v27 = vpop.f32.mrf.mxu0  ;;  %v1509_v7 = vadd.f32 %v1501_v33, %v1443_v6 }
0x1121   :  { %v1978_v21 = vmul.f32 -1.442695, %v1508_v57  ;;  %v1977_v30 = vmul.f32 -1.442695, %v1507_v4  ;;  %v1980_v36 = vmul.f32 -1.442695, %v1510_v24 }
0x1122   :  { %v1979_v5 = vmul.f32 -1.442695, %v1509_v7 }
0x1123   :  { %1541 = vrot.lane.b32.xlu1 %v1502_v12, %s2319_s28  ;;  %1539 = vrot.lane.b32.xlu0 %v1501_v33, %s2319_s28  ;;  %2265 = vpow2.f32 %v1978_v21 }
0x1124   :  { %2267 = vpow2.f32 %v1977_v30 }
0x1125   :  { %2269 = vpow2.f32 %v1980_v36 }
0x1126   :  { %2271 = vpow2.f32 %v1979_v5 }
0x1130   :  { %v2266_v59 = vpop.eup %2265 }
0x1131   :  { %v2268_v19 = vpop.eup %2267  ;;  %v1524_v10 = vadd.f32 1.0, %v2266_v59 }
0x1132   :  { %v2270_v13 = vpop.eup %2269  ;;  %v1523_v17 = vadd.f32 1.0, %v2268_v19 }
0x1133   :  { %v2272_v16 = vpop.eup %2271  ;;  %2273 = vrcp.f32 %v1524_v10  ;;  %v1526_v31 = vadd.f32 1.0, %v2270_v13 }
0x1134   :  { %2275 = vrcp.f32 %v1523_v17  ;;  %v1525_v38 = vadd.f32 1.0, %v2272_v16 }
0x1135   :  { %2277 = vrcp.f32 %v1526_v31 }
0x1136   :  { %2279 = vrcp.f32 %v1525_v38 }
0x1140   :  { %v2274_v27 = vpop.eup %2273 }
0x1141   :  { %v2276_v12 = vpop.eup %2275 }
0x1142   :  { %v2278_v52 = vpop.eup %2277  ;;  %v1575_v16 = vsub.f32 1.0, %v2276_v12 }
0x1143   :  { %v2280_v62 = vpop.eup %2279 }
0x1191   :  { %v1538_v33 = vpop.permute.xlu1 %1537  ;;  %v1536_v51 = vpop.permute.xlu0 %1535 }
0x1192   :  { %v1548_v53 = vmul.f32 %v2274_v27, %v1538_v33  ;;  %v1547_v29 = vmul.f32 %v2276_v12, %v1536_v51 }
0x1194   :  { %1557 = vrot.lane.b32.xlu1 %v1548_v53, %s2319_s28  ;;  %1555 = vrot.lane.b32.xlu0 %v1547_v29, %s2319_s28  ;;  %v1606_v29 = vrot.slane %v2852_v14, 7 }
0x1195   :  { %v1542_v63 = vpop.permute.xlu1 %1541  ;;  %v1540_v40 = vpop.permute.xlu0 %1539 }
0x1196   :  { %v1550_v8 = vmul.f32 %v2278_v52, %v1542_v63  ;;  %v1549_v57 = vmul.f32 %v2280_v62, %v1540_v40  ;;  %v1578_v40 = vsub.f32 1.0, %v2278_v52 }
0x1198   :  { %1561 = vrot.lane.b32.xlu1 %v1550_v8, %s2319_s28  ;;  %1559 = vrot.lane.b32.xlu0 %v1549_v57, %s2319_s28  ;;  %v1605_v8 = vrot.slane %v2855_v11, 7 }
0x119a   :  { %v1613_v14 = vmul.f32 %v2280_v62, %v1605_v8 }
0x1206   :  { %v1558_v4 = vpop.permute.xlu1 %1557  ;;  %v1556_v21 = vpop.permute.xlu0 %1555 }
0x1207   :  { %v1568_v24 = vadd.f32 %v1558_v4, %v1442_v22  ;;  %v1567_v30 = vadd.f32 %v1556_v21, %v1441_v43  ;;  %v1604_v22 = vrot.slane %v2838_v35, 7  ;;  %v1576_v43 = vsub.f32 1.0, %v2274_v27 }
0x1208   :  { %v1577_v4 = vsub.f32 1.0, %v2280_v62 }
0x1209   :  { %2281 = vtanh.f32 %v1568_v24  ;;  %v1612_v31 = vmul.f32 %v2274_v27, %v1604_v22  ;;  %v1614_v27 = vmul.f32 %v2278_v52, %v1606_v29 }
0x120a   :  { %2283 = vtanh.f32 %v1567_v30  ;;  %v1562_v7 = vpop.permute.xlu1 %1561  ;;  %v1560_v36 = vpop.permute.xlu0 %1559 }
0x120b   :  { %v1570_v5 = vadd.f32 %v1562_v7, %v1444_v2  ;;  %v1569_v59 = vadd.f32 %v1560_v36, %v1443_v6  ;;  %v1603_v2 = vrot.slane %v2841_v54, 7 }
0x120d   :  { %2285 = vtanh.f32 %v1570_v5  ;;  %v1611_v51 = vmul.f32 %v2276_v12, %v1603_v2 }
0x120e   :  { %2287 = vtanh.f32 %v1569_v59 }
0x1216   :  { %v2282_v19 = vpop.eup %2281 }
0x1217   :  { %v2284_v10 = vpop.eup %2283  ;;  %1585 = vrot.lane.b32.xlu1 %v2282_v19, %s2321_s16 }
0x1218   :  { %1583 = vrot.lane.b32.xlu0 %v2284_v10, %s2321_s16 }
0x121a   :  { %v2286_v13 = vpop.eup %2285 }
0x121b   :  { %v2288_v17 = vpop.eup %2287  ;;  %1589 = vrot.lane.b32.xlu1 %v2286_v13, %s2321_s16 }
0x121c   :  { %1587 = vrot.lane.b32.xlu0 %v2288_v17, %s2321_s16 }
0x1289   :  { %v1586_v6 = vpop.permute.xlu1 %1585 }
0x128a   :  { %v1596_v38 = vmul.f32 %v1586_v6, %v1576_v43  ;;  %v1584_v33 = vpop.permute.xlu0 %1583 }
0x128b   :  { %v1595_v53 = vmul.f32 %v1584_v33, %v1575_v16 }
0x128c   :  { %v2904_v63 = vadd.f32 %v1612_v31, %v1596_v38 }
0x128d   :  { %v2907_v57 = vadd.f32 %v1611_v51, %v1595_v53  ;;  %v1590_v35 = vpop.permute.xlu1 %1589 }
0x128e   :  { %v2911_v54 = vpack.c.bf16 %v2904_v63, %v2904_v63  ;;  %v1598_v21 = vmul.f32 %v1590_v35, %v1578_v40  ;;  %v1588_v24 = vpop.permute.xlu0 %1587 }
0x128f   :  { %v2915_v12 = vpack.c.bf16 %v2907_v57, %v2907_v57  ;;  %v1597_v30 = vmul.f32 %v1588_v24, %v1577_v4 }
0x1290   :  { %v1628_v7 = vunpack.c.l.b16 %v2911_v54  ;;  %v2918_v11 = vadd.f32 %v1614_v27, %v1598_v21  ;;  %v1664_v27 = vld [vmem:[%s3361_s0 + $0x8] sm:$0x8] }
0x1291   :  { %v1627_v36 = vunpack.c.l.b16 %v2915_v12  ;;  %v2921_v5 = vadd.f32 %v1613_v14, %v1597_v30  ;;  %v1668_v21 = vunpack.c.l.bf16 %v1664_v27  ;;  %v1665_v14 = vld [vmem:[%s3361_s0 + $0xc] sm:$0x8]  ;;  %v1662_v30 = vld [vmem:[%s3361_s0] sm:$0x8] }
0x1292   :  { %v2925_v59 = vpack.c.bf16 %v2918_v11, %v2918_v11  ;;  %v1675_v19 = vrot.slane %v1628_v7, 5 }
0x1293   :  { %v2929_v52 = vpack.c.bf16 %v2921_v5, %v2921_v5  ;;  %v1674_v10 = vrot.slane %v1627_v36, 6  ;;  %v1672_v7 = vadd.f32 %v1668_v21, %v2431_v28  ;;  %v1669_v36 = vunpack.c.l.bf16 %v1665_v14 }
0x1294   :  { %v1630_v62 = vunpack.c.l.b16 %v2925_v59 }
0x1295   :  { %v1629_v13 = vunpack.c.l.b16 %v2929_v52  ;;  %v1676_v43 = vsel %vm302_vm3, %v1675_v19, %v1674_v10  ;;  %v1666_v10 = vunpack.c.l.bf16 %v1662_v30 }
0x1296   :  { %v1679_v17 = vrot.slane %v1630_v62, 3 }
0x1297   :  { %v1677_v22 = vrot.slane %v1629_v13, 4  ;;  %v1673_v13 = vadd.f32 %v1669_v36, %v2744_v61 }
0x1299   :  { %v1678_v2 = vsel %vm305_vm4, %v1677_v22, %v1676_v43  ;;  %v1670_v22 = vadd.f32 %v1666_v10, %v2417_v18 }
0x129a   :  { %v1680_v6 = vsel %vm308_vm5, %v1679_v17, %v1678_v2 }
0x129b   :  { %v1681_v16 = vpack.c.b16 %v1680_v6, %v1680_v6 }
0x129d   :  { %1682 = vrot.lane.b32.xlu0 %v1681_v16, %s2321_s16 }
0x130f   :  { %v1683_v31 = vpop.permute.xlu0 %1682 }
0x1310   :  { %2111 = vmatmul.mubr.msk.bf16.vlgmr.msra.gmra.mxu1 %vm76_vm2, %v1683_v31  ;;  %vm504_vm2 = vsmask.f32 7938 }
0x13d0   :  { %v1721_v38 = vpop.f32.mrf.mxu1 }
0x13d1   :  { %v1722_v33 = vadd.f32 %v2728_v46, %v1721_v38  ;;  %v1663_v46 = vld [vmem:[%s3361_s0 + $0x4] sm:$0x8] }
0x13d2   :  { %v2112_v51 = vpop.f32.mrf.mxu1  ;;  %v1667_v24 = vunpack.c.l.bf16 %v1663_v46 }
0x13d3   :  { %v1730_v53 = vrot.slane %v1722_v33, 3  ;;  %v1729_v29 = vrot.slane %v1722_v33, 2  ;;  %v1731_v35 = vrot.slane %v1722_v33, 4  ;;  %v1728_v4 = vrot.slane %v1722_v33, 1 }
0x13d4   :  { %v1724_v40 = vpop.f32.mrf.mxu1  ;;  %v1671_v19 = vadd.f32 %v1667_v24, %v2424_v23 }
0x13d5   :  { %1768 = vrot.lane.b32.xlu0 %v1730_v53, %s2319_s28  ;;  %1766 = vrot.lane.b32.xlu1 %v1729_v29, %s2319_s28  ;;  %v1738_v62 = vadd.f32 %v1730_v53, %v1672_v7  ;;  %v1739_v2 = vadd.f32 %v1731_v35, %v1673_v13  ;;  %v1736_v16 = vadd.f32 %v1728_v4, %v1670_v22 }
0x13d6   :  { %v2113_v8 = vpop.f32.mrf.mxu1  ;;  %v1737_v17 = vadd.f32 %v1729_v29, %v1671_v19 }
0x13d7   :  { %v1988_v43 = vmul.f32 -1.442695, %v1738_v62  ;;  %v1989_v31 = vmul.f32 -1.442695, %v1739_v2  ;;  %v1986_v38 = vmul.f32 -1.442695, %v1736_v16 }
0x13d8   :  { %v1987_v6 = vmul.f32 -1.442695, %v1737_v17 }
0x13d9   :  { %1770 = vrot.lane.b32.xlu0 %v1731_v35, %s2319_s28  ;;  %1764 = vrot.lane.b32.xlu1 %v1728_v4, %s2319_s28  ;;  %2289 = vpow2.f32 %v1988_v43 }
0x13da   :  { %2291 = vpow2.f32 %v1987_v6 }
0x13db   :  { %2293 = vpow2.f32 %v1989_v31 }
0x13dc   :  { %2295 = vpow2.f32 %v1986_v38 }
0x13e6   :  { %v2290_v28 = vpop.eup %2289 }
0x13e7   :  { %v2292_v33 = vpop.eup %2291  ;;  %v1754_v23 = vadd.f32 1.0, %v2290_v28 }
0x13e8   :  { %v2294_v51 = vpop.eup %2293  ;;  %v1753_v53 = vadd.f32 1.0, %v2292_v33 }
0x13e9   :  { %v2296_v40 = vpop.eup %2295  ;;  %2297 = vrcp.f32 %v1754_v23  ;;  %v1755_v61 = vadd.f32 1.0, %v2294_v51 }
0x13ea   :  { %2299 = vrcp.f32 %v1753_v53  ;;  %v1752_v18 = vadd.f32 1.0, %v2296_v40 }
0x13eb   :  { %2301 = vrcp.f32 %v1755_v61  ;;  %v284_v61 = vld [vmem:[%s3362_s5 + $0xc] sm:$0x1] }
0x13ec   :  { %2303 = vrcp.f32 %v1752_v18  ;;  %v281_v18 = vld [vmem:[%s3362_s5 + $0x8] sm:$0x1] }
0x13f6   :  { %v2959_v29 = vpop.eup %2297 }
0x13f7   :  { %v2961_v8 = vpop.eup %2299 }
0x13f8   :  { %v2965_v21 = vpop.eup %2301 }
0x13f9   :  { %v2969_v24 = vpop.eup %2303 }
0x1447   :  { %v1769_v35 = vpop.permute.xlu0 %1768  ;;  %v1767_v4 = vpop.permute.xlu1 %1766 }
0x1448   :  { %v1778_v27 = vmul.f32 %v2959_v29, %v1769_v35  ;;  %v1777_v46 = vmul.f32 %v2961_v8, %v1767_v4 }
0x144a   :  { %1788 = vrot.lane.b32.xlu0 %v1778_v27, %s2319_s28  ;;  %1786 = vrot.lane.b32.xlu1 %v1777_v46, %s2319_s28 }
0x144b   :  { %v1771_v14 = vpop.permute.xlu0 %1770  ;;  %v1765_v30 = vpop.permute.xlu1 %1764 }
0x144c   :  { %v1779_v36 = vmul.f32 %v2965_v21, %v1771_v14  ;;  %v1776_v10 = vmul.f32 %v2969_v24, %v1765_v30  ;;  %v735_v14 = vld [vmem:[%s3362_s5] sm:$0x2] }
0x144e   :  { %1790 = vrot.lane.b32.xlu0 %v1779_v36, %s2319_s28  ;;  %1784 = vrot.lane.b32.xlu1 %v1776_v10, %s2319_s28 }
0x14bc   :  { %v1789_v62 = vpop.permute.xlu0 %1788  ;;  %v1787_v17 = vpop.permute.xlu1 %1786 }
0x14bd   :  { %v1798_v43 = vadd.f32 %v1789_v62, %v1672_v7  ;;  %v1797_v2 = vadd.f32 %v1787_v17, %v1671_v19  ;;  %v744_v17 = vld [vmem:[%s3362_s5 + $0xc] sm:$0x2] }
0x14bf   :  { %2305 = vtanh.f32 %v1798_v43  ;;  %v741_v43 = vld [vmem:[%s3362_s5 + $0x8] sm:$0x2] }
0x14c0   :  { %2307 = vtanh.f32 %v1797_v2  ;;  %v1791_v6 = vpop.permute.xlu0 %1790  ;;  %v1785_v16 = vpop.permute.xlu1 %1784 }
0x14c1   :  { %v1799_v31 = vadd.f32 %v1791_v6, %v1673_v13  ;;  %v1796_v38 = vadd.f32 %v1785_v16, %v1670_v22 }
0x14c3   :  { %2309 = vtanh.f32 %v1799_v31 }
0x14c4   :  { %2311 = vtanh.f32 %v1796_v38 }
0x14cc   :  { %v2306_v28 = vpop.eup %2305 }
0x14cd   :  { %v2308_v33 = vpop.eup %2307  ;;  %1816 = vrot.lane.b32.xlu0 %v2306_v28, %s2321_s16  ;;  %v1196_v28 = vld [vmem:[%s3362_s5 + $0x4] sm:$0x4] }
0x14ce   :  { %1814 = vrot.lane.b32.xlu1 %v2308_v33, %s2321_s16  ;;  %v1193_v33 = vld [vmem:[%s3362_s5] sm:$0x4] }
0x14d0   :  { %v2310_v23 = vpop.eup %2309 }
0x14d1   :  { %v2312_v51 = vpop.eup %2311  ;;  %1818 = vrot.lane.b32.xlu0 %v2310_v23, %s2321_s16 }
0x14d2   :  { %1812 = vrot.lane.b32.xlu1 %v2312_v51, %s2321_s16 }
0x14d5   :  { %262 = vrot.lane.b32.xlu0 %v2457_v37, %s2321_s16  ;;  %v1834_v37 = vrot.slane %v2921_v5, 7 }
0x14d6   :  { %260 = vrot.lane.b32.xlu1 %v2477_v48, %s2321_s16 }
0x14d9   :  { %266 = vrot.lane.b32.xlu0 %v2463_v41, %s2321_s16  ;;  %v1806_v41 = vsub.f32 1.0, %v2959_v29 }
0x14da   :  { %264 = vrot.lane.b32.xlu1 %v2467_v42, %s2321_s16  ;;  %v1833_v42 = vrot.slane %v2904_v63, 7 }
0x14dd   :  { %722 = vrot.lane.b32.xlu0 %v2608_v32, %s2321_s16  ;;  %v1835_v32 = vrot.slane %v2918_v11, 7  ;;  %v275_v11 = vld [vmem:[%s3362_s5] sm:$0x1] }
0x14de   :  { %720 = vrot.lane.b32.xlu1 %v2612_v55, %s2321_s16  ;;  %v1841_v55 = vmul.f32 %v2961_v8, %v1833_v42  ;;  %v1202_v42 = vld [vmem:[%s3362_s5 + $0xc] sm:$0x4] }
0x14e1   :  { %726 = vrot.lane.b32.xlu0 %v2626_v3, %s2321_s16 }
0x14e2   :  { %724 = vrot.lane.b32.xlu1 %v2622_v60, %s2321_s16 }
0x14e5   :  { %1180 = vrot.lane.b32.xlu0 %v2774_v15, %s2321_s16  ;;  %v1804_v15 = vsub.f32 1.0, %v2969_v24 }
0x14e6   :  { %1178 = vrot.lane.b32.xlu1 %v2778_v44, %s2321_s16 }
0x14e9   :  { %1184 = vrot.lane.b32.xlu0 %v2788_v26, %s2321_s16  ;;  %v1843_v26 = vmul.f32 %v2965_v21, %v1835_v32 }
0x14ea   :  { %1182 = vrot.lane.b32.xlu1 %v2792_v56, %s2321_s16 }
0x14ed   :  { %1637 = vrot.lane.b32.xlu0 %v2911_v54, %s2321_s16 }
0x14ee   :  { %1635 = vrot.lane.b32.xlu1 %v2915_v12, %s2321_s16 }
0x14f1   :  { %1641 = vrot.lane.b32.xlu0 %v2925_v59, %s2321_s16 }
0x14f2   :  { %1639 = vrot.lane.b32.xlu1 %v2929_v52, %s2321_s16 }
0x14f5   :  { %494 = vrot.lane.b32.xlu0 %v2551_v49, %s2321_s16 }
0x14f6   :  { %492 = vrot.lane.b32.xlu1 %v2537_v39, %s2321_s16  ;;  %v1842_v39 = vmul.f32 %v2959_v29, %v1834_v37 }
0x14f9   :  { %498 = vrot.lane.b32.xlu0 %v2547_v47, %s2321_s16 }
0x14fa   :  { %496 = vrot.lane.b32.xlu1 %v2533_v45, %s2321_s16  ;;  %v1805_v45 = vsub.f32 1.0, %v2961_v8 }
0x14fd   :  { %951 = vrot.lane.b32.xlu0 %v2683_v50, %s2321_s16  ;;  %v1807_v50 = vsub.f32 1.0, %v2965_v21 }
0x14fe   :  { %949 = vrot.lane.b32.xlu1 %v2687_v9, %s2321_s16  ;;  %v1832_v9 = vrot.slane %v2907_v57, 7  ;;  %v278_v57 = vld [vmem:[%s3362_s5 + $0x4] sm:$0x1] }
0x1501   :  { %955 = vrot.lane.b32.xlu0 %v2701_v1, %s2321_s16 }
0x1502   :  { %953 = vrot.lane.b32.xlu1 %v2697_v25, %s2321_s16 }
0x1505   :  { %1409 = vrot.lane.b32.xlu0 %v2845_v58, %s2321_s16 }
0x1506   :  { %1407 = vrot.lane.b32.xlu1 %v2849_v34, %s2321_s16 }
0x1509   :  { %1413 = vrot.lane.b32.xlu0 %v2859_v20, %s2321_s16 }
0x150a   :  { %1411 = vrot.lane.b32.xlu1 %v2863_v0, %s2321_s16  ;;  %v1840_v0 = vmul.f32 %v2969_v24, %v1832_v9  ;;  %v738_v24 = vld [vmem:[%s3362_s5 + $0x4] sm:$0x2] }
0x153f   :  { %v1817_v48 = vpop.permute.xlu0 %1816 }
0x1540   :  { %v1826_v47 = vmul.f32 %v1817_v48, %v1806_v41  ;;  %v1815_v49 = vpop.permute.xlu1 %1814  ;;  %v1199_v48 = vld [vmem:[%s3362_s5 + $0x8] sm:$0x4] }
0x1541   :  { %v1825_v60 = vmul.f32 %v1815_v49, %v1805_v45 }
0x1542   :  { %v1846_v3 = vadd.f32 %v1842_v39, %v1826_v47 }
0x1543   :  { %v1845_v25 = vadd.f32 %v1841_v55, %v1825_v60  ;;  %v1819_v1 = vpop.permute.xlu0 %1818  ;;  %v1653_v55 = vld [vmem:[%s3362_s5 + $0x4] sm:$0x8]  ;;  %v1650_v60 = vld [vmem:[%s3362_s5] sm:$0x8] }
0x1544   :  { %v1895_v44 = vrot.slane %v1846_v3, 6  ;;  %v1827_v56 = vmul.f32 %v1819_v1, %v1807_v50  ;;  %v1813_v58 = vpop.permute.xlu1 %1812  ;;  %v2024_v27 = vpack.c.bf16 %v1846_v3, %v1846_v3  ;;  %v1659_v1 = vld [vmem:[%s3362_s5 + $0xc] sm:$0x8] }
0x1545   :  { %v2023_v34 = vpack.c.bf16 %v1845_v25, %v1845_v25  ;;  %v1894_v20 = vrot.slane %v1845_v25, 7  ;;  %v1824_v63 = vmul.f32 %v1813_v58, %v1804_v15  ;;  %v1656_v15 = vld [vmem:[%s3362_s5 + $0x8] sm:$0x8] }
0x1546   :  { %v1847_v12 = vadd.f32 %v1843_v26, %v1827_v56 }
0x1547   :  { %v1844_v5 = vadd.f32 %v1840_v0, %v1824_v63  ;;  %1866 = vrot.lane.b32.xlu0 %v2023_v34, %s2321_s16  ;;  %v263_v59 = vpop.permute.xlu0 %262  ;;  %v1896_v52 = vsel %vm302_vm3, %v1895_v44, %v1894_v20  ;;  %vm3201_vm3 = vmand %vm272_vm6, %vm504_vm2  ;;  %vm1419_vm6 = vsmask.f32 7946 }
0x1548   :  { %v2025_v7 = vpack.c.bf16 %v1847_v12, %v1847_v12  ;;  %v1897_v19 = vrot.slane %v1847_v12, 5  ;;  %v279_v13 = vsel %vm3048_vm8, %v263_v59, %v278_v57  ;;  %v261_v22 = vpop.permute.xlu1 %260  ;;  %vm3275_vm7 = vmand %vm1190_vm12, %vm1419_vm6 }
0x1549   :  { %v2022_v53 = vpack.c.bf16 %v1844_v5, %v1844_v5  ;;  %280 = vst [vmem:[%s3362_s5 + $0x4] sm:$0x1] %v279_v13  ;;  %v276_v40 = vsel %vm3048_vm8, %v261_v22, %v275_v11 }
0x154a   :  { %277 = vst [vmem:[%s3362_s5] sm:$0x1] %v276_v40  ;;  %v1898_v29 = vsel %vm305_vm4, %v1897_v19, %v1896_v52  ;;  %vm961_vm4 = vsmask.f32 7942 }
0x154b   :  { %1870 = vrot.lane.b32.xlu0 %v2025_v7, %s2321_s16  ;;  %1864 = vrot.lane.b32.xlu1 %v2022_v53, %s2321_s16  ;;  %v267_v8 = vpop.permute.xlu0 %266  ;;  %vm3238_vm5 = vmand %vm732_vm9, %vm961_vm4 }
0x154c   :  { %v285_v35 = vsel %vm3048_vm8, %v267_v8, %v284_v61  ;;  %v265_v4 = vpop.permute.xlu1 %264 }
0x154d   :  { %286 = vst [vmem:[%s3362_s5 + $0xc] sm:$0x1] %v285_v35  ;;  %v282_v46 = vsel %vm3048_vm8, %v265_v4, %v281_v18  ;;  %vm1876_vm8 = vsmask.f32 7950 }
0x154e   :  { %283 = vst [vmem:[%s3362_s5 + $0x8] sm:$0x1] %v282_v46  ;;  %vm3315_vm9 = vmand %vm1647_vm15, %vm1876_vm8 }
0x154f   :  { %1901 = vrot.lane.b32.xlu0 %v1898_v29, %s2321_s16  ;;  %1868 = vrot.lane.b32.xlu1 %v2024_v27, %s2321_s16  ;;  %v723_v30 = vpop.permute.xlu0 %722 }
0x1550   :  { %v739_v36 = vsel %vm3087_vm11, %v723_v30, %v738_v24  ;;  %v721_v10 = vpop.permute.xlu1 %720  ;;  %v509_v20 = vld [vmem:[%s3362_s5 + $0x4] sm:$0x1] }
0x1551   :  { %740 = vst [vmem:[%s3362_s5 + $0x4] sm:$0x2] %v739_v36  ;;  %v736_v62 = vsel %vm3087_vm11, %v721_v10, %v735_v14  ;;  %v506_v54 = vld [vmem:[%s3362_s5] sm:$0x1] }
0x1552   :  { %737 = vst [vmem:[%s3362_s5] sm:$0x2] %v736_v62 }
0x1553   :  { %1899 = vrot.lane.b32.xlu1 %v1844_v5, %s2321_s16  ;;  %v727_v2 = vpop.permute.xlu0 %726 }
0x1554   :  { %v745_v6 = vsel %vm3087_vm11, %v727_v2, %v744_v17  ;;  %v725_v16 = vpop.permute.xlu1 %724  ;;  %v515_v11 = vld [vmem:[%s3362_s5 + $0xc] sm:$0x1] }
0x1555   :  { %746 = vst [vmem:[%s3362_s5 + $0xc] sm:$0x2] %v745_v6  ;;  %v742_v31 = vsel %vm3087_vm11, %v725_v16, %v741_v43  ;;  %v512_v52 = vld [vmem:[%s3362_s5 + $0x8] sm:$0x1]  ;;  %vm1905_vm11 = vcmask 261127  }
0x1556   :  { %743 = vst [vmem:[%s3362_s5 + $0x8] sm:$0x2] %v742_v31 }
0x1557   :  { %v1181_v23 = vpop.permute.xlu0 %1180 }
0x1558   :  { %v1197_v51 = vsel %vm3127_vm14, %v1181_v23, %v1196_v28  ;;  %v1179_v37 = vpop.permute.xlu1 %1178  ;;  %v966_v22 = vld [vmem:[%s3362_s5 + $0x4] sm:$0x2] }
0x1559   :  { %1198 = vst [vmem:[%s3362_s5 + $0x4] sm:$0x4] %v1197_v51  ;;  %v1194_v41 = vsel %vm3127_vm14, %v1179_v37, %v1193_v33  ;;  %v963_v61 = vld [vmem:[%s3362_s5] sm:$0x2] }
0x155a   :  { %1195 = vst [vmem:[%s3362_s5] sm:$0x4] %v1194_v41 }
0x155b   :  { %v1185_v45 = vpop.permute.xlu0 %1184 }
0x155c   :  { %v1203_v39 = vsel %vm3127_vm14, %v1185_v45, %v1202_v42  ;;  %v1183_v47 = vpop.permute.xlu1 %1182  ;;  %v972_v8 = vld [vmem:[%s3362_s5 + $0xc] sm:$0x2] }
0x155d   :  { %1204 = vst [vmem:[%s3362_s5 + $0xc] sm:$0x4] %v1203_v39  ;;  %v1200_v49 = vsel %vm3127_vm14, %v1183_v47, %v1199_v48  ;;  %v969_v27 = vld [vmem:[%s3362_s5 + $0x8] sm:$0x2] }
0x155e   :  { %1201 = vst [vmem:[%s3362_s5 + $0x8] sm:$0x4] %v1200_v49 }
0x155f   :  { %v1638_v3 = vpop.permute.xlu0 %1637 }
0x1560   :  { %v1654_v50 = vsel %vm3164_vm1, %v1638_v3, %v1653_v55  ;;  %v1636_v9 = vpop.permute.xlu1 %1635  ;;  %v1424_v14 = vld [vmem:[%s3362_s5 + $0x4] sm:$0x4] }
0x1561   :  { %1655 = vst [vmem:[%s3362_s5 + $0x4] sm:$0x8] %v1654_v50  ;;  %v1651_v25 = vsel %vm3164_vm1, %v1636_v9, %v1650_v60  ;;  %v1421_v10 = vld [vmem:[%s3362_s5] sm:$0x4] }
0x1562   :  { %1652 = vst [vmem:[%s3362_s5] sm:$0x8] %v1651_v25 }
0x1563   :  { %v1642_v44 = vpop.permute.xlu0 %1641 }
0x1564   :  { %v1660_v26 = vsel %vm3164_vm1, %v1642_v44, %v1659_v1  ;;  %v1640_v56 = vpop.permute.xlu1 %1639  ;;  %v1430_v43 = vld [vmem:[%s3362_s5 + $0xc] sm:$0x4] }
0x1565   :  { %1661 = vst [vmem:[%s3362_s5 + $0xc] sm:$0x8] %v1660_v26  ;;  %v1657_v58 = vsel %vm3164_vm1, %v1640_v56, %v1656_v15  ;;  %v1427_v16 = vld [vmem:[%s3362_s5 + $0x8] sm:$0x4] }
0x1566   :  { %1658 = vst [vmem:[%s3362_s5 + $0x8] sm:$0x8] %v1657_v58 }
0x1567   :  { %v495_v0 = vpop.permute.xlu0 %494 }
0x1568   :  { %v510_v63 = vsel %vm3201_vm3, %v495_v0, %v509_v20  ;;  %v493_v57 = vpop.permute.xlu1 %492  ;;  %v1881_v33 = vld [vmem:[%s3362_s5 + $0x4] sm:$0x8] }
0x1569   :  { %511 = vst [vmem:[%s3362_s5 + $0x4] sm:$0x1] %v510_v63  ;;  %v507_v12 = vsel %vm3201_vm3, %v493_v57, %v506_v54  ;;  %v1878_v42 = vld [vmem:[%s3362_s5] sm:$0x8] }
0x156a   :  { %508 = vst [vmem:[%s3362_s5] sm:$0x1] %v507_v12 }
0x156b   :  { %v499_v5 = vpop.permute.xlu0 %498 }
0x156c   :  { %v516_v59 = vsel %vm3201_vm3, %v499_v5, %v515_v11  ;;  %v497_v7 = vpop.permute.xlu1 %496  ;;  %v1887_v37 = vld [vmem:[%s3362_s5 + $0xc] sm:$0x8] }
0x156d   :  { %517 = vst [vmem:[%s3362_s5 + $0xc] sm:$0x1] %v516_v59  ;;  %v513_v19 = vsel %vm3201_vm3, %v497_v7, %v512_v52  ;;  %v1884_v49 = vld [vmem:[%s3362_s5 + $0x8] sm:$0x8] }
0x156e   :  { %514 = vst [vmem:[%s3362_s5 + $0x8] sm:$0x1] %v513_v19 }
0x156f   :  { %v952_v53 = vpop.permute.xlu0 %951 }
0x1570   :  { %v967_v40 = vsel %vm3238_vm5, %v952_v53, %v966_v22  ;;  %v950_v18 = vpop.permute.xlu1 %949 }
0x1571   :  { %968 = vst [vmem:[%s3362_s5 + $0x4] sm:$0x2] %v967_v40  ;;  %v964_v29 = vsel %vm3238_vm5, %v950_v18, %v963_v61 }
0x1572   :  { %965 = vst [vmem:[%s3362_s5] sm:$0x2] %v964_v29 }
0x1573   :  { %v956_v35 = vpop.permute.xlu0 %955 }
0x1574   :  { %v973_v4 = vsel %vm3238_vm5, %v956_v35, %v972_v8  ;;  %v954_v46 = vpop.permute.xlu1 %953 }
0x1575   :  { %974 = vst [vmem:[%s3362_s5 + $0xc] sm:$0x2] %v973_v4  ;;  %v970_v21 = vsel %vm3238_vm5, %v954_v46, %v969_v27 }
0x1576   :  { %971 = vst [vmem:[%s3362_s5 + $0x8] sm:$0x2] %v970_v21 }
0x1577   :  { %v1410_v30 = vpop.permute.xlu0 %1409 }
0x1578   :  { %v1425_v36 = vsel %vm3275_vm7, %v1410_v30, %v1424_v14  ;;  %v1408_v62 = vpop.permute.xlu1 %1407 }
0x1579   :  { %1426 = vst [vmem:[%s3362_s5 + $0x4] sm:$0x4] %v1425_v36  ;;  %v1422_v17 = vsel %vm3275_vm7, %v1408_v62, %v1421_v10 }
0x157a   :  { %1423 = vst [vmem:[%s3362_s5] sm:$0x4] %v1422_v17 }
0x157b   :  { %v1414_v2 = vpop.permute.xlu0 %1413 }
0x157c   :  { %v1431_v6 = vsel %vm3275_vm7, %v1414_v2, %v1430_v43  ;;  %v1412_v31 = vpop.permute.xlu1 %1411 }
0x157d   :  { %1432 = vst [vmem:[%s3362_s5 + $0xc] sm:$0x4] %v1431_v6  ;;  %v1428_v38 = vsel %vm3275_vm7, %v1412_v31, %v1427_v16 }
0x157e   :  { %1429 = vst [vmem:[%s3362_s5 + $0x8] sm:$0x4] %v1428_v38 }
0x15b9   :  { %v1867_v23 = vpop.permute.xlu0 %1866 }
0x15ba   :  { %v1882_v51 = vsel %vm3315_vm9, %v1867_v23, %v1881_v33 }
0x15bb   :  { %1883 = vst [vmem:[%s3362_s5 + $0x4] sm:$0x8] %v1882_v51 }
0x15bd   :  { %v1871_v41 = vpop.permute.xlu0 %1870  ;;  %v1865_v48 = vpop.permute.xlu1 %1864 }
0x15be   :  { %v1888_v45 = vsel %vm3315_vm9, %v1871_v41, %v1887_v37  ;;  %v1879_v39 = vsel %vm3315_vm9, %v1865_v48, %v1878_v42 }
0x15bf   :  { %1889 = vst [vmem:[%s3362_s5 + $0xc] sm:$0x8] %v1888_v45  ;;  %1880 = vst [vmem:[%s3362_s5] sm:$0x8] %v1879_v39 }
0x15c1   :  { %v1902_v47 = vpop.permute.xlu0 %1901  ;;  %v1869_v32 = vpop.permute.xlu1 %1868 }
0x15c2   :  { %1908 = vst.msk [vmem:[#allocation2 + $0x1] sm:$0x7] %vm1907_vm10, %v1902_v47  ;;  %1910 = vst.msk [vmem:[%s3363_s6 + $0x1] sm:$0x7] %vm1907_vm10, %v1902_v47  ;;  %v1885_v55 = vsel %vm3315_vm9, %v1869_v32, %v1884_v49 }
0x15c3   :  { %1886 = vst [vmem:[%s3362_s5 + $0x8] sm:$0x8] %v1885_v55 }
0x15c5   :  { %v1900_v60 = vpop.permute.xlu1 %1899 }
0x15c6   :  { %1906 = vst.msk [vmem:[#allocation2 - $0x7] sm:$0x80] %vm1905_vm11, %v1900_v60  ;;  %1909 = vst.msk [vmem:[%s3363_s6 - $0x7] sm:$0x80] %vm1905_vm11, %v1900_v60 }

// kernel: decoder_forward.11
= control target key start
LH: loop header
LB: loop body
LE: loop exit
PB: predicated region body
PF: predicated region fallthrough
CT: control target
= control target key end

     0   :  { %s306_s1 = inlined_call_operand.vmem [shape: bf16[128,128], index: 1, kind: input, shape index: {}]   ;;  %s307_s0 = inlined_call_operand.vmem [shape: bf16[32,128], index: 0, kind: input, shape index: {}]   ;;  %s308_s2 = inlined_call_operand.vmem [shape: f32[1,128], index: 2, kind: input, shape index: {}]   ;;  %s309_s3 = inlined_call_operand.vmem [shape: f32[32,128], index: 3, kind: output, shape index: {}]  }
   0x1   :  { %v231_v0 = vld [vmem:[%s306_s1 + $0x38] sm:$0xff]   ;;  %v232_v1 = vld [vmem:[%s306_s1 + $0x30] sm:$0xff]   ;;  %v233_v2 = vld [vmem:[%s306_s1 + $0x28] sm:$0xff]  }
   0x2   :  { %211 = vmatprep.subr.bf16.mxu0 %v231_v0  ;;  %v234_v3 = vld [vmem:[%s306_s1 + $0x20] sm:$0xff]   ;;  %v235_v5 = vld [vmem:[%s306_s1 + $0x18] sm:$0xff]   ;;  %v236_v6 = vld [vmem:[%s306_s1 + $0x10] sm:$0xff]  }
   0x3   :  { %212 = vmatpush3.bf16.msra.mxu0 %v231_v0  ;;  %v239_v4 = vld [vmem:[%s307_s0] sm:$0xff]   ;;  %v237_v7 = vld [vmem:[%s306_s1 + $0x8] sm:$0xff]  }
   0x4   :  { %213 = vmatprep.subr.bf16.mxu0 %v232_v1  ;;  %227 = vmatprep.mubr.bf16.mxu0 %v239_v4  ;;  %v238_v8 = vld [vmem:[%s306_s1] sm:$0xff]   ;;  %v240_v9 = vld [vmem:[%s307_s0 + $0x8] sm:$0xff]  }
   0x5   :  { %v200_v10 = vld [vmem:[%s308_s2] ss:$0 sm:$0xff] }
   0x7   :  { %214 = vmatpush3.bf16.msra.mxu0 %v232_v1 }
   0x8   :  { %215 = vmatprep.subr.bf16.mxu0 %v233_v2 }
   0xb   :  { %216 = vmatpush3.bf16.msra.mxu0 %v233_v2 }
   0xc   :  { %217 = vmatprep.subr.bf16.mxu0 %v234_v3 }
   0xf   :  { %218 = vmatpush3.bf16.msra.mxu0 %v234_v3 }
  0x10   :  { %219 = vmatprep.subr.bf16.mxu0 %v235_v5 }
  0x13   :  { %220 = vmatpush3.bf16.msra.mxu0 %v235_v5 }
  0x14   :  { %221 = vmatprep.subr.bf16.mxu0 %v236_v6 }
  0x17   :  { %222 = vmatpush3.bf16.msra.mxu0 %v236_v6 }
  0x18   :  { %223 = vmatprep.subr.bf16.mxu0 %v237_v7 }
  0x1b   :  { %224 = vmatpush3.bf16.msra.mxu0 %v237_v7 }
  0x1c   :  { %225 = vmatprep.subr.bf16.mxu0 %v238_v8 }
  0x1f   :  { %226 = vmatpush3.bf16.msra.mxu0 %v238_v8 }
  0x22   :  { %228 = vmatmul.mubr.bf16.vlgmr.msra.gmra.mxu0 %v240_v9 }
  0xe2   :  { %v229_v11 = vpop.f32.mrf.mxu0 }
  0xe3   :  { %v180_v12 = vadd.f32 %v229_v11, %v200_v10 }
  0xe4   :  { %v141_v13 = vpop.f32.mrf.mxu0 }
  0xe5   :  { %184 = vst [vmem:[%s309_s3 + $0x10] sm:$0xff] %v180_v12  ;;  %v178_v14 = vadd.f32 %v200_v10, %v141_v13 }
  0xe6   :  { %v230_v15 = vpop.f32.mrf.mxu0 }
  0xe7   :  { %182 = vst [vmem:[%s309_s3] sm:$0xff] %v178_v14  ;;  %v181_v16 = vadd.f32 %v230_v15, %v200_v10 }
  0xe8   :  { %v144_v17 = vpop.f32.mrf.mxu0 }
  0xe9   :  { %185 = vst [vmem:[%s309_s3 + $0x18] sm:$0xff] %v181_v16  ;;  %v179_v18 = vadd.f32 %v200_v10, %v144_v17 }
  0xeb   :  { %183 = vst [vmem:[%s309_s3 + $0x8] sm:$0xff] %v179_v18 }

// kernel: decoder_forward.10
= control target key start
LH: loop header
LB: loop body
LE: loop exit
PB: predicated region body
PF: predicated region fallthrough
CT: control target
= control target key end

     0   :  { %v2264_v0 = vmov 0.0   ;;  %vm2265_vm0 = vmmov 0   ;;  %vm25_vm1 = vcmask 257024   ;;  %vm60_vm2 = vcmask 261120   ;;  %s2266_s25 = smov 64   ;;  %s2267_s9 = smov 32   ;;  %s3239_s2 = inlined_call_operand.vmem [shape: bf16[32,96], index: 2, kind: input, shape index: {}]   ;;  %s3240_s1 = inlined_call_operand.vmem [shape: f32[4,32], index: 1, kind: input, shape index: {}]   ;;  %s3241_s3 = inlined_call_operand.vmem [shape: f32[1,96], index: 3, kind: input, shape index: {}]   ;;  %s3242_s0 = inlined_call_operand.vmem [shape: bf16[4,8,96], index: 0, kind: input, shape index: {}]   ;;  %s3243_s4 = inlined_call_operand.vmem [shape: bf16[4,8,32], index: 4, kind: output, shape index: {0}]   ;;  %s3244_s5 = inlined_call_operand.vmem [shape: f32[4,32], index: 5, kind: output, shape index: {1}]  }
   0x1   :  { %1998 = vmatprep.subr.bf16.mxu0 %v2264_v0  ;;  %v2303_v1 = vld [vmem:[%s3239_s2 + $0x8] sm:$0xff]   ;;  %2002 = vmatprep.mubr.msk.bf16.mxu0 %vm2265_vm0, %v2264_v0  ;;  %v2314_v2 = vld [vmem:[%s3239_s2] sm:$0xff]   ;;  %s2268_s10 = smov 96   ;;  %vm280_vm3 = vcmask 1041409   ;;  %vm283_vm4 = vcmask 1042434   ;;  %vm286_vm5 = vcmask 1043459  }
   0x2   :  { %2006 = vmatprep.subr.bf16.mxu1 %v2264_v0  ;;  %2010 = vmatprep.mubr.msk.bf16.mxu1 %vm2265_vm0, %v2264_v0  ;;  %v24_v3 = vld [vmem:[%s3240_s1] sm:$0xf]  ;;  %v34_v15 = vld [vmem:[%s3242_s0 + $0x4] sm:$0x1]  ;;  %v35_v18 = vld [vmem:[%s3242_s0 + $0x8] sm:$0x1] }
   0x3   :  { %1999 = vmatpush3.bf16.msra.mxu0 %v2303_v1  ;;  %2007 = vmatpush3.bf16.msra.mxu1 %v2303_v1  ;;  %26 = vst.msk [vmem:[#allocation2] sm:$0xf] %vm25_vm1, %v24_v3  ;;  %v2340_v6 = vld [vmem:[%s3241_s3] ss:$0 sm:$0xff]  ;;  %v38_v17 = vunpack.c.l.bf16 %v34_v15  ;;  %v39_v21 = vunpack.c.l.bf16 %v35_v18  ;;  %v36_v22 = vld [vmem:[%s3242_s0 + $0xc] sm:$0x1] }
   0x4   :  { %2000 = vmatprep.subr.bf16.mxu0 %v2264_v0  ;;  %2008 = vmatprep.subr.bf16.mxu1 %v2264_v0  ;;  %v33_v16 = vld [vmem:[%s3242_s0] sm:$0x1]  ;;  %v40_v25 = vunpack.c.l.bf16 %v36_v22  ;;  %vm256_vm6 = vcmask 253952   ;;  %vm257_vm7 = vsmask.f32 256  ;;  %vm704_vm9 = vcmask 254977  }
   0x5   :  { %v37_v19 = vunpack.c.l.bf16 %v33_v16  ;;  %vm2930_vm8 = vmand %vm256_vm6, %vm257_vm7  ;;  %vm705_vm10 = vsmask.f32 1280  ;;  %vm1150_vm12 = vcmask 256002   ;;  %vm1151_vm13 = vsmask.f32 2304 }
   0x6   :  { %vm2969_vm11 = vmand %vm704_vm9, %vm705_vm10  ;;  %vm1599_vm15 = vcmask 257027   ;;  %vm1855_vm10 = vcmask 256000  }
   0x7   :  { %2001 = vmatpush3.bf16.msra.mxu0 %v2314_v2  ;;  %2009 = vmatpush3.bf16.msra.mxu1 %v2314_v2  ;;  %vm3009_vm14 = vmand %vm1150_vm12, %vm1151_vm13 }
   0x8   :  { %2014 = vmatprep.subr.bf16.mxu0 %v2264_v0  ;;  %2022 = vmatprep.subr.bf16.mxu1 %v2264_v0 }
   0xa   :  { %v2326_v4 = vld [vmem:[#allocation2] sm:$0xf] }
   0xb   :  { %v41_v5 = vpack.c.bf16 %v2326_v4, %v2326_v4  ;;  %v205_v51 = vrot.slane %v2326_v4, 1  ;;  %v206_v52 = vrot.slane %v2326_v4, 2  ;;  %v207_v3 = vrot.slane %v2326_v4, 3 }
   0xd   :  { %2003 = vmatmul.mubr.msk.bf16.vlgmr.msra.gmra.mxu0 %vm60_vm2, %v41_v5 }
   0xe   :  { %2015 = vmatpush3.bf16.msra.mxu0 %v2303_v1  ;;  %2018 = vmatprep.mubr.msk.bf16.mxu0 %vm2265_vm0, %v2264_v0 }
   0xf   :  { %2016 = vmatprep.subr.bf16.mxu0 %v2264_v0 }
  0x12   :  { %2017 = vmatpush3.bf16.msra.mxu0 %v2314_v2 }
  0x13   :  { %2030 = vmatprep.subr.bf16.mxu0 %v2264_v0 }
  0xcd   :  { %v98_v7 = vpop.f32.mrf.mxu0 }
  0xce   :  { %v99_v8 = vadd.f32 %v2340_v6, %v98_v7 }
  0xcf   :  { %v2004_v9 = vpop.f32.mrf.mxu0 }
  0xd0   :  { %140 = vrot.lane.b32.xlu1 %v99_v8, %s2266_s25  ;;  %v105_v10 = vrot.slane %v99_v8, 1  ;;  %v107_v12 = vrot.slane %v99_v8, 3  ;;  %v106_v14 = vrot.slane %v99_v8, 2  ;;  %v112_v23 = vadd.f32 %v99_v8, %v37_v19 }
  0xd1   :  { %v101_v11 = vpop.f32.mrf.mxu0 }
  0xd2   :  { %142 = vrot.lane.b32.xlu0 %v105_v10, %s2266_s25  ;;  %v113_v20 = vadd.f32 %v105_v10, %v38_v17  ;;  %v114_v26 = vadd.f32 %v106_v14, %v39_v21  ;;  %v1871_v27 = vmul.f32 -1.442695, %v112_v23  ;;  %v115_v28 = vadd.f32 %v107_v12, %v40_v25 }
  0xd3   :  { %v2005_v13 = vpop.f32.mrf.mxu0 }
  0xd4   :  { %146 = vrot.lane.b32.xlu1 %v107_v12, %s2266_s25  ;;  %v1872_v24 = vmul.f32 -1.442695, %v113_v20  ;;  %v1873_v29 = vmul.f32 -1.442695, %v114_v26  ;;  %v1874_v30 = vmul.f32 -1.442695, %v115_v28 }
  0xd6   :  { %144 = vrot.lane.b32.xlu0 %v106_v14, %s2266_s25  ;;  %2069 = vpow2.f32 %v1872_v24 }
  0xd7   :  { %2071 = vpow2.f32 %v1871_v27 }
  0xd8   :  { %2073 = vpow2.f32 %v1873_v29 }
  0xd9   :  { %2075 = vpow2.f32 %v1874_v30 }
  0xe3   :  { %v2070_v31 = vpop.eup %2069 }
  0xe4   :  { %v2072_v32 = vpop.eup %2071  ;;  %v129_v33 = vadd.f32 1.0, %v2070_v31 }
  0xe5   :  { %v2074_v34 = vpop.eup %2073  ;;  %v128_v35 = vadd.f32 1.0, %v2072_v32 }
  0xe6   :  { %2077 = vrcp.f32 %v129_v33  ;;  %v130_v36 = vadd.f32 1.0, %v2074_v34  ;;  %v2076_v37 = vpop.eup %2075 }
  0xe7   :  { %2079 = vrcp.f32 %v128_v35  ;;  %v131_v38 = vadd.f32 1.0, %v2076_v37 }
  0xe8   :  { %2081 = vrcp.f32 %v130_v36 }
  0xe9   :  { %2083 = vrcp.f32 %v131_v38 }
  0xf3   :  { %v2078_v39 = vpop.eup %2077 }
  0xf4   :  { %v2359_v43 = vpop.eup %2079  ;;  %v181_v11 = vsub.f32 1.0, %v2078_v39 }
  0xf5   :  { %v2082_v44 = vpop.eup %2081 }
  0xf6   :  { %v2084_v49 = vpop.eup %2083  ;;  %v182_v18 = vsub.f32 1.0, %v2082_v44 }
  0xf7   :  { %v183_v15 = vsub.f32 1.0, %v2084_v49 }
 0x142   :  { %v141_v40 = vpop.permute.xlu1 %140 }
 0x143   :  { %v152_v46 = vmul.f32 %v2359_v43, %v141_v40 }
 0x144   :  { %v143_v41 = vpop.permute.xlu0 %142 }
 0x145   :  { %v153_v42 = vmul.f32 %v2078_v39, %v143_v41 }
 0x146   :  { %v147_v48 = vpop.permute.xlu1 %146 }
 0x147   :  { %162 = vrot.lane.b32.xlu0 %v153_v42, %s2266_s25  ;;  %v155_v50 = vmul.f32 %v2084_v49, %v147_v48 }
 0x148   :  { %v145_v45 = vpop.permute.xlu0 %144 }
 0x149   :  { %v154_v47 = vmul.f32 %v2082_v44, %v145_v45 }
 0x14b   :  { %164 = vrot.lane.b32.xlu1 %v154_v47, %s2266_s25  ;;  %160 = vrot.lane.b32.xlu0 %v152_v46, %s2266_s25 }
 0x14f   :  { %166 = vrot.lane.b32.xlu1 %v155_v50, %s2266_s25 }
 0x153   :  { %210 = vrot.lane.b32.xlu1 %v205_v51, %s2267_s9 }
 0x157   :  { %212 = vrot.lane.b32.xlu1 %v206_v52, %s2267_s9 }
 0x1b9   :  { %v163_v53 = vpop.permute.xlu0 %162 }
 0x1ba   :  { %v173_v57 = vadd.f32 %v163_v53, %v38_v17 }
 0x1bd   :  { %v165_v54 = vpop.permute.xlu1 %164  ;;  %v161_v55 = vpop.permute.xlu0 %160 }
 0x1be   :  { %v172_v56 = vadd.f32 %v161_v55, %v37_v19  ;;  %v174_v60 = vadd.f32 %v165_v54, %v39_v21  ;;  %v273_v54 = vld [vmem:[%s3242_s0 + $0x8] sm:$0x1]  ;;  %v271_v55 = vld [vmem:[%s3242_s0] sm:$0x1] }
 0x1c0   :  { %2085 = vtanh.f32 %v172_v56  ;;  %v277_v56 = vunpack.c.l.bf16 %v273_v54 }
 0x1c1   :  { %v167_v58 = vpop.permute.xlu1 %166 }
 0x1c2   :  { %v175_v59 = vadd.f32 %v167_v58, %v40_v25  ;;  %v275_v58 = vunpack.c.l.bf16 %v271_v55 }
 0x1c4   :  { %2087 = vtanh.f32 %v175_v59  ;;  %v274_v59 = vld [vmem:[%s3242_s0 + $0xc] sm:$0x1] }
 0x1c5   :  { %2089 = vtanh.f32 %v173_v57  ;;  %v211_v7 = vpop.permute.xlu1 %210  ;;  %v272_v57 = vld [vmem:[%s3242_s0 + $0x4] sm:$0x1] }
 0x1c6   :  { %2091 = vtanh.f32 %v174_v60  ;;  %v221_v13 = vmul.f32 %v2078_v39, %v211_v7  ;;  %v276_v60 = vunpack.c.l.bf16 %v272_v57 }
 0x1c9   :  { %v213_v8 = vpop.permute.xlu1 %212 }
 0x1ca   :  { %v222_v22 = vmul.f32 %v2082_v44, %v213_v8 }
 0x1cd   :  { %v2086_v61 = vpop.eup %2085 }
 0x1ce   :  { %188 = vrot.lane.b32.xlu0 %v2086_v61, %s2268_s10 }
 0x1d1   :  { %v2088_v62 = vpop.eup %2087 }
 0x1d2   :  { %v2090_v63 = vpop.eup %2089  ;;  %194 = vrot.lane.b32.xlu1 %v2088_v62, %s2268_s10 }
 0x1d3   :  { %190 = vrot.lane.b32.xlu0 %v2090_v63, %s2268_s10  ;;  %v2092_v5 = vpop.eup %2091  ;;  %v278_v63 = vunpack.c.l.bf16 %v274_v59 }
 0x1d6   :  { %214 = vrot.lane.b32.xlu1 %v207_v3, %s2267_s9 }
 0x1d7   :  { %192 = vrot.lane.b32.xlu0 %v2092_v5, %s2268_s10 }
 0x1db   :  { %208 = vrot.lane.b32.xlu0 %v2326_v4, %s2267_s9  ;;  %v180_v4 = vsub.f32 1.0, %v2359_v43 }
 0x240   :  { %v189_v9 = vpop.permute.xlu0 %188 }
 0x241   :  { %v200_v28 = vmul.f32 %v189_v9, %v180_v4 }
 0x244   :  { %v195_v10 = vpop.permute.xlu1 %194 }
 0x245   :  { %v191_v12 = vpop.permute.xlu0 %190  ;;  %v203_v19 = vmul.f32 %v195_v10, %v183_v15 }
 0x246   :  { %v201_v14 = vmul.f32 %v191_v12, %v181_v11 }
 0x248   :  { %v2374_v16 = vadd.f32 %v221_v13, %v201_v14  ;;  %v215_v17 = vpop.permute.xlu1 %214 }
 0x249   :  { %v223_v20 = vmul.f32 %v2084_v49, %v215_v17  ;;  %v193_v21 = vpop.permute.xlu0 %192 }
 0x24a   :  { %v202_v23 = vmul.f32 %v193_v21, %v182_v18  ;;  %v2381_v25 = vpack.c.bf16 %v2374_v16, %v2374_v16 }
 0x24b   :  { %v2376_v24 = vadd.f32 %v223_v20, %v203_v19 }
 0x24c   :  { %v2383_v26 = vadd.f32 %v222_v22, %v202_v23  ;;  %v237_v32 = vunpack.c.l.b16 %v2381_v25 }
 0x24d   :  { %v209_v27 = vpop.permute.xlu0 %208  ;;  %v2387_v29 = vpack.c.bf16 %v2376_v24, %v2376_v24 }
 0x24e   :  { %v2391_v30 = vpack.c.bf16 %v2383_v26, %v2383_v26  ;;  %v220_v31 = vmul.f32 %v2359_v43, %v209_v27  ;;  %v279_v37 = vrot.slane %v237_v32, 7 }
 0x24f   :  { %v239_v35 = vunpack.c.l.b16 %v2387_v29 }
 0x250   :  { %v2395_v33 = vadd.f32 %v220_v31, %v200_v28  ;;  %v238_v34 = vunpack.c.l.b16 %v2391_v30 }
 0x251   :  { %v285_v40 = vrot.slane %v239_v35, 5 }
 0x252   :  { %v2401_v36 = vpack.c.bf16 %v2395_v33, %v2395_v33  ;;  %v282_v39 = vrot.slane %v238_v34, 6 }
 0x254   :  { %v236_v38 = vunpack.c.l.b16 %v2401_v36 }
 0x256   :  { %v281_v41 = vsel %vm280_vm3, %v279_v37, %v236_v38 }
 0x257   :  { %v284_v42 = vsel %vm283_vm4, %v282_v39, %v281_v41 }
 0x258   :  { %v287_v43 = vsel %vm286_vm5, %v285_v40, %v284_v42 }
 0x259   :  { %v288_v44 = vpack.c.b16 %v287_v43, %v287_v43 }
 0x25b   :  { %289 = vrot.lane.b32.xlu0 %v288_v44, %s2268_s10 }
 0x2cd   :  { %v290_v45 = vpop.permute.xlu0 %289 }
 0x2ce   :  { %2011 = vmatmul.mubr.msk.bf16.vlgmr.msra.gmra.mxu1 %vm60_vm2, %v290_v45 }
 0x2cf   :  { %2023 = vmatpush3.bf16.msra.mxu1 %v2303_v1  ;;  %2026 = vmatprep.mubr.msk.bf16.mxu1 %vm2265_vm0, %v2264_v0 }
 0x2d0   :  { %2024 = vmatprep.subr.bf16.mxu1 %v2264_v0 }
 0x2d3   :  { %2025 = vmatpush3.bf16.msra.mxu1 %v2314_v2 }
 0x2d4   :  { %2038 = vmatprep.subr.bf16.mxu1 %v2264_v0 }
 0x38e   :  { %v328_v46 = vpop.f32.mrf.mxu1 }
 0x38f   :  { %v329_v47 = vadd.f32 %v2340_v6, %v328_v46 }
 0x390   :  { %v2012_v48 = vpop.f32.mrf.mxu1 }
 0x391   :  { %v336_v49 = vrot.slane %v329_v47, 1  ;;  %v335_v50 = vrot.slane %v329_v47, 7  ;;  %v337_v53 = vrot.slane %v329_v47, 2  ;;  %v343_v3 = vadd.f32 %v329_v47, %v276_v60 }
 0x392   :  { %v331_v51 = vpop.f32.mrf.mxu1 }
 0x393   :  { %374 = vrot.lane.b32.xlu0 %v336_v49, %s2266_s25  ;;  %370 = vrot.lane.b32.xlu1 %v335_v50, %s2266_s25  ;;  %v344_v61 = vadd.f32 %v336_v49, %v277_v56  ;;  %v342_v62 = vadd.f32 %v335_v50, %v275_v58  ;;  %v345_v8 = vadd.f32 %v337_v53, %v278_v63  ;;  %v1881_v9 = vmul.f32 -1.442695, %v343_v3 }
 0x394   :  { %v2013_v52 = vpop.f32.mrf.mxu1  ;;  %v440_v50 = vrot.slane %v2383_v26, 7 }
 0x395   :  { %v1882_v5 = vmul.f32 -1.442695, %v344_v61  ;;  %v1880_v7 = vmul.f32 -1.442695, %v342_v62  ;;  %v1883_v10 = vmul.f32 -1.442695, %v345_v8 }
 0x396   :  { %v438_v52 = vrot.slane %v2395_v33, 7 }
 0x397   :  { %376 = vrot.lane.b32.xlu0 %v337_v53, %s2266_s25  ;;  %372 = vrot.lane.b32.xlu1 %v329_v47, %s2266_s25  ;;  %2093 = vpow2.f32 %v1882_v5 }
 0x398   :  { %2095 = vpow2.f32 %v1880_v7 }
 0x399   :  { %2097 = vpow2.f32 %v1881_v9 }
 0x39a   :  { %2099 = vpow2.f32 %v1883_v10 }
 0x3a4   :  { %v2094_v11 = vpop.eup %2093 }
 0x3a5   :  { %v2096_v12 = vpop.eup %2095  ;;  %v360_v13 = vadd.f32 1.0, %v2094_v11 }
 0x3a6   :  { %v2098_v14 = vpop.eup %2097  ;;  %v358_v15 = vadd.f32 1.0, %v2096_v12 }
 0x3a7   :  { %v2100_v17 = vpop.eup %2099  ;;  %v359_v18 = vadd.f32 1.0, %v2098_v14  ;;  %2101 = vrcp.f32 %v360_v13 }
 0x3a8   :  { %2103 = vrcp.f32 %v358_v15  ;;  %v361_v19 = vadd.f32 1.0, %v2100_v17 }
 0x3a9   :  { %2105 = vrcp.f32 %v359_v18 }
 0x3aa   :  { %2107 = vrcp.f32 %v361_v19 }
 0x3b4   :  { %v2102_v20 = vpop.eup %2101 }
 0x3b5   :  { %v2104_v21 = vpop.eup %2103  ;;  %v412_v51 = vsub.f32 1.0, %v2102_v20  ;;  %v448_v55 = vmul.f32 %v2102_v20, %v440_v50 }
 0x3b6   :  { %v2106_v28 = vpop.eup %2105  ;;  %v410_v54 = vsub.f32 1.0, %v2104_v21 }
 0x3b7   :  { %v2108_v31 = vpop.eup %2107  ;;  %v411_v5 = vsub.f32 1.0, %v2106_v28 }
 0x3b8   :  { %v413_v62 = vsub.f32 1.0, %v2108_v31 }
 0x405   :  { %v375_v22 = vpop.permute.xlu0 %374  ;;  %v371_v23 = vpop.permute.xlu1 %370 }
 0x406   :  { %v384_v4 = vmul.f32 %v2102_v20, %v375_v22  ;;  %v382_v27 = vmul.f32 %v2104_v21, %v371_v23 }
 0x408   :  { %394 = vrot.lane.b32.xlu0 %v384_v4, %s2266_s25  ;;  %390 = vrot.lane.b32.xlu1 %v382_v27, %s2266_s25 }
 0x409   :  { %v377_v32 = vpop.permute.xlu0 %376  ;;  %v373_v34 = vpop.permute.xlu1 %372 }
 0x40a   :  { %v385_v35 = vmul.f32 %v2108_v31, %v377_v32  ;;  %v383_v37 = vmul.f32 %v2106_v28, %v373_v34 }
 0x40c   :  { %396 = vrot.lane.b32.xlu0 %v385_v35, %s2266_s25  ;;  %392 = vrot.lane.b32.xlu1 %v383_v37, %s2266_s25 }
 0x47a   :  { %v395_v38 = vpop.permute.xlu0 %394  ;;  %v391_v39 = vpop.permute.xlu1 %390 }
 0x47b   :  { %v404_v40 = vadd.f32 %v395_v38, %v277_v56  ;;  %v402_v41 = vadd.f32 %v391_v39, %v275_v58  ;;  %v446_v58 = vmul.f32 %v2104_v21, %v438_v52 }
 0x47d   :  { %2109 = vtanh.f32 %v404_v40 }
 0x47e   :  { %2111 = vtanh.f32 %v402_v41  ;;  %v397_v42 = vpop.permute.xlu0 %396  ;;  %v393_v43 = vpop.permute.xlu1 %392 }
 0x47f   :  { %v405_v44 = vadd.f32 %v397_v42, %v278_v63  ;;  %v403_v45 = vadd.f32 %v393_v43, %v276_v60  ;;  %v441_v60 = vrot.slane %v2376_v24, 7  ;;  %v439_v63 = vrot.slane %v2374_v16, 7  ;;  %v497_v42 = vld [vmem:[%s3242_s0 + $0x4] sm:$0x2]  ;;  %v496_v43 = vld [vmem:[%s3242_s0] sm:$0x2] }
 0x481   :  { %2113 = vtanh.f32 %v405_v44  ;;  %v449_v7 = vmul.f32 %v2108_v31, %v441_v60  ;;  %v447_v24 = vmul.f32 %v2106_v28, %v439_v63  ;;  %v501_v44 = vunpack.c.l.bf16 %v497_v42 }
 0x482   :  { %2115 = vtanh.f32 %v403_v45  ;;  %v498_v45 = vld [vmem:[%s3242_s0 + $0x8] sm:$0x2] }
 0x48a   :  { %v2110_v46 = vpop.eup %2109 }
 0x48b   :  { %v2112_v47 = vpop.eup %2111  ;;  %422 = vrot.lane.b32.xlu0 %v2110_v46, %s2268_s10  ;;  %v500_v46 = vunpack.c.l.bf16 %v496_v43 }
 0x48c   :  { %418 = vrot.lane.b32.xlu1 %v2112_v47, %s2268_s10  ;;  %v499_v47 = vld [vmem:[%s3242_s0 + $0xc] sm:$0x2] }
 0x48e   :  { %v2114_v48 = vpop.eup %2113 }
 0x48f   :  { %v2116_v49 = vpop.eup %2115  ;;  %424 = vrot.lane.b32.xlu0 %v2114_v48, %s2268_s10  ;;  %v502_v48 = vunpack.c.l.bf16 %v498_v45 }
 0x490   :  { %420 = vrot.lane.b32.xlu1 %v2116_v49, %s2268_s10 }
 0x4fd   :  { %v423_v53 = vpop.permute.xlu0 %422 }
 0x4fe   :  { %v432_v56 = vmul.f32 %v423_v53, %v412_v51  ;;  %v419_v57 = vpop.permute.xlu1 %418  ;;  %v503_v51 = vunpack.c.l.bf16 %v499_v47 }
 0x4ff   :  { %v430_v59 = vmul.f32 %v419_v57, %v410_v54 }
 0x500   :  { %v2443_v61 = vadd.f32 %v448_v55, %v432_v56 }
 0x501   :  { %v2446_v3 = vadd.f32 %v446_v58, %v430_v59  ;;  %v425_v26 = vpop.permute.xlu0 %424 }
 0x502   :  { %v2450_v33 = vpack.c.bf16 %v2443_v61, %v2443_v61  ;;  %v433_v8 = vmul.f32 %v425_v26, %v413_v62  ;;  %v421_v9 = vpop.permute.xlu1 %420 }
 0x503   :  { %v2454_v10 = vpack.c.bf16 %v2446_v3, %v2446_v3  ;;  %v431_v11 = vmul.f32 %v421_v9, %v411_v5 }
 0x504   :  { %v2456_v12 = vadd.f32 %v449_v7, %v433_v8  ;;  %v464_v14 = vunpack.c.l.b16 %v2450_v33 }
 0x505   :  { %v462_v16 = vunpack.c.l.b16 %v2454_v10  ;;  %v2459_v13 = vadd.f32 %v447_v24, %v431_v11 }
 0x506   :  { %v2464_v15 = vpack.c.bf16 %v2456_v12, %v2456_v12  ;;  %v506_v21 = vrot.slane %v464_v14, 7 }
 0x507   :  { %v2468_v17 = vpack.c.bf16 %v2459_v13, %v2459_v13  ;;  %v504_v19 = vrot.slane %v462_v16, 1  ;;  %v661_v42 = vrot.slane %v2459_v13, 7 }
 0x508   :  { %v465_v18 = vunpack.c.l.b16 %v2464_v15 }
 0x509   :  { %v463_v20 = vunpack.c.l.b16 %v2468_v17 }
 0x50a   :  { %v508_v22 = vrot.slane %v465_v18, 6 }
 0x50b   :  { %v505_v23 = vsel %vm280_vm3, %v463_v20, %v504_v19 }
 0x50c   :  { %v507_v4 = vsel %vm283_vm4, %v506_v21, %v505_v23 }
 0x50d   :  { %v509_v27 = vsel %vm286_vm5, %v508_v22, %v507_v4 }
 0x50e   :  { %v510_v28 = vpack.c.b16 %v509_v27, %v509_v27 }
 0x510   :  { %511 = vrot.lane.b32.xlu1 %v510_v28, %s2268_s10 }
 0x582   :  { %v512_v31 = vpop.permute.xlu1 %511 }
 0x583   :  { %2019 = vmatmul.mubr.msk.bf16.vlgmr.msra.gmra.mxu0 %vm60_vm2, %v512_v31 }
 0x584   :  { %2031 = vmatpush3.bf16.msra.mxu0 %v2303_v1  ;;  %2034 = vmatprep.mubr.msk.bf16.mxu0 %vm2265_vm0, %v2264_v0 }
 0x585   :  { %2032 = vmatprep.subr.bf16.mxu0 %v2264_v0 }
 0x588   :  { %2033 = vmatpush3.bf16.msra.mxu0 %v2314_v2 }
 0x589   :  { %2046 = vmatprep.subr.bf16.mxu0 %v2264_v0 }
 0x643   :  { %v550_v32 = vpop.f32.mrf.mxu0 }
 0x644   :  { %v551_v34 = vadd.f32 %v2340_v6, %v550_v32 }
 0x645   :  { %v2020_v35 = vpop.f32.mrf.mxu0 }
 0x646   :  { %v558_v37 = vrot.slane %v551_v34, 7  ;;  %v557_v38 = vrot.slane %v551_v34, 6  ;;  %v559_v41 = vrot.slane %v551_v34, 1  ;;  %v566_v52 = vadd.f32 %v551_v34, %v502_v48 }
 0x647   :  { %v553_v39 = vpop.f32.mrf.mxu0 }
 0x648   :  { %594 = vrot.lane.b32.xlu1 %v558_v37, %s2266_s25  ;;  %592 = vrot.lane.b32.xlu0 %v557_v38, %s2266_s25  ;;  %v565_v49 = vadd.f32 %v558_v37, %v501_v44  ;;  %v564_v50 = vadd.f32 %v557_v38, %v500_v46  ;;  %v567_v55 = vadd.f32 %v559_v41, %v503_v51  ;;  %v1891_v56 = vmul.f32 -1.442695, %v566_v52 }
 0x649   :  { %v2021_v40 = vpop.f32.mrf.mxu0  ;;  %v662_v52 = vrot.slane %v2443_v61, 7 }
 0x64a   :  { %v1890_v53 = vmul.f32 -1.442695, %v565_v49  ;;  %v1889_v54 = vmul.f32 -1.442695, %v564_v50  ;;  %v1892_v57 = vmul.f32 -1.442695, %v567_v55 }
 0x64b   :  { %v663_v55 = vrot.slane %v2456_v12, 7 }
 0x64c   :  { %596 = vrot.lane.b32.xlu1 %v551_v34, %s2266_s25  ;;  %598 = vrot.lane.b32.xlu0 %v559_v41, %s2266_s25  ;;  %2117 = vpow2.f32 %v1890_v53 }
 0x64d   :  { %2119 = vpow2.f32 %v1889_v54 }
 0x64e   :  { %2121 = vpow2.f32 %v1891_v56 }
 0x64f   :  { %2123 = vpow2.f32 %v1892_v57 }
 0x659   :  { %v2118_v58 = vpop.eup %2117 }
 0x65a   :  { %v2120_v59 = vpop.eup %2119  ;;  %v581_v60 = vadd.f32 1.0, %v2118_v58 }
 0x65b   :  { %v2122_v62 = vpop.eup %2121  ;;  %v580_v63 = vadd.f32 1.0, %v2120_v59 }
 0x65c   :  { %v2124_v26 = vpop.eup %2123  ;;  %v582_v5 = vadd.f32 1.0, %v2122_v62  ;;  %2125 = vrcp.f32 %v581_v60 }
 0x65d   :  { %2127 = vrcp.f32 %v580_v63  ;;  %v583_v7 = vadd.f32 1.0, %v2124_v26 }
 0x65e   :  { %2129 = vrcp.f32 %v582_v5 }
 0x65f   :  { %2131 = vrcp.f32 %v583_v7 }
 0x669   :  { %v2126_v8 = vpop.eup %2125 }
 0x66a   :  { %v2128_v9 = vpop.eup %2127  ;;  %v633_v43 = vsub.f32 1.0, %v2126_v8  ;;  %v669_v47 = vmul.f32 %v2126_v8, %v661_v42 }
 0x66b   :  { %v2130_v18 = vpop.eup %2129 }
 0x66c   :  { %v2132_v19 = vpop.eup %2131  ;;  %v634_v54 = vsub.f32 1.0, %v2130_v18  ;;  %v670_v58 = vmul.f32 %v2130_v18, %v662_v52 }
 0x66d   :  { %v635_v57 = vsub.f32 1.0, %v2132_v19  ;;  %v671_v61 = vmul.f32 %v2132_v19, %v663_v55 }
 0x6ba   :  { %v595_v24 = vpop.permute.xlu1 %594  ;;  %v593_v11 = vpop.permute.xlu0 %592 }
 0x6bb   :  { %v605_v16 = vmul.f32 %v2126_v8, %v595_v24  ;;  %v604_v14 = vmul.f32 %v2128_v9, %v593_v11 }
 0x6bd   :  { %614 = vrot.lane.b32.xlu1 %v605_v16, %s2266_s25  ;;  %612 = vrot.lane.b32.xlu0 %v604_v14, %s2266_s25 }
 0x6be   :  { %v597_v20 = vpop.permute.xlu1 %596  ;;  %v599_v21 = vpop.permute.xlu0 %598 }
 0x6bf   :  { %v606_v22 = vmul.f32 %v2130_v18, %v597_v20  ;;  %v607_v23 = vmul.f32 %v2132_v19, %v599_v21 }
 0x6c1   :  { %616 = vrot.lane.b32.xlu1 %v606_v22, %s2266_s25  ;;  %618 = vrot.lane.b32.xlu0 %v607_v23, %s2266_s25 }
 0x72f   :  { %v615_v4 = vpop.permute.xlu1 %614  ;;  %v613_v27 = vpop.permute.xlu0 %612 }
 0x730   :  { %v625_v28 = vadd.f32 %v615_v4, %v501_v44  ;;  %v624_v31 = vadd.f32 %v613_v27, %v500_v46  ;;  %v660_v44 = vrot.slane %v2446_v3, 7  ;;  %v632_v46 = vsub.f32 1.0, %v2128_v9 }
 0x732   :  { %2133 = vtanh.f32 %v625_v28  ;;  %v668_v50 = vmul.f32 %v2128_v9, %v660_v44 }
 0x733   :  { %2135 = vtanh.f32 %v624_v31  ;;  %v617_v32 = vpop.permute.xlu1 %616  ;;  %v619_v34 = vpop.permute.xlu0 %618 }
 0x734   :  { %v626_v35 = vadd.f32 %v617_v32, %v502_v48  ;;  %v627_v37 = vadd.f32 %v619_v34, %v503_v51 }
 0x736   :  { %2137 = vtanh.f32 %v626_v35 }
 0x737   :  { %2139 = vtanh.f32 %v627_v37 }
 0x73f   :  { %v2134_v38 = vpop.eup %2133 }
 0x740   :  { %v2136_v39 = vpop.eup %2135  ;;  %642 = vrot.lane.b32.xlu1 %v2134_v38, %s2268_s10  ;;  %v722_v38 = vld [vmem:[%s3242_s0 + $0xc] sm:$0x2] }
 0x741   :  { %640 = vrot.lane.b32.xlu0 %v2136_v39, %s2268_s10 }
 0x743   :  { %v2138_v40 = vpop.eup %2137 }
 0x744   :  { %v2140_v41 = vpop.eup %2139  ;;  %644 = vrot.lane.b32.xlu1 %v2138_v40, %s2268_s10  ;;  %v721_v40 = vld [vmem:[%s3242_s0 + $0x8] sm:$0x2] }
 0x745   :  { %646 = vrot.lane.b32.xlu0 %v2140_v41, %s2268_s10  ;;  %v726_v41 = vunpack.c.l.bf16 %v722_v38  ;;  %v725_v44 = vunpack.c.l.bf16 %v721_v40 }
 0x7b2   :  { %v643_v45 = vpop.permute.xlu1 %642 }
 0x7b3   :  { %v653_v48 = vmul.f32 %v643_v45, %v633_v43  ;;  %v641_v49 = vpop.permute.xlu0 %640 }
 0x7b4   :  { %v652_v51 = vmul.f32 %v641_v49, %v632_v46 }
 0x7b5   :  { %v2511_v53 = vadd.f32 %v669_v47, %v653_v48 }
 0x7b6   :  { %v2514_v56 = vadd.f32 %v668_v50, %v652_v51  ;;  %v645_v13 = vpop.permute.xlu1 %644 }
 0x7b7   :  { %v2518_v3 = vpack.c.bf16 %v2511_v53, %v2511_v53  ;;  %v654_v59 = vmul.f32 %v645_v13, %v634_v54  ;;  %v647_v60 = vpop.permute.xlu0 %646 }
 0x7b8   :  { %v2522_v62 = vpack.c.bf16 %v2514_v56, %v2514_v56  ;;  %v655_v63 = vmul.f32 %v647_v60, %v635_v57  ;;  %v883_v38 = vrot.slane %v2514_v56, 7 }
 0x7b9   :  { %v685_v26 = vunpack.c.l.b16 %v2518_v3  ;;  %v2525_v12 = vadd.f32 %v670_v58, %v654_v59 }
 0x7ba   :  { %v684_v5 = vunpack.c.l.b16 %v2522_v62  ;;  %v2528_v7 = vadd.f32 %v671_v61, %v655_v63 }
 0x7bb   :  { %v728_v8 = vrot.slane %v685_v26, 1  ;;  %v2532_v9 = vpack.c.bf16 %v2525_v12, %v2525_v12 }
 0x7bc   :  { %v727_v24 = vrot.slane %v684_v5, 2  ;;  %v2536_v11 = vpack.c.bf16 %v2528_v7, %v2528_v7 }
 0x7bd   :  { %v686_v16 = vunpack.c.l.b16 %v2532_v9 }
 0x7be   :  { %v687_v14 = vunpack.c.l.b16 %v2536_v11  ;;  %v729_v18 = vsel %vm280_vm3, %v728_v8, %v727_v24 }
 0x7bf   :  { %v730_v19 = vsel %vm283_vm4, %v686_v16, %v729_v18 }
 0x7c0   :  { %v731_v20 = vrot.slane %v687_v14, 7 }
 0x7c2   :  { %v732_v21 = vsel %vm286_vm5, %v731_v20, %v730_v19 }
 0x7c3   :  { %v733_v22 = vpack.c.b16 %v732_v21, %v732_v21 }
 0x7c5   :  { %734 = vrot.lane.b32.xlu0 %v733_v22, %s2268_s10 }
 0x837   :  { %v735_v23 = vpop.permute.xlu0 %734 }
 0x838   :  { %2027 = vmatmul.mubr.msk.bf16.vlgmr.msra.gmra.mxu1 %vm60_vm2, %v735_v23 }
 0x839   :  { %2039 = vmatpush3.bf16.msra.mxu1 %v2303_v1  ;;  %2042 = vmatprep.mubr.msk.bf16.mxu1 %vm2265_vm0, %v2264_v0 }
 0x83a   :  { %2040 = vmatprep.subr.bf16.mxu1 %v2264_v0 }
 0x83d   :  { %2041 = vmatpush3.bf16.msra.mxu1 %v2314_v2  ;;  %v720_v2 = vld [vmem:[%s3242_s0 + $0x4] sm:$0x2] }
 0x83e   :  { %2054 = vmatprep.subr.bf16.mxu1 %v2264_v0  ;;  %v724_v37 = vunpack.c.l.bf16 %v720_v2 }
 0x8f8   :  { %v773_v4 = vpop.f32.mrf.mxu1 }
 0x8f9   :  { %v774_v27 = vadd.f32 %v2340_v6, %v773_v4  ;;  %v719_v6 = vld [vmem:[%s3242_s0] sm:$0x2] }
 0x8fa   :  { %v2028_v28 = vpop.f32.mrf.mxu1  ;;  %v723_v39 = vunpack.c.l.bf16 %v719_v6  ;;  %v884_v6 = vrot.slane %v2511_v53, 7 }
 0x8fb   :  { %v781_v31 = vrot.slane %v774_v27, 6  ;;  %v780_v32 = vrot.slane %v774_v27, 5  ;;  %v782_v35 = vrot.slane %v774_v27, 7  ;;  %v790_v45 = vadd.f32 %v774_v27, %v726_v41 }
 0x8fc   :  { %v776_v34 = vpop.f32.mrf.mxu1 }
 0x8fd   :  { %817 = vrot.lane.b32.xlu0 %v781_v31, %s2266_s25  ;;  %815 = vrot.lane.b32.xlu1 %v780_v32, %s2266_s25  ;;  %v788_v42 = vadd.f32 %v781_v31, %v724_v37  ;;  %v787_v43 = vadd.f32 %v780_v32, %v723_v39  ;;  %v789_v48 = vadd.f32 %v782_v35, %v725_v44  ;;  %v1901_v49 = vmul.f32 -1.442695, %v790_v45 }
 0x8fe   :  { %v2029_v1 = vpop.f32.mrf.mxu1 }
 0x8ff   :  { %v1899_v46 = vmul.f32 -1.442695, %v788_v42  ;;  %v1898_v47 = vmul.f32 -1.442695, %v787_v43  ;;  %v1900_v50 = vmul.f32 -1.442695, %v789_v48 }
 0x901   :  { %821 = vrot.lane.b32.xlu0 %v774_v27, %s2266_s25  ;;  %819 = vrot.lane.b32.xlu1 %v782_v35, %s2266_s25  ;;  %2141 = vpow2.f32 %v1899_v46  ;;  %v886_v46 = vrot.slane %v2528_v7, 7 }
 0x902   :  { %2143 = vpow2.f32 %v1898_v47 }
 0x903   :  { %2145 = vpow2.f32 %v1901_v49  ;;  %v885_v49 = vrot.slane %v2525_v12, 7 }
 0x904   :  { %2147 = vpow2.f32 %v1900_v50 }
 0x90e   :  { %v2142_v51 = vpop.eup %2141 }
 0x90f   :  { %v2144_v52 = vpop.eup %2143  ;;  %v804_v54 = vadd.f32 1.0, %v2142_v51 }
 0x910   :  { %v2146_v55 = vpop.eup %2145  ;;  %v803_v13 = vadd.f32 1.0, %v2144_v52 }
 0x911   :  { %v2148_v57 = vpop.eup %2147  ;;  %v806_v58 = vadd.f32 1.0, %v2146_v55  ;;  %2149 = vrcp.f32 %v804_v54 }
 0x912   :  { %2151 = vrcp.f32 %v803_v13  ;;  %v805_v59 = vadd.f32 1.0, %v2148_v57 }
 0x913   :  { %2153 = vrcp.f32 %v806_v58 }
 0x914   :  { %2155 = vrcp.f32 %v805_v59 }
 0x91e   :  { %v2150_v60 = vpop.eup %2149 }
 0x91f   :  { %v2152_v61 = vpop.eup %2151 }
 0x920   :  { %v2154_v24 = vpop.eup %2153  ;;  %v855_v40 = vsub.f32 1.0, %v2152_v61 }
 0x921   :  { %v2156_v16 = vpop.eup %2155  ;;  %v858_v48 = vsub.f32 1.0, %v2154_v24  ;;  %v894_v52 = vmul.f32 %v2154_v24, %v886_v46 }
 0x922   :  { %v857_v51 = vsub.f32 1.0, %v2156_v16  ;;  %v893_v7 = vmul.f32 %v2156_v16, %v885_v49 }
 0x96f   :  { %v818_v63 = vpop.permute.xlu0 %817  ;;  %v816_v26 = vpop.permute.xlu1 %815 }
 0x970   :  { %v828_v5 = vmul.f32 %v2150_v60, %v818_v63  ;;  %v827_v8 = vmul.f32 %v2152_v61, %v816_v26 }
 0x972   :  { %837 = vrot.lane.b32.xlu0 %v828_v5, %s2266_s25  ;;  %835 = vrot.lane.b32.xlu1 %v827_v8, %s2266_s25 }
 0x973   :  { %v822_v14 = vpop.permute.xlu0 %821  ;;  %v820_v18 = vpop.permute.xlu1 %819 }
 0x974   :  { %v830_v19 = vmul.f32 %v2154_v24, %v822_v14  ;;  %v829_v20 = vmul.f32 %v2156_v16, %v820_v18 }
 0x976   :  { %841 = vrot.lane.b32.xlu0 %v830_v19, %s2266_s25  ;;  %839 = vrot.lane.b32.xlu1 %v829_v20, %s2266_s25 }
 0x9e4   :  { %v838_v21 = vpop.permute.xlu0 %837  ;;  %v836_v22 = vpop.permute.xlu1 %835 }
 0x9e5   :  { %v848_v23 = vadd.f32 %v838_v21, %v724_v37  ;;  %v847_v4 = vadd.f32 %v836_v22, %v723_v39  ;;  %v856_v37 = vsub.f32 1.0, %v2150_v60  ;;  %v2616_v22 = vld [vmem:[%s3239_s2 + $0x8] sm:$0xff]  }
 0x9e7   :  { %2157 = vtanh.f32 %v848_v23  ;;  %v2625_v23 = vld [vmem:[%s3239_s2] sm:$0xff]  }
 0x9e8   :  { %2159 = vtanh.f32 %v847_v4  ;;  %v842_v27 = vpop.permute.xlu0 %841  ;;  %v840_v28 = vpop.permute.xlu1 %839 }
 0x9e9   :  { %v850_v31 = vadd.f32 %v842_v27, %v726_v41  ;;  %v849_v32 = vadd.f32 %v840_v28, %v725_v44  ;;  %v892_v41 = vmul.f32 %v2150_v60, %v884_v6  ;;  %v891_v44 = vmul.f32 %v2152_v61, %v883_v38  ;;  %v2631_v27 = vld [vmem:[%s3241_s3] ss:$0 sm:$0xff]  ;;  %v941_v38 = vld [vmem:[%s3242_s0] sm:$0x4] }
 0x9eb   :  { %2161 = vtanh.f32 %v850_v31 }
 0x9ec   :  { %2163 = vtanh.f32 %v849_v32 }
 0x9f4   :  { %v2158_v34 = vpop.eup %2157 }
 0x9f5   :  { %v2160_v1 = vpop.eup %2159  ;;  %865 = vrot.lane.b32.xlu0 %v2158_v34, %s2268_s10 }
 0x9f6   :  { %863 = vrot.lane.b32.xlu1 %v2160_v1, %s2268_s10 }
 0x9f8   :  { %v2162_v35 = vpop.eup %2161 }
 0x9f9   :  { %v2164_v2 = vpop.eup %2163  ;;  %869 = vrot.lane.b32.xlu0 %v2162_v35, %s2268_s10 }
 0x9fa   :  { %867 = vrot.lane.b32.xlu1 %v2164_v2, %s2268_s10 }
 0xa67   :  { %v866_v39 = vpop.permute.xlu0 %865 }
 0xa68   :  { %v876_v42 = vmul.f32 %v866_v39, %v856_v37  ;;  %v864_v43 = vpop.permute.xlu1 %863  ;;  %v942_v37 = vld [vmem:[%s3242_s0 + $0x4] sm:$0x4] }
 0xa69   :  { %v875_v45 = vmul.f32 %v864_v43, %v855_v40  ;;  %v946_v39 = vunpack.c.l.bf16 %v942_v37  ;;  %v945_v40 = vunpack.c.l.bf16 %v941_v38 }
 0xa6a   :  { %v2579_v47 = vadd.f32 %v892_v41, %v876_v42  ;;  %v944_v41 = vld [vmem:[%s3242_s0 + $0xc] sm:$0x4]  ;;  %v943_v42 = vld [vmem:[%s3242_s0 + $0x8] sm:$0x4] }
 0xa6b   :  { %v2582_v50 = vadd.f32 %v891_v44, %v875_v45  ;;  %v870_v53 = vpop.permute.xlu0 %869  ;;  %v948_v44 = vunpack.c.l.bf16 %v944_v41  ;;  %v947_v46 = vunpack.c.l.bf16 %v943_v42 }
 0xa6c   :  { %v2586_v56 = vpack.c.bf16 %v2579_v47, %v2579_v47  ;;  %v878_v54 = vmul.f32 %v870_v53, %v858_v48  ;;  %v868_v55 = vpop.permute.xlu1 %867 }
 0xa6d   :  { %v2590_v13 = vpack.c.bf16 %v2582_v50, %v2582_v50  ;;  %v877_v57 = vmul.f32 %v868_v55, %v857_v51 }
 0xa6e   :  { %v908_v58 = vunpack.c.l.b16 %v2586_v56  ;;  %v2593_v12 = vadd.f32 %v894_v52, %v878_v54 }
 0xa6f   :  { %v907_v59 = vunpack.c.l.b16 %v2590_v13  ;;  %v2596_v60 = vadd.f32 %v893_v7, %v877_v57 }
 0xa70   :  { %v950_v63 = vrot.slane %v908_v58, 2  ;;  %v2604_v5 = vpack.c.bf16 %v2593_v12, %v2593_v12 }
 0xa71   :  { %v2600_v61 = vpack.c.bf16 %v2596_v60, %v2596_v60  ;;  %v949_v26 = vrot.slane %v907_v59, 3 }
 0xa72   :  { %v910_v16 = vunpack.c.l.b16 %v2604_v5 }
 0xa73   :  { %v909_v8 = vunpack.c.l.b16 %v2600_v61  ;;  %v951_v14 = vsel %vm280_vm3, %v950_v63, %v949_v26 }
 0xa75   :  { %v952_v24 = vrot.slane %v909_v8, 1 }
 0xa77   :  { %v953_v18 = vsel %vm283_vm4, %v952_v24, %v951_v14 }
 0xa78   :  { %v954_v19 = vsel %vm286_vm5, %v910_v16, %v953_v18 }
 0xa79   :  { %v955_v20 = vpack.c.b16 %v954_v19, %v954_v19 }
 0xa7b   :  { %956 = vrot.lane.b32.xlu1 %v955_v20, %s2268_s10 }
 0xaed   :  { %v957_v21 = vpop.permute.xlu1 %956 }
 0xaee   :  { %2035 = vmatmul.mubr.msk.bf16.vlgmr.msra.gmra.mxu0 %vm60_vm2, %v957_v21 }
 0xaef   :  { %2047 = vmatpush3.bf16.msra.mxu0 %v2616_v22  ;;  %2050 = vmatprep.mubr.msk.bf16.mxu0 %vm2265_vm0, %v2264_v0 }
 0xaf0   :  { %2048 = vmatprep.subr.bf16.mxu0 %v2264_v0 }
 0xaf3   :  { %2049 = vmatpush3.bf16.msra.mxu0 %v2625_v23 }
 0xbae   :  { %v995_v4 = vpop.f32.mrf.mxu0 }
 0xbaf   :  { %v996_v28 = vadd.f32 %v2631_v27, %v995_v4 }
 0xbb0   :  { %v2036_v31 = vpop.f32.mrf.mxu0 }
 0xbb1   :  { %v1003_v32 = vrot.slane %v996_v28, 5  ;;  %v1002_v34 = vrot.slane %v996_v28, 4  ;;  %v1005_v2 = vrot.slane %v996_v28, 7  ;;  %v1004_v6 = vrot.slane %v996_v28, 6 }
 0xbb2   :  { %v998_v1 = vpop.f32.mrf.mxu0 }
 0xbb3   :  { %1040 = vrot.lane.b32.xlu1 %v1003_v32, %s2266_s25  ;;  %1038 = vrot.lane.b32.xlu0 %v1002_v34, %s2266_s25  ;;  %v1011_v43 = vadd.f32 %v1003_v32, %v946_v39  ;;  %v1010_v45 = vadd.f32 %v1002_v34, %v945_v40  ;;  %v1013_v49 = vadd.f32 %v1005_v2, %v948_v44 }
 0xbb4   :  { %v2037_v35 = vpop.f32.mrf.mxu0  ;;  %v1012_v51 = vadd.f32 %v1004_v6, %v947_v46 }
 0xbb5   :  { %v1908_v48 = vmul.f32 -1.442695, %v1011_v43  ;;  %v1907_v53 = vmul.f32 -1.442695, %v1010_v45  ;;  %v1910_v52 = vmul.f32 -1.442695, %v1013_v49 }
 0xbb6   :  { %v1909_v54 = vmul.f32 -1.442695, %v1012_v51 }
 0xbb7   :  { %1044 = vrot.lane.b32.xlu1 %v1005_v2, %s2266_s25  ;;  %1042 = vrot.lane.b32.xlu0 %v1004_v6, %s2266_s25  ;;  %2165 = vpow2.f32 %v1908_v48 }
 0xbb8   :  { %2167 = vpow2.f32 %v1907_v53 }
 0xbb9   :  { %2169 = vpow2.f32 %v1910_v52 }
 0xbba   :  { %2171 = vpow2.f32 %v1909_v54 }
 0xbc4   :  { %v2166_v55 = vpop.eup %2165 }
 0xbc5   :  { %v2168_v7 = vpop.eup %2167  ;;  %v1027_v57 = vadd.f32 1.0, %v2166_v55 }
 0xbc6   :  { %v2170_v58 = vpop.eup %2169  ;;  %v1026_v59 = vadd.f32 1.0, %v2168_v7 }
 0xbc7   :  { %v2172_v63 = vpop.eup %2171  ;;  %2173 = vrcp.f32 %v1027_v57  ;;  %v1029_v26 = vadd.f32 1.0, %v2170_v58  ;;  %v1109_v57 = vrot.slane %v2593_v12, 7 }
 0xbc8   :  { %2175 = vrcp.f32 %v1026_v59  ;;  %v1028_v8 = vadd.f32 1.0, %v2172_v63  ;;  %v1108_v63 = vrot.slane %v2596_v60, 7 }
 0xbc9   :  { %2177 = vrcp.f32 %v1029_v26 }
 0xbca   :  { %2179 = vrcp.f32 %v1028_v8 }
 0xbd4   :  { %v2174_v24 = vpop.eup %2173 }
 0xbd5   :  { %v2176_v16 = vpop.eup %2175 }
 0xbd6   :  { %v2178_v21 = vpop.eup %2177  ;;  %v1078_v53 = vsub.f32 1.0, %v2176_v16 }
 0xbd7   :  { %v2180_v4 = vpop.eup %2179  ;;  %v1081_v59 = vsub.f32 1.0, %v2178_v21 }
 0xbd8   :  { %v1080_v8 = vsub.f32 1.0, %v2180_v4  ;;  %v1116_v12 = vmul.f32 %v2180_v4, %v1108_v63 }
 0xc25   :  { %v1041_v14 = vpop.permute.xlu1 %1040  ;;  %v1039_v18 = vpop.permute.xlu0 %1038 }
 0xc26   :  { %v1051_v19 = vmul.f32 %v2174_v24, %v1041_v14  ;;  %v1050_v20 = vmul.f32 %v2176_v16, %v1039_v18 }
 0xc28   :  { %1060 = vrot.lane.b32.xlu1 %v1051_v19, %s2266_s25  ;;  %1058 = vrot.lane.b32.xlu0 %v1050_v20, %s2266_s25 }
 0xc29   :  { %v1045_v28 = vpop.permute.xlu1 %1044  ;;  %v1043_v31 = vpop.permute.xlu0 %1042 }
 0xc2a   :  { %v1053_v32 = vmul.f32 %v2178_v21, %v1045_v28  ;;  %v1052_v34 = vmul.f32 %v2180_v4, %v1043_v31 }
 0xc2c   :  { %1064 = vrot.lane.b32.xlu1 %v1053_v32, %s2266_s25  ;;  %1062 = vrot.lane.b32.xlu0 %v1052_v34, %s2266_s25 }
 0xc9a   :  { %v1061_v1 = vpop.permute.xlu1 %1060  ;;  %v1059_v35 = vpop.permute.xlu0 %1058 }
 0xc9b   :  { %v1071_v2 = vadd.f32 %v1061_v1, %v946_v39  ;;  %v1070_v6 = vadd.f32 %v1059_v35, %v945_v40  ;;  %v1107_v39 = vrot.slane %v2579_v47, 7  ;;  %v1079_v40 = vsub.f32 1.0, %v2174_v24 }
 0xc9d   :  { %2181 = vtanh.f32 %v1071_v2  ;;  %v1115_v51 = vmul.f32 %v2174_v24, %v1107_v39  ;;  %v1117_v24 = vmul.f32 %v2178_v21, %v1109_v57 }
 0xc9e   :  { %2183 = vtanh.f32 %v1070_v6  ;;  %v1065_v37 = vpop.permute.xlu1 %1064  ;;  %v1063_v38 = vpop.permute.xlu0 %1062 }
 0xc9f   :  { %v1073_v41 = vadd.f32 %v1065_v37, %v948_v44  ;;  %v1072_v42 = vadd.f32 %v1063_v38, %v947_v46  ;;  %v1106_v44 = vrot.slane %v2582_v50, 7 }
 0xca1   :  { %2185 = vtanh.f32 %v1073_v41  ;;  %v1114_v55 = vmul.f32 %v2176_v16, %v1106_v44 }
 0xca2   :  { %2187 = vtanh.f32 %v1072_v42 }
 0xcaa   :  { %v2182_v43 = vpop.eup %2181 }
 0xcab   :  { %v2184_v45 = vpop.eup %2183  ;;  %1088 = vrot.lane.b32.xlu1 %v2182_v43, %s2268_s10 }
 0xcac   :  { %1086 = vrot.lane.b32.xlu0 %v2184_v45, %s2268_s10 }
 0xcae   :  { %v2186_v48 = vpop.eup %2185 }
 0xcaf   :  { %v2188_v49 = vpop.eup %2187  ;;  %1092 = vrot.lane.b32.xlu1 %v2186_v48, %s2268_s10 }
 0xcb0   :  { %1090 = vrot.lane.b32.xlu0 %v2188_v49, %s2268_s10 }
 0xd1d   :  { %v1089_v46 = vpop.permute.xlu1 %1088 }
 0xd1e   :  { %v1099_v52 = vmul.f32 %v1089_v46, %v1079_v40  ;;  %v1087_v54 = vpop.permute.xlu0 %1086 }
 0xd1f   :  { %v1098_v7 = vmul.f32 %v1087_v54, %v1078_v53  ;;  %v1168_v54 = vld [vmem:[%s3242_s0 + $0xc] sm:$0x4] }
 0xd20   :  { %v2661_v58 = vadd.f32 %v1115_v51, %v1099_v52  ;;  %v1172_v57 = vunpack.c.l.bf16 %v1168_v54 }
 0xd21   :  { %v2664_v26 = vadd.f32 %v1114_v55, %v1098_v7  ;;  %v1093_v47 = vpop.permute.xlu1 %1092  ;;  %v1167_v55 = vld [vmem:[%s3242_s0 + $0x8] sm:$0x4] }
 0xd22   :  { %v2668_v50 = vpack.c.bf16 %v2661_v58, %v2661_v58  ;;  %v1101_v14 = vmul.f32 %v1093_v47, %v1081_v59  ;;  %v1091_v18 = vpop.permute.xlu0 %1090  ;;  %v1171_v63 = vunpack.c.l.bf16 %v1167_v55 }
 0xd23   :  { %v2672_v16 = vpack.c.bf16 %v2664_v26, %v2664_v26  ;;  %v1100_v19 = vmul.f32 %v1091_v18, %v1080_v8 }
 0xd24   :  { %v1131_v20 = vunpack.c.l.b16 %v2668_v50  ;;  %v2675_v60 = vadd.f32 %v1117_v24, %v1101_v14 }
 0xd25   :  { %v1130_v28 = vunpack.c.l.b16 %v2672_v16  ;;  %v2678_v31 = vadd.f32 %v1116_v12, %v1100_v19 }
 0xd26   :  { %v2682_v32 = vpack.c.bf16 %v2675_v60, %v2675_v60  ;;  %v1174_v34 = vrot.slane %v1131_v20, 3 }
 0xd27   :  { %v2686_v21 = vpack.c.bf16 %v2678_v31, %v2678_v31  ;;  %v1173_v1 = vrot.slane %v1130_v28, 4 }
 0xd28   :  { %v1133_v4 = vunpack.c.l.b16 %v2682_v32 }
 0xd29   :  { %v1132_v35 = vunpack.c.l.b16 %v2686_v21  ;;  %v1175_v37 = vsel %vm280_vm3, %v1174_v34, %v1173_v1 }
 0xd2a   :  { %v1178_v2 = vrot.slane %v1133_v4, 1 }
 0xd2b   :  { %v1176_v6 = vrot.slane %v1132_v35, 2 }
 0xd2d   :  { %v1177_v38 = vsel %vm283_vm4, %v1176_v6, %v1175_v37 }
 0xd2e   :  { %v1179_v41 = vsel %vm286_vm5, %v1178_v2, %v1177_v38 }
 0xd2f   :  { %v1180_v42 = vpack.c.b16 %v1179_v41, %v1179_v41 }
 0xd31   :  { %1181 = vrot.lane.b32.xlu0 %v1180_v42, %s2268_s10 }
 0xda3   :  { %v1182_v43 = vpop.permute.xlu0 %1181 }
 0xda4   :  { %2043 = vmatmul.mubr.msk.bf16.vlgmr.msra.gmra.mxu1 %vm60_vm2, %v1182_v43 }
 0xda5   :  { %2055 = vmatpush3.bf16.msra.mxu1 %v2616_v22  ;;  %2058 = vmatprep.mubr.msk.bf16.mxu1 %vm2265_vm0, %v2264_v0  ;;  %vm1600_vm0 = vsmask.f32 3328 }
 0xda6   :  { %2056 = vmatprep.subr.bf16.mxu1 %v2264_v0  ;;  %v1166_v0 = vld [vmem:[%s3242_s0 + $0x4] sm:$0x4]  ;;  %vm3046_vm1 = vmand %vm1599_vm15, %vm1600_vm0 }
 0xda7   :  { %v1170_v51 = vunpack.c.l.bf16 %v1166_v0 }
 0xda9   :  { %2057 = vmatpush3.bf16.msra.mxu1 %v2625_v23  ;;  %v1165_v23 = vld [vmem:[%s3242_s0] sm:$0x4] }
 0xdaa   :  { %v1169_v52 = vunpack.c.l.bf16 %v1165_v23 }
 0xe64   :  { %v1220_v45 = vpop.f32.mrf.mxu1 }
 0xe65   :  { %v1221_v48 = vadd.f32 %v2631_v27, %v1220_v45 }
 0xe66   :  { %v2044_v49 = vpop.f32.mrf.mxu1 }
 0xe67   :  { %v1228_v39 = vrot.slane %v1221_v48, 4  ;;  %v1227_v40 = vrot.slane %v1221_v48, 3  ;;  %v1230_v22 = vrot.slane %v1221_v48, 6  ;;  %v1229_v53 = vrot.slane %v1221_v48, 5 }
 0xe68   :  { %v1223_v44 = vpop.f32.mrf.mxu1 }
 0xe69   :  { %1265 = vrot.lane.b32.xlu0 %v1228_v39, %s2266_s25  ;;  %1263 = vrot.lane.b32.xlu1 %v1227_v40, %s2266_s25  ;;  %v1236_v7 = vadd.f32 %v1228_v39, %v1170_v51  ;;  %v1235_v59 = vadd.f32 %v1227_v40, %v1169_v52  ;;  %v1238_v8 = vadd.f32 %v1230_v22, %v1172_v57 }
 0xe6a   :  { %v2045_v46 = vpop.f32.mrf.mxu1  ;;  %v1237_v14 = vadd.f32 %v1229_v53, %v1171_v63 }
 0xe6b   :  { %v1917_v47 = vmul.f32 -1.442695, %v1236_v7  ;;  %v1916_v24 = vmul.f32 -1.442695, %v1235_v59  ;;  %v1919_v18 = vmul.f32 -1.442695, %v1238_v8 }
 0xe6c   :  { %v1918_v12 = vmul.f32 -1.442695, %v1237_v14 }
 0xe6d   :  { %1269 = vrot.lane.b32.xlu0 %v1230_v22, %s2266_s25  ;;  %1267 = vrot.lane.b32.xlu1 %v1229_v53, %s2266_s25  ;;  %2189 = vpow2.f32 %v1917_v47 }
 0xe6e   :  { %2191 = vpow2.f32 %v1916_v24 }
 0xe6f   :  { %2193 = vpow2.f32 %v1919_v18 }
 0xe70   :  { %2195 = vpow2.f32 %v1918_v12 }
 0xe7a   :  { %v2190_v19 = vpop.eup %2189 }
 0xe7b   :  { %v2192_v20 = vpop.eup %2191  ;;  %v1252_v28 = vadd.f32 1.0, %v2190_v19 }
 0xe7c   :  { %v2194_v34 = vpop.eup %2193  ;;  %v1251_v1 = vadd.f32 1.0, %v2192_v20 }
 0xe7d   :  { %v2196_v4 = vpop.eup %2195  ;;  %2197 = vrcp.f32 %v1252_v28  ;;  %v1254_v35 = vadd.f32 1.0, %v2194_v34  ;;  %v1334_v34 = vrot.slane %v2675_v60, 7 }
 0xe7e   :  { %2199 = vrcp.f32 %v1251_v1  ;;  %v1253_v2 = vadd.f32 1.0, %v2196_v4 }
 0xe7f   :  { %2201 = vrcp.f32 %v1254_v35  ;;  %v1333_v35 = vrot.slane %v2678_v31, 7 }
 0xe80   :  { %2203 = vrcp.f32 %v1253_v2 }
 0xe8a   :  { %v2198_v6 = vpop.eup %2197 }
 0xe8b   :  { %v2200_v37 = vpop.eup %2199 }
 0xe8c   :  { %v2202_v45 = vpop.eup %2201  ;;  %v1303_v14 = vsub.f32 1.0, %v2200_v37 }
 0xe8d   :  { %v2204_v48 = vpop.eup %2203  ;;  %v1306_v4 = vsub.f32 1.0, %v2202_v45 }
 0xe8e   :  { %v1341_v60 = vmul.f32 %v2204_v48, %v1333_v35  ;;  %v1391_v35 = vld [vmem:[%s3242_s0 + $0x8] sm:$0x8] }
 0xedb   :  { %v1266_v38 = vpop.permute.xlu0 %1265  ;;  %v1264_v41 = vpop.permute.xlu1 %1263 }
 0xedc   :  { %v1276_v42 = vmul.f32 %v2198_v6, %v1266_v38  ;;  %v1275_v43 = vmul.f32 %v2200_v37, %v1264_v41  ;;  %v1305_v38 = vsub.f32 1.0, %v2204_v48 }
 0xede   :  { %1285 = vrot.lane.b32.xlu0 %v1276_v42, %s2266_s25  ;;  %1283 = vrot.lane.b32.xlu1 %v1275_v43, %s2266_s25 }
 0xedf   :  { %v1270_v49 = vpop.permute.xlu0 %1269  ;;  %v1268_v39 = vpop.permute.xlu1 %1267 }
 0xee0   :  { %v1278_v40 = vmul.f32 %v2202_v45, %v1270_v49  ;;  %v1277_v44 = vmul.f32 %v2204_v48, %v1268_v39 }
 0xee2   :  { %1289 = vrot.lane.b32.xlu0 %v1278_v40, %s2266_s25  ;;  %1287 = vrot.lane.b32.xlu1 %v1277_v44, %s2266_s25 }
 0xf50   :  { %v1286_v46 = vpop.permute.xlu0 %1285  ;;  %v1284_v22 = vpop.permute.xlu1 %1283 }
 0xf51   :  { %v1296_v53 = vadd.f32 %v1286_v46, %v1170_v51  ;;  %v1295_v0 = vadd.f32 %v1284_v22, %v1169_v52  ;;  %v1332_v51 = vrot.slane %v2661_v58, 7  ;;  %v1304_v52 = vsub.f32 1.0, %v2198_v6 }
 0xf53   :  { %2205 = vtanh.f32 %v1296_v53  ;;  %v1340_v18 = vmul.f32 %v2198_v6, %v1332_v51  ;;  %v1342_v6 = vmul.f32 %v2202_v45, %v1334_v34 }
 0xf54   :  { %2207 = vtanh.f32 %v1295_v0  ;;  %v1290_v23 = vpop.permute.xlu0 %1289  ;;  %v1288_v54 = vpop.permute.xlu1 %1287 }
 0xf55   :  { %v1298_v55 = vadd.f32 %v1290_v23, %v1172_v57  ;;  %v1297_v7 = vadd.f32 %v1288_v54, %v1171_v63  ;;  %v1331_v57 = vrot.slane %v2664_v26, 7 }
 0xf57   :  { %2209 = vtanh.f32 %v1298_v55  ;;  %v1339_v20 = vmul.f32 %v2200_v37, %v1331_v57 }
 0xf58   :  { %2211 = vtanh.f32 %v1297_v7 }
 0xf60   :  { %v2206_v59 = vpop.eup %2205 }
 0xf61   :  { %v2208_v47 = vpop.eup %2207  ;;  %1313 = vrot.lane.b32.xlu0 %v2206_v59, %s2268_s10 }
 0xf62   :  { %1311 = vrot.lane.b32.xlu1 %v2208_v47, %s2268_s10 }
 0xf64   :  { %v2210_v8 = vpop.eup %2209 }
 0xf65   :  { %v2212_v24 = vpop.eup %2211  ;;  %1317 = vrot.lane.b32.xlu0 %v2210_v8, %s2268_s10 }
 0xf66   :  { %1315 = vrot.lane.b32.xlu1 %v2212_v24, %s2268_s10 }
 0xfd3   :  { %v1314_v63 = vpop.permute.xlu0 %1313 }
 0xfd4   :  { %v1324_v12 = vmul.f32 %v1314_v63, %v1304_v52  ;;  %v1312_v19 = vpop.permute.xlu1 %1311 }
 0xfd5   :  { %v1323_v28 = vmul.f32 %v1312_v19, %v1303_v14  ;;  %v1390_v19 = vld [vmem:[%s3242_s0 + $0x4] sm:$0x8] }
 0xfd6   :  { %v2728_v1 = vadd.f32 %v1340_v18, %v1324_v12 }
 0xfd7   :  { %v2731_v2 = vadd.f32 %v1339_v20, %v1323_v28  ;;  %v1318_v58 = vpop.permute.xlu0 %1317  ;;  %v1389_v20 = vld [vmem:[%s3242_s0] sm:$0x8]  ;;  %v1394_v28 = vunpack.c.l.bf16 %v1390_v19 }
 0xfd8   :  { %v2735_v26 = vpack.c.bf16 %v2728_v1, %v2728_v1  ;;  %v1326_v41 = vmul.f32 %v1318_v58, %v1306_v4  ;;  %v1316_v42 = vpop.permute.xlu1 %1315  ;;  %v1393_v34 = vunpack.c.l.bf16 %v1389_v20  ;;  %v1392_v4 = vld [vmem:[%s3242_s0 + $0xc] sm:$0x8] }
 0xfd9   :  { %v2739_v37 = vpack.c.bf16 %v2731_v2, %v2731_v2  ;;  %v1325_v43 = vmul.f32 %v1316_v42, %v1305_v38  ;;  %v1396_v38 = vunpack.c.l.bf16 %v1392_v4 }
 0xfda   :  { %v1356_v49 = vunpack.c.l.b16 %v2735_v26  ;;  %v2742_v31 = vadd.f32 %v1342_v6, %v1326_v41  ;;  %v1395_v41 = vunpack.c.l.bf16 %v1391_v35 }
 0xfdb   :  { %v1355_v39 = vunpack.c.l.b16 %v2739_v37  ;;  %v2745_v40 = vadd.f32 %v1341_v60, %v1325_v43 }
 0xfdc   :  { %v2749_v44 = vpack.c.bf16 %v2742_v31, %v2742_v31  ;;  %v1398_v46 = vrot.slane %v1356_v49, 4 }
 0xfdd   :  { %v2753_v45 = vpack.c.bf16 %v2745_v40, %v2745_v40  ;;  %v1397_v22 = vrot.slane %v1355_v39, 5 }
 0xfde   :  { %v1358_v48 = vunpack.c.l.b16 %v2749_v44 }
 0xfdf   :  { %v1357_v53 = vunpack.c.l.b16 %v2753_v45  ;;  %v1399_v54 = vsel %vm280_vm3, %v1398_v46, %v1397_v22 }
 0xfe0   :  { %v1402_v0 = vrot.slane %v1358_v48, 2 }
 0xfe1   :  { %v1400_v23 = vrot.slane %v1357_v53, 3 }
 0xfe3   :  { %v1401_v55 = vsel %vm283_vm4, %v1400_v23, %v1399_v54 }
 0xfe4   :  { %v1403_v7 = vsel %vm286_vm5, %v1402_v0, %v1401_v55 }
 0xfe5   :  { %v1404_v59 = vpack.c.b16 %v1403_v7, %v1403_v7 }
 0xfe7   :  { %1405 = vrot.lane.b32.xlu1 %v1404_v59, %s2268_s10 }
0x1059   :  { %v1406_v47 = vpop.permute.xlu1 %1405 }
0x105a   :  { %2051 = vmatmul.mubr.msk.bf16.vlgmr.msra.gmra.mxu0 %vm60_vm2, %v1406_v47 }
0x111a   :  { %v1444_v8 = vpop.f32.mrf.mxu0 }
0x111b   :  { %v1445_v24 = vadd.f32 %v2631_v27, %v1444_v8 }
0x111c   :  { %v2052_v51 = vpop.f32.mrf.mxu0 }
0x111d   :  { %v1452_v52 = vrot.slane %v1445_v24, 3  ;;  %v1451_v57 = vrot.slane %v1445_v24, 2  ;;  %v1454_v18 = vrot.slane %v1445_v24, 5  ;;  %v1453_v12 = vrot.slane %v1445_v24, 4 }
0x111e   :  { %v1447_v63 = vpop.f32.mrf.mxu0 }
0x111f   :  { %1489 = vrot.lane.b32.xlu1 %v1452_v52, %s2266_s25  ;;  %1487 = vrot.lane.b32.xlu0 %v1451_v57, %s2266_s25  ;;  %v1460_v58 = vadd.f32 %v1452_v52, %v1394_v28  ;;  %v1459_v6 = vadd.f32 %v1451_v57, %v1393_v34  ;;  %v1462_v60 = vadd.f32 %v1454_v18, %v1396_v38 }
0x1120   :  { %v2053_v14 = vpop.f32.mrf.mxu0  ;;  %v1461_v49 = vadd.f32 %v1453_v12, %v1395_v41 }
0x1121   :  { %v1926_v42 = vmul.f32 -1.442695, %v1460_v58  ;;  %v1925_v43 = vmul.f32 -1.442695, %v1459_v6  ;;  %v1928_v39 = vmul.f32 -1.442695, %v1462_v60 }
0x1122   :  { %v1927_v46 = vmul.f32 -1.442695, %v1461_v49 }
0x1123   :  { %1493 = vrot.lane.b32.xlu1 %v1454_v18, %s2266_s25  ;;  %1491 = vrot.lane.b32.xlu0 %v1453_v12, %s2266_s25  ;;  %2213 = vpow2.f32 %v1926_v42 }
0x1124   :  { %2215 = vpow2.f32 %v1925_v43 }
0x1125   :  { %2217 = vpow2.f32 %v1928_v39 }
0x1126   :  { %2219 = vpow2.f32 %v1927_v46 }
0x1130   :  { %v2214_v22 = vpop.eup %2213 }
0x1131   :  { %v2216_v48 = vpop.eup %2215  ;;  %v1476_v53 = vadd.f32 1.0, %v2214_v22 }
0x1132   :  { %v2218_v0 = vpop.eup %2217  ;;  %v1475_v23 = vadd.f32 1.0, %v2216_v48 }
0x1133   :  { %v2220_v54 = vpop.eup %2219  ;;  %2221 = vrcp.f32 %v1476_v53  ;;  %v1478_v55 = vadd.f32 1.0, %v2218_v0 }
0x1134   :  { %2223 = vrcp.f32 %v1475_v23  ;;  %v1477_v7 = vadd.f32 1.0, %v2220_v54 }
0x1135   :  { %2225 = vrcp.f32 %v1478_v55 }
0x1136   :  { %2227 = vrcp.f32 %v1477_v7  ;;  %v1558_v7 = vrot.slane %v2742_v31, 7 }
0x1140   :  { %v2222_v59 = vpop.eup %2221 }
0x1141   :  { %v2224_v47 = vpop.eup %2223 }
0x1142   :  { %v2226_v57 = vpop.eup %2225  ;;  %v1527_v48 = vsub.f32 1.0, %v2224_v47 }
0x1143   :  { %v2228_v63 = vpop.eup %2227 }
0x1191   :  { %v1490_v8 = vpop.permute.xlu1 %1489  ;;  %v1488_v24 = vpop.permute.xlu0 %1487 }
0x1192   :  { %v1500_v51 = vmul.f32 %v2222_v59, %v1490_v8  ;;  %v1499_v52 = vmul.f32 %v2224_v47, %v1488_v24  ;;  %v1530_v24 = vsub.f32 1.0, %v2226_v57 }
0x1194   :  { %1509 = vrot.lane.b32.xlu1 %v1500_v51, %s2266_s25  ;;  %1507 = vrot.lane.b32.xlu0 %v1499_v52, %s2266_s25  ;;  %v1557_v51 = vrot.slane %v2745_v40, 7 }
0x1195   :  { %v1494_v14 = vpop.permute.xlu1 %1493  ;;  %v1492_v18 = vpop.permute.xlu0 %1491 }
0x1196   :  { %v1502_v12 = vmul.f32 %v2226_v57, %v1494_v14  ;;  %v1501_v19 = vmul.f32 %v2228_v63, %v1492_v18  ;;  %v1529_v14 = vsub.f32 1.0, %v2228_v63  ;;  %v1565_v31 = vmul.f32 %v2228_v63, %v1557_v51 }
0x1198   :  { %1513 = vrot.lane.b32.xlu1 %v1502_v12, %s2266_s25  ;;  %1511 = vrot.lane.b32.xlu0 %v1501_v19, %s2266_s25 }
0x1206   :  { %v1510_v20 = vpop.permute.xlu1 %1509  ;;  %v1508_v4 = vpop.permute.xlu0 %1507 }
0x1207   :  { %v1520_v35 = vadd.f32 %v1510_v20, %v1394_v28  ;;  %v1519_v58 = vadd.f32 %v1508_v4, %v1393_v34  ;;  %v1556_v28 = vrot.slane %v2728_v1, 7  ;;  %v1528_v34 = vsub.f32 1.0, %v2222_v59 }
0x1209   :  { %2229 = vtanh.f32 %v1520_v35  ;;  %v1564_v53 = vmul.f32 %v2222_v59, %v1556_v28  ;;  %v1566_v59 = vmul.f32 %v2226_v57, %v1558_v7 }
0x120a   :  { %2231 = vtanh.f32 %v1519_v58  ;;  %v1514_v6 = vpop.permute.xlu1 %1513  ;;  %v1512_v42 = vpop.permute.xlu0 %1511 }
0x120b   :  { %v1522_v60 = vadd.f32 %v1514_v6, %v1396_v38  ;;  %v1521_v43 = vadd.f32 %v1512_v42, %v1395_v41  ;;  %v1555_v38 = vrot.slane %v2731_v2, 7 }
0x120d   :  { %2233 = vtanh.f32 %v1522_v60  ;;  %v1563_v54 = vmul.f32 %v2224_v47, %v1555_v38 }
0x120e   :  { %2235 = vtanh.f32 %v1521_v43 }
0x1216   :  { %v2230_v49 = vpop.eup %2229 }
0x1217   :  { %v2232_v39 = vpop.eup %2231  ;;  %1537 = vrot.lane.b32.xlu1 %v2230_v49, %s2268_s10 }
0x1218   :  { %1535 = vrot.lane.b32.xlu0 %v2232_v39, %s2268_s10 }
0x121a   :  { %v2234_v46 = vpop.eup %2233 }
0x121b   :  { %v2236_v22 = vpop.eup %2235  ;;  %1541 = vrot.lane.b32.xlu1 %v2234_v46, %s2268_s10 }
0x121c   :  { %1539 = vrot.lane.b32.xlu0 %v2236_v22, %s2268_s10 }
0x1289   :  { %v1538_v41 = vpop.permute.xlu1 %1537 }
0x128a   :  { %v1548_v0 = vmul.f32 %v1538_v41, %v1528_v34  ;;  %v1536_v23 = vpop.permute.xlu0 %1535 }
0x128b   :  { %v1547_v55 = vmul.f32 %v1536_v23, %v1527_v48 }
0x128c   :  { %v2790_v8 = vadd.f32 %v1564_v53, %v1548_v0 }
0x128d   :  { %v2793_v52 = vadd.f32 %v1563_v54, %v1547_v55  ;;  %v1542_v1 = vpop.permute.xlu1 %1541 }
0x128e   :  { %v2797_v2 = vpack.c.bf16 %v2790_v8, %v2790_v8  ;;  %v1550_v18 = vmul.f32 %v1542_v1, %v1530_v24  ;;  %v1540_v12 = vpop.permute.xlu0 %1539  ;;  %v1616_v24 = vld [vmem:[%s3242_s0 + $0x8] sm:$0x8] }
0x128f   :  { %v2801_v47 = vpack.c.bf16 %v2793_v52, %v2793_v52  ;;  %v1549_v19 = vmul.f32 %v1540_v12, %v1529_v14  ;;  %v1620_v51 = vunpack.c.l.bf16 %v1616_v24  ;;  %v1617_v14 = vld [vmem:[%s3242_s0 + $0xc] sm:$0x8] }
0x1290   :  { %v1580_v20 = vunpack.c.l.b16 %v2797_v2  ;;  %v2804_v40 = vadd.f32 %v1566_v59, %v1550_v18  ;;  %v1614_v59 = vld [vmem:[%s3242_s0] sm:$0x8]  ;;  %v1621_v12 = vunpack.c.l.bf16 %v1617_v14 }
0x1291   :  { %v1579_v4 = vunpack.c.l.b16 %v2801_v47  ;;  %v2807_v35 = vadd.f32 %v1565_v31, %v1549_v19  ;;  %v1618_v19 = vunpack.c.l.bf16 %v1614_v59 }
0x1292   :  { %v2811_v58 = vpack.c.bf16 %v2804_v40, %v2804_v40  ;;  %v1623_v6 = vrot.slane %v1580_v20, 5 }
0x1293   :  { %v2815_v57 = vpack.c.bf16 %v2807_v35, %v2807_v35  ;;  %v1622_v42 = vrot.slane %v1579_v4, 6 }
0x1294   :  { %v1582_v63 = vunpack.c.l.b16 %v2811_v58 }
0x1295   :  { %v1581_v60 = vunpack.c.l.b16 %v2815_v57  ;;  %v1624_v39 = vsel %vm280_vm3, %v1623_v6, %v1622_v42 }
0x1296   :  { %v1627_v43 = vrot.slane %v1582_v63, 3 }
0x1297   :  { %v1625_v49 = vrot.slane %v1581_v60, 4 }
0x1299   :  { %v1626_v46 = vsel %vm283_vm4, %v1625_v49, %v1624_v39 }
0x129a   :  { %v1628_v22 = vsel %vm286_vm5, %v1627_v43, %v1626_v46 }
0x129b   :  { %v1629_v28 = vpack.c.b16 %v1628_v22, %v1628_v22 }
0x129d   :  { %1630 = vrot.lane.b32.xlu0 %v1629_v28, %s2268_s10 }
0x130f   :  { %v1631_v34 = vpop.permute.xlu0 %1630 }
0x1310   :  { %2059 = vmatmul.mubr.msk.bf16.vlgmr.msra.gmra.mxu1 %vm60_vm2, %v1631_v34  ;;  %vm482_vm2 = vsmask.f32 7938 }
0x13d0   :  { %v1669_v38 = vpop.f32.mrf.mxu1 }
0x13d1   :  { %v1670_v41 = vadd.f32 %v2631_v27, %v1669_v38  ;;  %v1615_v27 = vld [vmem:[%s3242_s0 + $0x4] sm:$0x8] }
0x13d2   :  { %v2060_v48 = vpop.f32.mrf.mxu1  ;;  %v1619_v1 = vunpack.c.l.bf16 %v1615_v27 }
0x13d3   :  { %v1678_v53 = vrot.slane %v1670_v41, 3  ;;  %v1677_v0 = vrot.slane %v1670_v41, 2  ;;  %v1679_v55 = vrot.slane %v1670_v41, 4  ;;  %v1676_v7 = vrot.slane %v1670_v41, 1 }
0x13d4   :  { %v1672_v23 = vpop.f32.mrf.mxu1 }
0x13d5   :  { %1716 = vrot.lane.b32.xlu0 %v1678_v53, %s2266_s25  ;;  %1714 = vrot.lane.b32.xlu1 %v1677_v0, %s2266_s25  ;;  %v1686_v18 = vadd.f32 %v1678_v53, %v1620_v51  ;;  %v1685_v31 = vadd.f32 %v1677_v0, %v1619_v1  ;;  %v1687_v4 = vadd.f32 %v1679_v55, %v1621_v12 }
0x13d6   :  { %v2061_v54 = vpop.f32.mrf.mxu1  ;;  %v1684_v42 = vadd.f32 %v1676_v7, %v1618_v19 }
0x13d7   :  { %v1936_v20 = vmul.f32 -1.442695, %v1686_v18  ;;  %v1935_v6 = vmul.f32 -1.442695, %v1685_v31  ;;  %v1937_v63 = vmul.f32 -1.442695, %v1687_v4 }
0x13d8   :  { %v1934_v60 = vmul.f32 -1.442695, %v1684_v42 }
0x13d9   :  { %1718 = vrot.lane.b32.xlu0 %v1679_v55, %s2266_s25  ;;  %1712 = vrot.lane.b32.xlu1 %v1676_v7, %s2266_s25  ;;  %2237 = vpow2.f32 %v1936_v20 }
0x13da   :  { %2239 = vpow2.f32 %v1935_v6 }
0x13db   :  { %2241 = vpow2.f32 %v1937_v63 }
0x13dc   :  { %2243 = vpow2.f32 %v1934_v60 }
0x13e6   :  { %v2238_v43 = vpop.eup %2237 }
0x13e7   :  { %v2240_v49 = vpop.eup %2239  ;;  %v1702_v39 = vadd.f32 1.0, %v2238_v43 }
0x13e8   :  { %v2242_v46 = vpop.eup %2241  ;;  %v1701_v22 = vadd.f32 1.0, %v2240_v49 }
0x13e9   :  { %v2244_v28 = vpop.eup %2243  ;;  %2245 = vrcp.f32 %v1702_v39  ;;  %v1703_v34 = vadd.f32 1.0, %v2242_v46 }
0x13ea   :  { %2247 = vrcp.f32 %v1701_v22  ;;  %v1700_v38 = vadd.f32 1.0, %v2244_v28 }
0x13eb   :  { %2249 = vrcp.f32 %v1703_v34  ;;  %v268_v34 = vld [vmem:[%s3243_s4 + $0xc] sm:$0x1] }
0x13ec   :  { %2251 = vrcp.f32 %v1700_v38  ;;  %v265_v38 = vld [vmem:[%s3243_s4 + $0x8] sm:$0x1] }
0x13f6   :  { %v2841_v41 = vpop.eup %2245 }
0x13f7   :  { %v2843_v48 = vpop.eup %2247 }
0x13f8   :  { %v2847_v55 = vpop.eup %2249 }
0x13f9   :  { %v2851_v7 = vpop.eup %2251 }
0x1447   :  { %v1717_v53 = vpop.permute.xlu0 %1716  ;;  %v1715_v0 = vpop.permute.xlu1 %1714 }
0x1448   :  { %v1726_v23 = vmul.f32 %v2841_v41, %v1717_v53  ;;  %v1725_v54 = vmul.f32 %v2843_v48, %v1715_v0 }
0x144a   :  { %1736 = vrot.lane.b32.xlu0 %v1726_v23, %s2266_s25  ;;  %1734 = vrot.lane.b32.xlu1 %v1725_v54, %s2266_s25 }
0x144b   :  { %v1719_v24 = vpop.permute.xlu0 %1718  ;;  %v1713_v27 = vpop.permute.xlu1 %1712 }
0x144c   :  { %v1727_v14 = vmul.f32 %v2847_v55, %v1719_v24  ;;  %v1724_v59 = vmul.f32 %v2851_v7, %v1713_v27  ;;  %v707_v24 = vld [vmem:[%s3243_s4] sm:$0x2] }
0x144e   :  { %1738 = vrot.lane.b32.xlu0 %v1727_v14, %s2266_s25  ;;  %1732 = vrot.lane.b32.xlu1 %v1724_v59, %s2266_s25 }
0x14bc   :  { %v1737_v18 = vpop.permute.xlu0 %1736  ;;  %v1735_v31 = vpop.permute.xlu1 %1734 }
0x14bd   :  { %v1746_v20 = vadd.f32 %v1737_v18, %v1620_v51  ;;  %v1745_v4 = vadd.f32 %v1735_v31, %v1619_v1  ;;  %v716_v31 = vld [vmem:[%s3243_s4 + $0xc] sm:$0x2] }
0x14bf   :  { %2253 = vtanh.f32 %v1746_v20  ;;  %v713_v20 = vld [vmem:[%s3243_s4 + $0x8] sm:$0x2] }
0x14c0   :  { %2255 = vtanh.f32 %v1745_v4  ;;  %v1739_v6 = vpop.permute.xlu0 %1738  ;;  %v1733_v42 = vpop.permute.xlu1 %1732 }
0x14c1   :  { %v1747_v63 = vadd.f32 %v1739_v6, %v1621_v12  ;;  %v1744_v60 = vadd.f32 %v1733_v42, %v1618_v19 }
0x14c3   :  { %2257 = vtanh.f32 %v1747_v63 }
0x14c4   :  { %2259 = vtanh.f32 %v1744_v60 }
0x14cc   :  { %v2254_v43 = vpop.eup %2253 }
0x14cd   :  { %v2256_v49 = vpop.eup %2255  ;;  %1764 = vrot.lane.b32.xlu0 %v2254_v43, %s2268_s10  ;;  %v1156_v43 = vld [vmem:[%s3243_s4 + $0x4] sm:$0x4] }
0x14ce   :  { %1762 = vrot.lane.b32.xlu1 %v2256_v49, %s2268_s10  ;;  %v1153_v49 = vld [vmem:[%s3243_s4] sm:$0x4] }
0x14d0   :  { %v2258_v39 = vpop.eup %2257 }
0x14d1   :  { %v2260_v46 = vpop.eup %2259  ;;  %1766 = vrot.lane.b32.xlu0 %v2258_v39, %s2268_s10 }
0x14d2   :  { %1760 = vrot.lane.b32.xlu1 %v2260_v46, %s2268_s10 }
0x14d5   :  { %246 = vrot.lane.b32.xlu0 %v2381_v25, %s2268_s10  ;;  %v1782_v25 = vrot.slane %v2807_v35, 7 }
0x14d6   :  { %244 = vrot.lane.b32.xlu1 %v2401_v36, %s2268_s10 }
0x14d9   :  { %250 = vrot.lane.b32.xlu0 %v2387_v29, %s2268_s10  ;;  %v1754_v29 = vsub.f32 1.0, %v2841_v41 }
0x14da   :  { %248 = vrot.lane.b32.xlu1 %v2391_v30, %s2268_s10  ;;  %v1781_v30 = vrot.slane %v2790_v8, 7 }
0x14dd   :  { %694 = vrot.lane.b32.xlu0 %v2518_v3, %s2268_s10  ;;  %v1783_v3 = vrot.slane %v2804_v40, 7  ;;  %v259_v40 = vld [vmem:[%s3243_s4] sm:$0x1] }
0x14de   :  { %692 = vrot.lane.b32.xlu1 %v2522_v62, %s2268_s10  ;;  %v1789_v62 = vmul.f32 %v2843_v48, %v1781_v30  ;;  %v1162_v30 = vld [vmem:[%s3243_s4 + $0xc] sm:$0x4] }
0x14e1   :  { %698 = vrot.lane.b32.xlu0 %v2536_v11, %s2268_s10 }
0x14e2   :  { %696 = vrot.lane.b32.xlu1 %v2532_v9, %s2268_s10 }
0x14e5   :  { %1140 = vrot.lane.b32.xlu0 %v2668_v50, %s2268_s10  ;;  %v1752_v50 = vsub.f32 1.0, %v2851_v7 }
0x14e6   :  { %1138 = vrot.lane.b32.xlu1 %v2672_v16, %s2268_s10 }
0x14e9   :  { %1144 = vrot.lane.b32.xlu0 %v2682_v32, %s2268_s10  ;;  %v1791_v32 = vmul.f32 %v2847_v55, %v1783_v3 }
0x14ea   :  { %1142 = vrot.lane.b32.xlu1 %v2686_v21, %s2268_s10 }
0x14ed   :  { %1589 = vrot.lane.b32.xlu0 %v2797_v2, %s2268_s10 }
0x14ee   :  { %1587 = vrot.lane.b32.xlu1 %v2801_v47, %s2268_s10 }
0x14f1   :  { %1593 = vrot.lane.b32.xlu0 %v2811_v58, %s2268_s10 }
0x14f2   :  { %1591 = vrot.lane.b32.xlu1 %v2815_v57, %s2268_s10 }
0x14f5   :  { %472 = vrot.lane.b32.xlu0 %v2468_v17, %s2268_s10 }
0x14f6   :  { %470 = vrot.lane.b32.xlu1 %v2454_v10, %s2268_s10  ;;  %v1790_v10 = vmul.f32 %v2841_v41, %v1782_v25 }
0x14f9   :  { %476 = vrot.lane.b32.xlu0 %v2464_v15, %s2268_s10 }
0x14fa   :  { %474 = vrot.lane.b32.xlu1 %v2450_v33, %s2268_s10  ;;  %v1753_v33 = vsub.f32 1.0, %v2843_v48 }
0x14fd   :  { %917 = vrot.lane.b32.xlu0 %v2586_v56, %s2268_s10  ;;  %v1755_v56 = vsub.f32 1.0, %v2847_v55 }
0x14fe   :  { %915 = vrot.lane.b32.xlu1 %v2590_v13, %s2268_s10  ;;  %v1780_v13 = vrot.slane %v2793_v52, 7  ;;  %v262_v52 = vld [vmem:[%s3243_s4 + $0x4] sm:$0x1] }
0x1501   :  { %921 = vrot.lane.b32.xlu0 %v2604_v5, %s2268_s10 }
0x1502   :  { %919 = vrot.lane.b32.xlu1 %v2600_v61, %s2268_s10 }
0x1505   :  { %1365 = vrot.lane.b32.xlu0 %v2735_v26, %s2268_s10 }
0x1506   :  { %1363 = vrot.lane.b32.xlu1 %v2739_v37, %s2268_s10 }
0x1509   :  { %1369 = vrot.lane.b32.xlu0 %v2749_v44, %s2268_s10 }
0x150a   :  { %1367 = vrot.lane.b32.xlu1 %v2753_v45, %s2268_s10  ;;  %v1788_v45 = vmul.f32 %v2851_v7, %v1780_v13  ;;  %v710_v7 = vld [vmem:[%s3243_s4 + $0x4] sm:$0x2] }
0x153f   :  { %v1765_v36 = vpop.permute.xlu0 %1764 }
0x1540   :  { %v1774_v15 = vmul.f32 %v1765_v36, %v1754_v29  ;;  %v1763_v17 = vpop.permute.xlu1 %1762  ;;  %v1159_v36 = vld [vmem:[%s3243_s4 + $0x8] sm:$0x4] }
0x1541   :  { %v1773_v9 = vmul.f32 %v1763_v17, %v1753_v33 }
0x1542   :  { %v1794_v11 = vadd.f32 %v1790_v10, %v1774_v15 }
0x1543   :  { %v1793_v61 = vadd.f32 %v1789_v62, %v1773_v9  ;;  %v1767_v5 = vpop.permute.xlu0 %1766  ;;  %v1605_v62 = vld [vmem:[%s3243_s4 + $0x4] sm:$0x8]  ;;  %v1602_v9 = vld [vmem:[%s3243_s4] sm:$0x8] }
0x1544   :  { %v1843_v16 = vrot.slane %v1794_v11, 6  ;;  %v1775_v21 = vmul.f32 %v1767_v5, %v1755_v56  ;;  %v1761_v26 = vpop.permute.xlu1 %1760  ;;  %v1972_v23 = vpack.c.bf16 %v1794_v11, %v1794_v11  ;;  %v1611_v5 = vld [vmem:[%s3243_s4 + $0xc] sm:$0x8] }
0x1545   :  { %v1971_v37 = vpack.c.bf16 %v1793_v61, %v1793_v61  ;;  %v1842_v44 = vrot.slane %v1793_v61, 7  ;;  %v1772_v8 = vmul.f32 %v1761_v26, %v1752_v50  ;;  %v1608_v50 = vld [vmem:[%s3243_s4 + $0x8] sm:$0x8] }
0x1546   :  { %v1795_v47 = vadd.f32 %v1791_v32, %v1775_v21 }
0x1547   :  { %v1792_v35 = vadd.f32 %v1788_v45, %v1772_v8  ;;  %1814 = vrot.lane.b32.xlu0 %v1971_v37, %s2268_s10  ;;  %v247_v58 = vpop.permute.xlu0 %246  ;;  %v1844_v57 = vsel %vm280_vm3, %v1843_v16, %v1842_v44  ;;  %vm3083_vm3 = vmand %vm256_vm6, %vm482_vm2  ;;  %vm1375_vm6 = vsmask.f32 7946 }
0x1548   :  { %v1973_v51 = vpack.c.bf16 %v1795_v47, %v1795_v47  ;;  %v1845_v1 = vrot.slane %v1795_v47, 5  ;;  %v263_v12 = vsel %vm2930_vm8, %v247_v58, %v262_v52  ;;  %v245_v19 = vpop.permute.xlu1 %244  ;;  %vm3157_vm7 = vmand %vm1150_vm12, %vm1375_vm6 }
0x1549   :  { %v1970_v22 = vpack.c.bf16 %v1792_v35, %v1792_v35  ;;  %264 = vst [vmem:[%s3243_s4 + $0x4] sm:$0x1] %v263_v12  ;;  %v260_v28 = vsel %vm2930_vm8, %v245_v19, %v259_v40 }
0x154a   :  { %261 = vst [vmem:[%s3243_s4] sm:$0x1] %v260_v28  ;;  %v1846_v41 = vsel %vm283_vm4, %v1845_v1, %v1844_v57  ;;  %vm927_vm4 = vsmask.f32 7942 }
0x154b   :  { %1818 = vrot.lane.b32.xlu0 %v1973_v51, %s2268_s10  ;;  %1812 = vrot.lane.b32.xlu1 %v1970_v22, %s2268_s10  ;;  %v251_v48 = vpop.permute.xlu0 %250  ;;  %vm3120_vm5 = vmand %vm704_vm9, %vm927_vm4 }
0x154c   :  { %v269_v53 = vsel %vm2930_vm8, %v251_v48, %v268_v34  ;;  %v249_v0 = vpop.permute.xlu1 %248 }
0x154d   :  { %270 = vst [vmem:[%s3243_s4 + $0xc] sm:$0x1] %v269_v53  ;;  %v266_v54 = vsel %vm2930_vm8, %v249_v0, %v265_v38  ;;  %vm1824_vm8 = vsmask.f32 7950 }
0x154e   :  { %267 = vst [vmem:[%s3243_s4 + $0x8] sm:$0x1] %v266_v54  ;;  %vm3197_vm9 = vmand %vm1599_vm15, %vm1824_vm8 }
0x154f   :  { %1849 = vrot.lane.b32.xlu0 %v1846_v41, %s2268_s10  ;;  %1816 = vrot.lane.b32.xlu1 %v1972_v23, %s2268_s10  ;;  %v695_v27 = vpop.permute.xlu0 %694 }
0x1550   :  { %v711_v14 = vsel %vm2969_vm11, %v695_v27, %v710_v7  ;;  %v693_v59 = vpop.permute.xlu1 %692  ;;  %v487_v44 = vld [vmem:[%s3243_s4 + $0x4] sm:$0x1] }
0x1551   :  { %712 = vst [vmem:[%s3243_s4 + $0x4] sm:$0x2] %v711_v14  ;;  %v708_v18 = vsel %vm2969_vm11, %v693_v59, %v707_v24  ;;  %v484_v2 = vld [vmem:[%s3243_s4] sm:$0x1] }
0x1552   :  { %709 = vst [vmem:[%s3243_s4] sm:$0x2] %v708_v18 }
0x1553   :  { %1847 = vrot.lane.b32.xlu1 %v1792_v35, %s2268_s10  ;;  %v699_v4 = vpop.permute.xlu0 %698 }
0x1554   :  { %v717_v6 = vsel %vm2969_vm11, %v699_v4, %v716_v31  ;;  %v697_v42 = vpop.permute.xlu1 %696  ;;  %v493_v40 = vld [vmem:[%s3243_s4 + $0xc] sm:$0x1] }
0x1555   :  { %718 = vst [vmem:[%s3243_s4 + $0xc] sm:$0x2] %v717_v6  ;;  %v714_v63 = vsel %vm2969_vm11, %v697_v42, %v713_v20  ;;  %v490_v57 = vld [vmem:[%s3243_s4 + $0x8] sm:$0x1]  ;;  %vm1853_vm11 = vcmask 261127  }
0x1556   :  { %715 = vst [vmem:[%s3243_s4 + $0x8] sm:$0x2] %v714_v63 }
0x1557   :  { %v1141_v39 = vpop.permute.xlu0 %1140 }
0x1558   :  { %v1157_v46 = vsel %vm3009_vm14, %v1141_v39, %v1156_v43  ;;  %v1139_v25 = vpop.permute.xlu1 %1138  ;;  %v932_v19 = vld [vmem:[%s3243_s4 + $0x4] sm:$0x2] }
0x1559   :  { %1158 = vst [vmem:[%s3243_s4 + $0x4] sm:$0x4] %v1157_v46  ;;  %v1154_v29 = vsel %vm3009_vm14, %v1139_v25, %v1153_v49  ;;  %v929_v34 = vld [vmem:[%s3243_s4] sm:$0x2] }
0x155a   :  { %1155 = vst [vmem:[%s3243_s4] sm:$0x4] %v1154_v29 }
0x155b   :  { %v1145_v33 = vpop.permute.xlu0 %1144 }
0x155c   :  { %v1163_v10 = vsel %vm3009_vm14, %v1145_v33, %v1162_v30  ;;  %v1143_v15 = vpop.permute.xlu1 %1142  ;;  %v938_v48 = vld [vmem:[%s3243_s4 + $0xc] sm:$0x2] }
0x155d   :  { %1164 = vst [vmem:[%s3243_s4 + $0xc] sm:$0x4] %v1163_v10  ;;  %v1160_v17 = vsel %vm3009_vm14, %v1143_v15, %v1159_v36  ;;  %v935_v23 = vld [vmem:[%s3243_s4 + $0x8] sm:$0x2] }
0x155e   :  { %1161 = vst [vmem:[%s3243_s4 + $0x8] sm:$0x4] %v1160_v17 }
0x155f   :  { %v1590_v11 = vpop.permute.xlu0 %1589 }
0x1560   :  { %v1606_v56 = vsel %vm3046_vm1, %v1590_v11, %v1605_v62  ;;  %v1588_v13 = vpop.permute.xlu1 %1587  ;;  %v1380_v24 = vld [vmem:[%s3243_s4 + $0x4] sm:$0x4] }
0x1561   :  { %1607 = vst [vmem:[%s3243_s4 + $0x4] sm:$0x8] %v1606_v56  ;;  %v1603_v61 = vsel %vm3046_vm1, %v1588_v13, %v1602_v9  ;;  %v1377_v59 = vld [vmem:[%s3243_s4] sm:$0x4] }
0x1562   :  { %1604 = vst [vmem:[%s3243_s4] sm:$0x8] %v1603_v61 }
0x1563   :  { %v1594_v16 = vpop.permute.xlu0 %1593 }
0x1564   :  { %v1612_v32 = vsel %vm3046_vm1, %v1594_v16, %v1611_v5  ;;  %v1592_v21 = vpop.permute.xlu1 %1591  ;;  %v1386_v20 = vld [vmem:[%s3243_s4 + $0xc] sm:$0x4] }
0x1565   :  { %1613 = vst [vmem:[%s3243_s4 + $0xc] sm:$0x8] %v1612_v32  ;;  %v1609_v26 = vsel %vm3046_vm1, %v1592_v21, %v1608_v50  ;;  %v1383_v42 = vld [vmem:[%s3243_s4 + $0x8] sm:$0x4] }
0x1566   :  { %1610 = vst [vmem:[%s3243_s4 + $0x8] sm:$0x8] %v1609_v26 }
0x1567   :  { %v473_v45 = vpop.permute.xlu0 %472 }
0x1568   :  { %v488_v8 = vsel %vm3083_vm3, %v473_v45, %v487_v44  ;;  %v471_v52 = vpop.permute.xlu1 %470  ;;  %v1829_v49 = vld [vmem:[%s3243_s4 + $0x4] sm:$0x8] }
0x1569   :  { %489 = vst [vmem:[%s3243_s4 + $0x4] sm:$0x1] %v488_v8  ;;  %v485_v47 = vsel %vm3083_vm3, %v471_v52, %v484_v2  ;;  %v1826_v30 = vld [vmem:[%s3243_s4] sm:$0x8] }
0x156a   :  { %486 = vst [vmem:[%s3243_s4] sm:$0x1] %v485_v47 }
0x156b   :  { %v477_v35 = vpop.permute.xlu0 %476 }
0x156c   :  { %v494_v58 = vsel %vm3083_vm3, %v477_v35, %v493_v40  ;;  %v475_v51 = vpop.permute.xlu1 %474  ;;  %v1835_v25 = vld [vmem:[%s3243_s4 + $0xc] sm:$0x8] }
0x156d   :  { %495 = vst [vmem:[%s3243_s4 + $0xc] sm:$0x1] %v494_v58  ;;  %v491_v1 = vsel %vm3083_vm3, %v475_v51, %v490_v57  ;;  %v1832_v17 = vld [vmem:[%s3243_s4 + $0x8] sm:$0x8] }
0x156e   :  { %492 = vst [vmem:[%s3243_s4 + $0x8] sm:$0x1] %v491_v1 }
0x156f   :  { %v918_v22 = vpop.permute.xlu0 %917 }
0x1570   :  { %v933_v28 = vsel %vm3120_vm5, %v918_v22, %v932_v19  ;;  %v916_v38 = vpop.permute.xlu1 %915 }
0x1571   :  { %934 = vst [vmem:[%s3243_s4 + $0x4] sm:$0x2] %v933_v28  ;;  %v930_v41 = vsel %vm3120_vm5, %v916_v38, %v929_v34 }
0x1572   :  { %931 = vst [vmem:[%s3243_s4] sm:$0x2] %v930_v41 }
0x1573   :  { %v922_v53 = vpop.permute.xlu0 %921 }
0x1574   :  { %v939_v0 = vsel %vm3120_vm5, %v922_v53, %v938_v48  ;;  %v920_v54 = vpop.permute.xlu1 %919 }
0x1575   :  { %940 = vst [vmem:[%s3243_s4 + $0xc] sm:$0x2] %v939_v0  ;;  %v936_v55 = vsel %vm3120_vm5, %v920_v54, %v935_v23 }
0x1576   :  { %937 = vst [vmem:[%s3243_s4 + $0x8] sm:$0x2] %v936_v55 }
0x1577   :  { %v1366_v27 = vpop.permute.xlu0 %1365 }
0x1578   :  { %v1381_v14 = vsel %vm3157_vm7, %v1366_v27, %v1380_v24  ;;  %v1364_v18 = vpop.permute.xlu1 %1363 }
0x1579   :  { %1382 = vst [vmem:[%s3243_s4 + $0x4] sm:$0x4] %v1381_v14  ;;  %v1378_v31 = vsel %vm3157_vm7, %v1364_v18, %v1377_v59 }
0x157a   :  { %1379 = vst [vmem:[%s3243_s4] sm:$0x4] %v1378_v31 }
0x157b   :  { %v1370_v4 = vpop.permute.xlu0 %1369 }
0x157c   :  { %v1387_v6 = vsel %vm3157_vm7, %v1370_v4, %v1386_v20  ;;  %v1368_v63 = vpop.permute.xlu1 %1367 }
0x157d   :  { %1388 = vst [vmem:[%s3243_s4 + $0xc] sm:$0x4] %v1387_v6  ;;  %v1384_v60 = vsel %vm3157_vm7, %v1368_v63, %v1383_v42 }
0x157e   :  { %1385 = vst [vmem:[%s3243_s4 + $0x8] sm:$0x4] %v1384_v60 }
0x15b9   :  { %v1815_v39 = vpop.permute.xlu0 %1814 }
0x15ba   :  { %v1830_v46 = vsel %vm3197_vm9, %v1815_v39, %v1829_v49 }
0x15bb   :  { %1831 = vst [vmem:[%s3243_s4 + $0x4] sm:$0x8] %v1830_v46 }
0x15bd   :  { %v1819_v29 = vpop.permute.xlu0 %1818  ;;  %v1813_v36 = vpop.permute.xlu1 %1812 }
0x15be   :  { %v1836_v33 = vsel %vm3197_vm9, %v1819_v29, %v1835_v25  ;;  %v1827_v10 = vsel %vm3197_vm9, %v1813_v36, %v1826_v30 }
0x15bf   :  { %1837 = vst [vmem:[%s3243_s4 + $0xc] sm:$0x8] %v1836_v33  ;;  %1828 = vst [vmem:[%s3243_s4] sm:$0x8] %v1827_v10 }
0x15c1   :  { %v1850_v15 = vpop.permute.xlu0 %1849  ;;  %v1817_v3 = vpop.permute.xlu1 %1816 }
0x15c2   :  { %1856 = vst.msk [vmem:[#allocation2 + $0x1] sm:$0x7] %vm1855_vm10, %v1850_v15  ;;  %1858 = vst.msk [vmem:[%s3244_s5 + $0x1] sm:$0x7] %vm1855_vm10, %v1850_v15  ;;  %v1833_v62 = vsel %vm3197_vm9, %v1817_v3, %v1832_v17 }
0x15c3   :  { %1834 = vst [vmem:[%s3243_s4 + $0x8] sm:$0x8] %v1833_v62 }
0x15c5   :  { %v1848_v9 = vpop.permute.xlu1 %1847 }
0x15c6   :  { %1854 = vst.msk [vmem:[#allocation2 - $0x7] sm:$0x80] %vm1853_vm11, %v1848_v9  ;;  %1857 = vst.msk [vmem:[%s3244_s5 - $0x7] sm:$0x80] %vm1853_vm11, %v1848_v9 }

</bundles_post_ra>
